<compile_context>
chip_gen: v7x
topology: tpu7x:2x2x1
jax: 0.10.0
libtpu: 0.0.40
codegen_flags: <defaults>
</compile_context>

<pallas_src>
import math
import functools

import jax
import jax.numpy as jnp
from jax import lax
from jax.experimental import pallas as pl
from jax.experimental.pallas import tpu as pltpu


# ----------------------------------------------------------------------------
# Kernel: one grid step == (one batch block, one query block), all heads.
# ----------------------------------------------------------------------------

def _mha_kernel(xq_ref, xk_ref, xv_ref,
                wq_ref, wk_ref, wv_ref, wo_ref,
                bq_ref, bk_ref, bv_ref, bo_ref,
                out_ref, attn_ref,
                k_scr, v_scr, concat_scr,
                *, num_heads, inv_scale, b_blk, tq, sk):
    qb = pl.program_id(1)
    d_model = wq_ref.shape[0]
    dk = d_model // num_heads

    # --- K/V projections: once per batch block, cached in VMEM scratch -----
    @pl.when(qb == 0)
    def _():
        xk = xk_ref[...].reshape(b_blk * sk, d_model).astype(jnp.bfloat16)
        xv = xv_ref[...].reshape(b_blk * sk, d_model).astype(jnp.bfloat16)
        k = jnp.dot(xk, wk_ref[...], preferred_element_type=jnp.float32) + bk_ref[...]
        v = jnp.dot(xv, wv_ref[...], preferred_element_type=jnp.float32) + bv_ref[...]
        k_scr[...] = k.astype(jnp.bfloat16)
        v_scr[...] = v.astype(jnp.bfloat16)

    # --- Q projection for this query block (row-slab: B_blk*TQ rows) -------
    xq = xq_ref[...].reshape(b_blk * tq, d_model).astype(jnp.bfloat16)
    q = jnp.dot(xq, wq_ref[...], preferred_element_type=jnp.float32) + bq_ref[...]

    # --- Per-head attention (static, unrolled); heads split by lane slices -
    for h in range(num_heads):
        lo = h * dk
        # Fold 1/sqrt(dk) into Q before the bf16 cast (Sq x dk VPU work).
        qh = (q[:, lo:lo + dk] * inv_scale).astype(jnp.bfloat16)   # (B*TQ, dk)
        kh = k_scr[:, lo:lo + dk]                                  # (B*Sk, dk)
        vh = v_scr[:, lo:lo + dk]                                  # (B*Sk, dk)

        for b in range(b_blk):
            q_b = qh[b * tq:(b + 1) * tq]
            k_b = kh[b * sk:(b + 1) * sk]
            v_b = vh[b * sk:(b + 1) * sk]

            # scores = (qh * inv_scale) @ kh^T, contract dk directly.
            s = lax.dot_general(q_b, k_b, (((1,), (1,)), ((), ())),
                                preferred_element_type=jnp.float32)

            # Max-stabilized softmax; exact normalization (user-visible output).
            m = jnp.max(s, axis=-1, keepdims=True)
            p = jnp.exp(s - m)
            denom = jnp.sum(p, axis=-1, keepdims=True)
            w = p / denom
            attn_ref[b, h] = w                                      # (TQ, Sk)

            head_out = jnp.dot(w.astype(jnp.bfloat16), v_b,
                               preferred_element_type=jnp.float32)  # (TQ, dk)
            # Static lane-offset write into the concat scratch.
            concat_scr[b * tq:(b + 1) * tq, lo:lo + dk] = head_out.astype(jnp.bfloat16)

    # --- Output projection on the full (B_blk*TQ, D) concat slab -----------
    out = jnp.dot(concat_scr[...], wo_ref[...],
                  preferred_element_type=jnp.float32) + bo_ref[...]
    for b in range(b_blk):
        out_ref[b] = out[b * tq:(b + 1) * tq]


# ----------------------------------------------------------------------------
# Wrapper
# ----------------------------------------------------------------------------

def _largest_divisor_leq(n, cap, multiple_of=1):
    best = None
    for d in range(1, min(n, cap) + 1):
        if n % d == 0 and d % multiple_of == 0:
            best = d
    return best


def multi_head_attention(params, q_in, k_in, v_in, num_heads, mask=None,
                         block_batch=None, block_q=None):
    """q_in: (B, Sq, D); k_in/v_in: (B, Sk, D). Returns (output, attn_weights)
    matching the PyTorch module (mask=None path)."""
    if mask is not None:
        # TODO(synk): masked_fill branch of ScaledDotProductAttention not implemented.
        raise NotImplementedError("mask is not supported (module default is mask=None)")

    B, Sq, D = q_in.shape
    Sk = k_in.shape[1]
    dk = D // num_heads
    inv_scale = 1.0 / math.sqrt(float(dk))

    # Query-block size: full Sq if small, else the largest multiple-of-8 divisor <= 256.
    if block_q is None:
        block_q = Sq if Sq <= 256 else (_largest_divisor_leq(Sq, 256, multiple_of=8) or Sq)
    tq = block_q
    # Batch-block size: pack batches until the projection row-slab reaches ~256 rows.
    if block_batch is None:
        row_target = max(1, -(-256 // tq))
        block_batch = _largest_divisor_leq(B, row_target) or 1
    b_blk = block_batch

    grid = (B // b_blk, Sq // tq)

    kernel = functools.partial(_mha_kernel, num_heads=num_heads,
                               inv_scale=inv_scale, b_blk=b_blk, tq=tq, sk=Sk)

    cost = pl.CostEstimate(
        flops=2 * B * D * D * (2 * Sq + 2 * Sk) + 4 * B * Sq * Sk * D,
        transcendentals=B * num_heads * Sq * Sk,
        bytes_accessed=(4 * B * (Sq + 2 * Sk) * D          # f32 activations in
                        + 2 * 4 * D * D + 4 * 4 * D        # bf16 weights + f32 biases
                        + 4 * B * Sq * D                   # f32 output
                        + 4 * B * num_heads * Sq * Sk))    # f32 attention weights

    out, attn = pl.pallas_call(
        kernel,
        out_shape=(
            jax.ShapeDtypeStruct((B, Sq, D), jnp.float32),
            jax.ShapeDtypeStruct((B, num_heads, Sq, Sk), jnp.float32),
        ),
        grid=grid,
        in_specs=[
            pl.BlockSpec((b_blk, tq, D), lambda b, qb: (b, qb, 0)),   # Q input
            pl.BlockSpec((b_blk, Sk, D), lambda b, qb: (b, 0, 0)),    # K input
            pl.BlockSpec((b_blk, Sk, D), lambda b, qb: (b, 0, 0)),    # V input
            pl.BlockSpec((D, D), lambda b, qb: (0, 0)),               # q_w
            pl.BlockSpec((D, D), lambda b, qb: (0, 0)),               # k_w
            pl.BlockSpec((D, D), lambda b, qb: (0, 0)),               # v_w
            pl.BlockSpec((D, D), lambda b, qb: (0, 0)),               # o_w
            pl.BlockSpec((1, D), lambda b, qb: (0, 0)),               # q_b
            pl.BlockSpec((1, D), lambda b, qb: (0, 0)),               # k_b
            pl.BlockSpec((1, D), lambda b, qb: (0, 0)),               # v_b
            pl.BlockSpec((1, D), lambda b, qb: (0, 0)),               # o_b
        ],
        out_specs=(
            pl.BlockSpec((b_blk, tq, D), lambda b, qb: (b, qb, 0)),
            pl.BlockSpec((b_blk, num_heads, tq, Sk), lambda b, qb: (b, 0, qb, 0)),
        ),
        scratch_shapes=[
            pltpu.VMEM((b_blk * Sk, D), jnp.bfloat16),   # K projection cache
            pltpu.VMEM((b_blk * Sk, D), jnp.bfloat16),   # V projection cache
            pltpu.VMEM((b_blk * tq, D), jnp.bfloat16),   # per-head concat slab
        ],
        compiler_params=pltpu.CompilerParams(
            dimension_semantics=("parallel", "arbitrary"),
            vmem_limit_bytes=64 * 1024 * 1024),
        cost_estimate=cost,
    )(q_in, k_in, v_in,
      params["q_w"], params["k_w"], params["v_w"], params["o_w"],
      params["q_b"], params["k_b"], params["v_b"], params["o_b"])
    return out, attn


# ----------------------------------------------------------------------------
# Pure-JAX reference (mirrors the kernel's bf16 matmul rounding).
# ----------------------------------------------------------------------------

def mha_reference(p, q_in, k_in, v_in, num_heads):
    B, Sq, D = q_in.shape
    Sk = k_in.shape[1]
    dk = D // num_heads
    inv_scale = 1.0 / math.sqrt(float(dk))

    def lin(x, w, b):
        return jnp.dot(x.astype(jnp.bfloat16), w,
                       preferred_element_type=jnp.float32) + b

    Q = lin(q_in, p["q_w"], p["q_b"]).reshape(B, Sq, num_heads, dk).transpose(0, 2, 1, 3)
    K = lin(k_in, p["k_w"], p["k_b"]).reshape(B, Sk, num_heads, dk).transpose(0, 2, 1, 3)
    V = lin(v_in, p["v_w"], p["v_b"]).reshape(B, Sk, num_heads, dk).transpose(0, 2, 1, 3)

    s = jnp.einsum("bhqd,bhkd->bhqk",
                   (Q * inv_scale).astype(jnp.bfloat16), K.astype(jnp.bfloat16),
                   preferred_element_type=jnp.float32)
    w = jax.nn.softmax(s, axis=-1)
    o = jnp.einsum("bhqk,bhkd->bhqd",
                   w.astype(jnp.bfloat16), V.astype(jnp.bfloat16),
                   preferred_element_type=jnp.float32)
    concat = o.transpose(0, 2, 1, 3).reshape(B, Sq, D)
    out = lin(concat, p["o_w"], p["o_b"])
    return out, w


# ----------------------------------------------------------------------------
# Deterministic parameter init (PyTorch Linear stored as (in, out) weights).
# ----------------------------------------------------------------------------

def init_mha_params(key, d_model):
    ks = jax.random.split(key, 8)

    def lin_init(kw, kb, din, dout):
        w = (jax.random.normal(kw, (din, dout), jnp.float32)
             * (1.0 / math.sqrt(din))).astype(jnp.bfloat16)
        b = jax.random.normal(kb, (1, dout), jnp.float32) * 0.01
        return w, b

    qw, qb = lin_init(ks[0], ks[1], d_model, d_model)
    kw_, kb_ = lin_init(ks[2], ks[3], d_model, d_model)
    vw, vb = lin_init(ks[4], ks[5], d_model, d_model)
    ow, ob = lin_init(ks[6], ks[7], d_model, d_model)
    return {"q_w": qw, "q_b": qb, "k_w": kw_, "k_b": kb_,
            "v_w": vw, "v_b": vb, "o_w": ow, "o_b": ob}


# ----------------------------------------------------------------------------
# Main
# ----------------------------------------------------------------------------

if __name__ == "__main__":
    # Module constants d_model=512, num_heads=8; small batch/seq for the test.
    d_model = 512
    num_heads = 8
    batch = 2
    seq_len = 8

    key = jax.random.PRNGKey(0)
    kp, kq, kk, kv = jax.random.split(key, 4)

    params = init_mha_params(kp, d_model)
    q_in = jax.random.normal(kq, (batch, seq_len, d_model), jnp.float32)
    k_in = jax.random.normal(kk, (batch, seq_len, d_model), jnp.float32)
    v_in = jax.random.normal(kv, (batch, seq_len, d_model), jnp.float32)

    fwd = jax.jit(functools.partial(multi_head_attention, num_heads=num_heads))
    out, attn = fwd(params, q_in, k_in, v_in)
    out, attn = jax.block_until_ready((out, attn))

    ref_out, ref_attn = mha_reference(params, q_in, k_in, v_in, num_heads)

    assert out.shape == (batch, seq_len, d_model)
    assert attn.shape == (batch, num_heads, seq_len, seq_len)
    assert bool(jnp.all(jnp.isfinite(out)))
    assert bool(jnp.allclose(out, ref_out, atol=2e-2, rtol=2e-2))
    assert bool(jnp.allclose(attn, ref_attn, atol=1e-2, rtol=1e-2))
    print("KERNEL_OK")
</pallas_src>

<mosaic_0001>
module attributes {stable_mosaic.version = 11 : i64} {
  func.func @_mha_kernel(%arg0: i32, %arg1: i32, %arg2: memref<2x8x512xf32, #tpu.memory_space<vmem>>, %arg3: memref<2x8x512xf32, #tpu.memory_space<vmem>>, %arg4: memref<2x8x512xf32, #tpu.memory_space<vmem>>, %arg5: memref<512x512xbf16, #tpu.memory_space<vmem>>, %arg6: memref<512x512xbf16, #tpu.memory_space<vmem>>, %arg7: memref<512x512xbf16, #tpu.memory_space<vmem>>, %arg8: memref<512x512xbf16, #tpu.memory_space<vmem>>, %arg9: memref<1x512xf32, #tpu.memory_space<vmem>>, %arg10: memref<1x512xf32, #tpu.memory_space<vmem>>, %arg11: memref<1x512xf32, #tpu.memory_space<vmem>>, %arg12: memref<1x512xf32, #tpu.memory_space<vmem>>, %arg13: memref<2x8x512xf32, #tpu.memory_space<vmem>>, %arg14: memref<2x8x8x8xf32, #tpu.memory_space<vmem>>, %arg15: memref<16x512xbf16, #tpu.memory_space<vmem>>, %arg16: memref<16x512xbf16, #tpu.memory_space<vmem>>, %arg17: memref<16x512xbf16, #tpu.memory_space<vmem>>) attributes {dimension_semantics = [#tpu.dimension_semantics<parallel>, #tpu.dimension_semantics<arbitrary>], iteration_bounds = array<i64: 1, 1>, scalar_prefetch = 0 : i64, scratch_operands = 3 : i64, tpu.core_type = #tpu.core_type<tc>, window_params = [{transform_indices = @transform_0, window_bounds = array<i64: 2, 8, 512>}, {transform_indices = @transform_1, window_bounds = array<i64: 2, 8, 512>}, {transform_indices = @transform_2, window_bounds = array<i64: 2, 8, 512>}, {pipeline_mode = #tpu.pipeline_mode<synchronous>, transform_indices = @transform_3, window_bounds = array<i64: 512, 512>}, {pipeline_mode = #tpu.pipeline_mode<synchronous>, transform_indices = @transform_4, window_bounds = array<i64: 512, 512>}, {pipeline_mode = #tpu.pipeline_mode<synchronous>, transform_indices = @transform_5, window_bounds = array<i64: 512, 512>}, {pipeline_mode = #tpu.pipeline_mode<synchronous>, transform_indices = @transform_6, window_bounds = array<i64: 512, 512>}, {pipeline_mode = #tpu.pipeline_mode<synchronous>, transform_indices = @transform_7, window_bounds = array<i64: 1, 512>}, {pipeline_mode = #tpu.pipeline_mode<synchronous>, transform_indices = @transform_8, window_bounds = array<i64: 1, 512>}, {pipeline_mode = #tpu.pipeline_mode<synchronous>, transform_indices = @transform_9, window_bounds = array<i64: 1, 512>}, {pipeline_mode = #tpu.pipeline_mode<synchronous>, transform_indices = @transform_10, window_bounds = array<i64: 1, 512>}, {transform_indices = @transform_11, window_bounds = array<i64: 2, 8, 512>}, {transform_indices = @transform_12, window_bounds = array<i64: 2, 8, 8, 8>}]} {
    %c0_i32 = arith.constant 0 : i32
    %0 = arith.cmpi eq, %arg1, %c0_i32 : i32
    %1 = arith.extui %0 : i1 to i32
    %c0_i32_0 = arith.constant 0 : i32
    %2 = arith.cmpi ne, %1, %c0_i32_0 : i32
    scf.if %2 {
      %c0_205 = arith.constant 0 : index
      %c0_206 = arith.constant 0 : index
      %c0_207 = arith.constant 0 : index
      %393 = vector.load %arg3[%c0_205, %c0_206, %c0_207] : memref<2x8x512xf32, #tpu.memory_space<vmem>>, vector<2x8x512xf32>
      %394 = vector.shape_cast %393 : vector<2x8x512xf32> to vector<16x512xf32>
      %395 = arith.truncf %394 : vector<16x512xf32> to vector<16x512xbf16>
      %c0_208 = arith.constant 0 : index
      %c0_209 = arith.constant 0 : index
      %c0_210 = arith.constant 0 : index
      %396 = vector.load %arg4[%c0_208, %c0_209, %c0_210] : memref<2x8x512xf32, #tpu.memory_space<vmem>>, vector<2x8x512xf32>
      %397 = vector.shape_cast %396 : vector<2x8x512xf32> to vector<16x512xf32>
      %398 = arith.truncf %397 : vector<16x512xf32> to vector<16x512xbf16>
      %c0_211 = arith.constant 0 : index
      %c0_212 = arith.constant 0 : index
      %399 = vector.load %arg6[%c0_211, %c0_212] : memref<512x512xbf16, #tpu.memory_space<vmem>>, vector<512x512xbf16>
      %cst_213 = arith.constant dense<0.000000e+00> : vector<16x512xf32>
      %400 = tpu.matmul %395, %399, %cst_213 {dimension_numbers = #tpu.dot_dimension_numbers<[1], [0], [0], [1], [0, 0, 1, 1], [], []>} : vector<16x512xbf16>, vector<512x512xbf16>, vector<16x512xf32> -> vector<16x512xf32>
      %c0_214 = arith.constant 0 : index
      %c0_215 = arith.constant 0 : index
      %401 = vector.load %arg10[%c0_214, %c0_215] : memref<1x512xf32, #tpu.memory_space<vmem>>, vector<1x512xf32>
      %402 = vector.broadcast %401 : vector<1x512xf32> to vector<16x512xf32>
      %403 = arith.addf %400, %402 : vector<16x512xf32>
      %c0_216 = arith.constant 0 : index
      %c0_217 = arith.constant 0 : index
      %404 = vector.load %arg7[%c0_216, %c0_217] : memref<512x512xbf16, #tpu.memory_space<vmem>>, vector<512x512xbf16>
      %cst_218 = arith.constant dense<0.000000e+00> : vector<16x512xf32>
      %405 = tpu.matmul %398, %404, %cst_218 {dimension_numbers = #tpu.dot_dimension_numbers<[1], [0], [0], [1], [0, 0, 1, 1], [], []>} : vector<16x512xbf16>, vector<512x512xbf16>, vector<16x512xf32> -> vector<16x512xf32>
      %c0_219 = arith.constant 0 : index
      %c0_220 = arith.constant 0 : index
      %406 = vector.load %arg11[%c0_219, %c0_220] : memref<1x512xf32, #tpu.memory_space<vmem>>, vector<1x512xf32>
      %407 = vector.broadcast %406 : vector<1x512xf32> to vector<16x512xf32>
      %408 = arith.addf %405, %407 : vector<16x512xf32>
      %409 = arith.truncf %403 : vector<16x512xf32> to vector<16x512xbf16>
      %c0_221 = arith.constant 0 : index
      %c0_222 = arith.constant 0 : index
      %410 = vector.load %arg15[%c0_221, %c0_222] : memref<16x512xbf16, #tpu.memory_space<vmem>>, vector<16x512xbf16>
      tpu.vector_store %arg15[%c0_221, %c0_222], %409 {strides = array<i32>} : memref<16x512xbf16, #tpu.memory_space<vmem>>, vector<16x512xbf16>,
      %411 = arith.truncf %408 : vector<16x512xf32> to vector<16x512xbf16>
      %c0_223 = arith.constant 0 : index
      %c0_224 = arith.constant 0 : index
      %412 = vector.load %arg16[%c0_223, %c0_224] : memref<16x512xbf16, #tpu.memory_space<vmem>>, vector<16x512xbf16>
      tpu.vector_store %arg16[%c0_223, %c0_224], %411 {strides = array<i32>} : memref<16x512xbf16, #tpu.memory_space<vmem>>, vector<16x512xbf16>,
    } else {
    }
    %c0 = arith.constant 0 : index
    %c0_1 = arith.constant 0 : index
    %c0_2 = arith.constant 0 : index
    %3 = vector.load %arg2[%c0, %c0_1, %c0_2] : memref<2x8x512xf32, #tpu.memory_space<vmem>>, vector<2x8x512xf32>
    %4 = vector.shape_cast %3 : vector<2x8x512xf32> to vector<16x512xf32>
    %5 = arith.truncf %4 : vector<16x512xf32> to vector<16x512xbf16>
    %c0_3 = arith.constant 0 : index
    %c0_4 = arith.constant 0 : index
    %6 = vector.load %arg5[%c0_3, %c0_4] : memref<512x512xbf16, #tpu.memory_space<vmem>>, vector<512x512xbf16>
    %cst = arith.constant dense<0.000000e+00> : vector<16x512xf32>
    %7 = tpu.matmul %5, %6, %cst {dimension_numbers = #tpu.dot_dimension_numbers<[1], [0], [0], [1], [0, 0, 1, 1], [], []>} : vector<16x512xbf16>, vector<512x512xbf16>, vector<16x512xf32> -> vector<16x512xf32>
    %c0_5 = arith.constant 0 : index
    %c0_6 = arith.constant 0 : index
    %8 = vector.load %arg9[%c0_5, %c0_6] : memref<1x512xf32, #tpu.memory_space<vmem>>, vector<1x512xf32>
    %9 = vector.broadcast %8 : vector<1x512xf32> to vector<16x512xf32>
    %10 = arith.addf %7, %9 : vector<16x512xf32>
    %11 = vector.extract_strided_slice %10 {offsets = [0, 0], sizes = [16, 64], strides = [1, 1]} : vector<16x512xf32> to vector<16x64xf32>
    %cst_7 = arith.constant 1.250000e-01 : f32
    %12 = vector.broadcast %cst_7 : f32 to vector<16x64xf32>
    %13 = arith.mulf %11, %12 : vector<16x64xf32>
    %14 = arith.truncf %13 : vector<16x64xf32> to vector<16x64xbf16>
    %c0_8 = arith.constant 0 : index
    %c0_9 = arith.constant 0 : index
    %15 = vector.load %arg15[%c0_8, %c0_9] : memref<16x512xbf16, #tpu.memory_space<vmem>>, vector<16x64xbf16>
    %c0_10 = arith.constant 0 : index
    %c0_11 = arith.constant 0 : index
    %16 = vector.load %arg16[%c0_10, %c0_11] : memref<16x512xbf16, #tpu.memory_space<vmem>>, vector<16x64xbf16>
    %17 = vector.extract_strided_slice %14 {offsets = [0, 0], sizes = [8, 64], strides = [1, 1]} : vector<16x64xbf16> to vector<8x64xbf16>
    %18 = vector.extract_strided_slice %15 {offsets = [0, 0], sizes = [8, 64], strides = [1, 1]} : vector<16x64xbf16> to vector<8x64xbf16>
    %19 = vector.extract_strided_slice %16 {offsets = [0, 0], sizes = [8, 64], strides = [1, 1]} : vector<16x64xbf16> to vector<8x64xbf16>
    %cst_12 = arith.constant dense<0.000000e+00> : vector<8x8xf32>
    %20 = tpu.matmul %17, %18, %cst_12 {dimension_numbers = #tpu.dot_dimension_numbers<[1], [1], [0], [0], [0, 0, 1, 0], [], []>} : vector<8x64xbf16>, vector<8x64xbf16>, vector<8x8xf32> -> vector<8x8xf32>
    %cst_13 = arith.constant dense<0xFF800000> : vector<8xf32>
    %21 = vector.multi_reduction <maximumf>, %20, %cst_13 [1] : vector<8x8xf32> to vector<8xf32>
    %22 = vector.shape_cast %21 : vector<8xf32> to vector<8x1xf32>
    %23 = vector.broadcast %22 : vector<8x1xf32> to vector<8x8xf32>
    %24 = arith.subf %20, %23 : vector<8x8xf32>
    %25 = math.exp %24 : vector<8x8xf32>
    %cst_14 = arith.constant dense<0.000000e+00> : vector<8xf32>
    %26 = vector.multi_reduction <add>, %25, %cst_14 [1] : vector<8x8xf32> to vector<8xf32>
    %27 = vector.shape_cast %26 : vector<8xf32> to vector<8x1xf32>
    %28 = vector.broadcast %27 : vector<8x1xf32> to vector<8x8xf32>
    %29 = arith.divf %25, %28 : vector<8x8xf32>
    %c0_15 = arith.constant 0 : index
    %c0_16 = arith.constant 0 : index
    %c0_17 = arith.constant 0 : index
    %c0_18 = arith.constant 0 : index
    %30 = vector.load %arg14[%c0_15, %c0_16, %c0_17, %c0_18] : memref<2x8x8x8xf32, #tpu.memory_space<vmem>>, vector<1x1x8x8xf32>
    %31 = vector.shape_cast %30 : vector<1x1x8x8xf32> to vector<8x8xf32>
    %32 = vector.shape_cast %29 : vector<8x8xf32> to vector<1x1x8x8xf32>
    tpu.vector_store %arg14[%c0_15, %c0_16, %c0_17, %c0_18], %32 {strides = array<i32>} : memref<2x8x8x8xf32, #tpu.memory_space<vmem>>, vector<1x1x8x8xf32>,
    %33 = arith.truncf %29 : vector<8x8xf32> to vector<8x8xbf16>
    %cst_19 = arith.constant dense<0.000000e+00> : vector<8x64xf32>
    %34 = tpu.matmul %33, %19, %cst_19 {dimension_numbers = #tpu.dot_dimension_numbers<[1], [0], [0], [1], [0, 0, 1, 1], [], []>} : vector<8x8xbf16>, vector<8x64xbf16>, vector<8x64xf32> -> vector<8x64xf32>
    %35 = arith.truncf %34 : vector<8x64xf32> to vector<8x64xbf16>
    %c0_20 = arith.constant 0 : index
    %c0_21 = arith.constant 0 : index
    %36 = vector.load %arg17[%c0_20, %c0_21] : memref<16x512xbf16, #tpu.memory_space<vmem>>, vector<8x64xbf16>
    tpu.vector_store %arg17[%c0_20, %c0_21], %35 {strides = array<i32>} : memref<16x512xbf16, #tpu.memory_space<vmem>>, vector<8x64xbf16>,
    %37 = vector.extract_strided_slice %14 {offsets = [8, 0], sizes = [8, 64], strides = [1, 1]} : vector<16x64xbf16> to vector<8x64xbf16>
    %38 = vector.extract_strided_slice %15 {offsets = [8, 0], sizes = [8, 64], strides = [1, 1]} : vector<16x64xbf16> to vector<8x64xbf16>
    %39 = vector.extract_strided_slice %16 {offsets = [8, 0], sizes = [8, 64], strides = [1, 1]} : vector<16x64xbf16> to vector<8x64xbf16>
    %cst_22 = arith.constant dense<0.000000e+00> : vector<8x8xf32>
    %40 = tpu.matmul %37, %38, %cst_22 {dimension_numbers = #tpu.dot_dimension_numbers<[1], [1], [0], [0], [0, 0, 1, 0], [], []>} : vector<8x64xbf16>, vector<8x64xbf16>, vector<8x8xf32> -> vector<8x8xf32>
    %cst_23 = arith.constant dense<0xFF800000> : vector<8xf32>
    %41 = vector.multi_reduction <maximumf>, %40, %cst_23 [1] : vector<8x8xf32> to vector<8xf32>
    %42 = vector.shape_cast %41 : vector<8xf32> to vector<8x1xf32>
    %43 = vector.broadcast %42 : vector<8x1xf32> to vector<8x8xf32>
    %44 = arith.subf %40, %43 : vector<8x8xf32>
    %45 = math.exp %44 : vector<8x8xf32>
    %cst_24 = arith.constant dense<0.000000e+00> : vector<8xf32>
    %46 = vector.multi_reduction <add>, %45, %cst_24 [1] : vector<8x8xf32> to vector<8xf32>
    %47 = vector.shape_cast %46 : vector<8xf32> to vector<8x1xf32>
    %48 = vector.broadcast %47 : vector<8x1xf32> to vector<8x8xf32>
    %49 = arith.divf %45, %48 : vector<8x8xf32>
    %c1 = arith.constant 1 : index
    %c0_25 = arith.constant 0 : index
    %c0_26 = arith.constant 0 : index
    %c0_27 = arith.constant 0 : index
    %50 = vector.load %arg14[%c1, %c0_25, %c0_26, %c0_27] : memref<2x8x8x8xf32, #tpu.memory_space<vmem>>, vector<1x1x8x8xf32>
    %51 = vector.shape_cast %50 : vector<1x1x8x8xf32> to vector<8x8xf32>
    %52 = vector.shape_cast %49 : vector<8x8xf32> to vector<1x1x8x8xf32>
    tpu.vector_store %arg14[%c1, %c0_25, %c0_26, %c0_27], %52 {strides = array<i32>} : memref<2x8x8x8xf32, #tpu.memory_space<vmem>>, vector<1x1x8x8xf32>,
    %53 = arith.truncf %49 : vector<8x8xf32> to vector<8x8xbf16>
    %cst_28 = arith.constant dense<0.000000e+00> : vector<8x64xf32>
    %54 = tpu.matmul %53, %39, %cst_28 {dimension_numbers = #tpu.dot_dimension_numbers<[1], [0], [0], [1], [0, 0, 1, 1], [], []>} : vector<8x8xbf16>, vector<8x64xbf16>, vector<8x64xf32> -> vector<8x64xf32>
    %55 = arith.truncf %54 : vector<8x64xf32> to vector<8x64xbf16>
    %c8 = arith.constant 8 : index
    %c0_29 = arith.constant 0 : index
    %56 = vector.load %arg17[%c8, %c0_29] : memref<16x512xbf16, #tpu.memory_space<vmem>>, vector<8x64xbf16>
    tpu.vector_store %arg17[%c8, %c0_29], %55 {strides = array<i32>} : memref<16x512xbf16, #tpu.memory_space<vmem>>, vector<8x64xbf16>,
    %57 = vector.extract_strided_slice %10 {offsets = [0, 64], sizes = [16, 64], strides = [1, 1]} : vector<16x512xf32> to vector<16x64xf32>
    %cst_30 = arith.constant 1.250000e-01 : f32
    %58 = vector.broadcast %cst_30 : f32 to vector<16x64xf32>
    %59 = arith.mulf %57, %58 : vector<16x64xf32>
    %60 = arith.truncf %59 : vector<16x64xf32> to vector<16x64xbf16>
    %c0_31 = arith.constant 0 : index
    %c64 = arith.constant 64 : index
    %61 = vector.load %arg15[%c0_31, %c64] : memref<16x512xbf16, #tpu.memory_space<vmem>>, vector<16x64xbf16>
    %c0_32 = arith.constant 0 : index
    %c64_33 = arith.constant 64 : index
    %62 = vector.load %arg16[%c0_32, %c64_33] : memref<16x512xbf16, #tpu.memory_space<vmem>>, vector<16x64xbf16>
    %63 = vector.extract_strided_slice %60 {offsets = [0, 0], sizes = [8, 64], strides = [1, 1]} : vector<16x64xbf16> to vector<8x64xbf16>
    %64 = vector.extract_strided_slice %61 {offsets = [0, 0], sizes = [8, 64], strides = [1, 1]} : vector<16x64xbf16> to vector<8x64xbf16>
    %65 = vector.extract_strided_slice %62 {offsets = [0, 0], sizes = [8, 64], strides = [1, 1]} : vector<16x64xbf16> to vector<8x64xbf16>
    %cst_34 = arith.constant dense<0.000000e+00> : vector<8x8xf32>
    %66 = tpu.matmul %63, %64, %cst_34 {dimension_numbers = #tpu.dot_dimension_numbers<[1], [1], [0], [0], [0, 0, 1, 0], [], []>} : vector<8x64xbf16>, vector<8x64xbf16>, vector<8x8xf32> -> vector<8x8xf32>
    %cst_35 = arith.constant dense<0xFF800000> : vector<8xf32>
    %67 = vector.multi_reduction <maximumf>, %66, %cst_35 [1] : vector<8x8xf32> to vector<8xf32>
    %68 = vector.shape_cast %67 : vector<8xf32> to vector<8x1xf32>
    %69 = vector.broadcast %68 : vector<8x1xf32> to vector<8x8xf32>
    %70 = arith.subf %66, %69 : vector<8x8xf32>
    %71 = math.exp %70 : vector<8x8xf32>
    %cst_36 = arith.constant dense<0.000000e+00> : vector<8xf32>
    %72 = vector.multi_reduction <add>, %71, %cst_36 [1] : vector<8x8xf32> to vector<8xf32>
    %73 = vector.shape_cast %72 : vector<8xf32> to vector<8x1xf32>
    %74 = vector.broadcast %73 : vector<8x1xf32> to vector<8x8xf32>
    %75 = arith.divf %71, %74 : vector<8x8xf32>
    %c0_37 = arith.constant 0 : index
    %c1_38 = arith.constant 1 : index
    %c0_39 = arith.constant 0 : index
    %c0_40 = arith.constant 0 : index
    %76 = vector.load %arg14[%c0_37, %c1_38, %c0_39, %c0_40] : memref<2x8x8x8xf32, #tpu.memory_space<vmem>>, vector<1x1x8x8xf32>
    %77 = vector.shape_cast %76 : vector<1x1x8x8xf32> to vector<8x8xf32>
    %78 = vector.shape_cast %75 : vector<8x8xf32> to vector<1x1x8x8xf32>
    tpu.vector_store %arg14[%c0_37, %c1_38, %c0_39, %c0_40], %78 {strides = array<i32>} : memref<2x8x8x8xf32, #tpu.memory_space<vmem>>, vector<1x1x8x8xf32>,
    %79 = arith.truncf %75 : vector<8x8xf32> to vector<8x8xbf16>
    %cst_41 = arith.constant dense<0.000000e+00> : vector<8x64xf32>
    %80 = tpu.matmul %79, %65, %cst_41 {dimension_numbers = #tpu.dot_dimension_numbers<[1], [0], [0], [1], [0, 0, 1, 1], [], []>} : vector<8x8xbf16>, vector<8x64xbf16>, vector<8x64xf32> -> vector<8x64xf32>
    %81 = arith.truncf %80 : vector<8x64xf32> to vector<8x64xbf16>
    %c0_42 = arith.constant 0 : index
    %c64_43 = arith.constant 64 : index
    %82 = vector.load %arg17[%c0_42, %c64_43] : memref<16x512xbf16, #tpu.memory_space<vmem>>, vector<8x64xbf16>
    tpu.vector_store %arg17[%c0_42, %c64_43], %81 {strides = array<i32>} : memref<16x512xbf16, #tpu.memory_space<vmem>>, vector<8x64xbf16>,
    %83 = vector.extract_strided_slice %60 {offsets = [8, 0], sizes = [8, 64], strides = [1, 1]} : vector<16x64xbf16> to vector<8x64xbf16>
    %84 = vector.extract_strided_slice %61 {offsets = [8, 0], sizes = [8, 64], strides = [1, 1]} : vector<16x64xbf16> to vector<8x64xbf16>
    %85 = vector.extract_strided_slice %62 {offsets = [8, 0], sizes = [8, 64], strides = [1, 1]} : vector<16x64xbf16> to vector<8x64xbf16>
    %cst_44 = arith.constant dense<0.000000e+00> : vector<8x8xf32>
    %86 = tpu.matmul %83, %84, %cst_44 {dimension_numbers = #tpu.dot_dimension_numbers<[1], [1], [0], [0], [0, 0, 1, 0], [], []>} : vector<8x64xbf16>, vector<8x64xbf16>, vector<8x8xf32> -> vector<8x8xf32>
    %cst_45 = arith.constant dense<0xFF800000> : vector<8xf32>
    %87 = vector.multi_reduction <maximumf>, %86, %cst_45 [1] : vector<8x8xf32> to vector<8xf32>
    %88 = vector.shape_cast %87 : vector<8xf32> to vector<8x1xf32>
    %89 = vector.broadcast %88 : vector<8x1xf32> to vector<8x8xf32>
    %90 = arith.subf %86, %89 : vector<8x8xf32>
    %91 = math.exp %90 : vector<8x8xf32>
    %cst_46 = arith.constant dense<0.000000e+00> : vector<8xf32>
    %92 = vector.multi_reduction <add>, %91, %cst_46 [1] : vector<8x8xf32> to vector<8xf32>
    %93 = vector.shape_cast %92 : vector<8xf32> to vector<8x1xf32>
    %94 = vector.broadcast %93 : vector<8x1xf32> to vector<8x8xf32>
    %95 = arith.divf %91, %94 : vector<8x8xf32>
    %c1_47 = arith.constant 1 : index
    %c1_48 = arith.constant 1 : index
    %c0_49 = arith.constant 0 : index
    %c0_50 = arith.constant 0 : index
    %96 = vector.load %arg14[%c1_47, %c1_48, %c0_49, %c0_50] : memref<2x8x8x8xf32, #tpu.memory_space<vmem>>, vector<1x1x8x8xf32>
    %97 = vector.shape_cast %96 : vector<1x1x8x8xf32> to vector<8x8xf32>
    %98 = vector.shape_cast %95 : vector<8x8xf32> to vector<1x1x8x8xf32>
    tpu.vector_store %arg14[%c1_47, %c1_48, %c0_49, %c0_50], %98 {strides = array<i32>} : memref<2x8x8x8xf32, #tpu.memory_space<vmem>>, vector<1x1x8x8xf32>,
    %99 = arith.truncf %95 : vector<8x8xf32> to vector<8x8xbf16>
    %cst_51 = arith.constant dense<0.000000e+00> : vector<8x64xf32>
    %100 = tpu.matmul %99, %85, %cst_51 {dimension_numbers = #tpu.dot_dimension_numbers<[1], [0], [0], [1], [0, 0, 1, 1], [], []>} : vector<8x8xbf16>, vector<8x64xbf16>, vector<8x64xf32> -> vector<8x64xf32>
    %101 = arith.truncf %100 : vector<8x64xf32> to vector<8x64xbf16>
    %c8_52 = arith.constant 8 : index
    %c64_53 = arith.constant 64 : index
    %102 = vector.load %arg17[%c8_52, %c64_53] : memref<16x512xbf16, #tpu.memory_space<vmem>>, vector<8x64xbf16>
    tpu.vector_store %arg17[%c8_52, %c64_53], %101 {strides = array<i32>} : memref<16x512xbf16, #tpu.memory_space<vmem>>, vector<8x64xbf16>,
    %103 = vector.extract_strided_slice %10 {offsets = [0, 128], sizes = [16, 64], strides = [1, 1]} : vector<16x512xf32> to vector<16x64xf32>
    %cst_54 = arith.constant 1.250000e-01 : f32
    %104 = vector.broadcast %cst_54 : f32 to vector<16x64xf32>
    %105 = arith.mulf %103, %104 : vector<16x64xf32>
    %106 = arith.truncf %105 : vector<16x64xf32> to vector<16x64xbf16>
    %c0_55 = arith.constant 0 : index
    %c128 = arith.constant 128 : index
    %107 = vector.load %arg15[%c0_55, %c128] : memref<16x512xbf16, #tpu.memory_space<vmem>>, vector<16x64xbf16>
    %c0_56 = arith.constant 0 : index
    %c128_57 = arith.constant 128 : index
    %108 = vector.load %arg16[%c0_56, %c128_57] : memref<16x512xbf16, #tpu.memory_space<vmem>>, vector<16x64xbf16>
    %109 = vector.extract_strided_slice %106 {offsets = [0, 0], sizes = [8, 64], strides = [1, 1]} : vector<16x64xbf16> to vector<8x64xbf16>
    %110 = vector.extract_strided_slice %107 {offsets = [0, 0], sizes = [8, 64], strides = [1, 1]} : vector<16x64xbf16> to vector<8x64xbf16>
    %111 = vector.extract_strided_slice %108 {offsets = [0, 0], sizes = [8, 64], strides = [1, 1]} : vector<16x64xbf16> to vector<8x64xbf16>
    %cst_58 = arith.constant dense<0.000000e+00> : vector<8x8xf32>
    %112 = tpu.matmul %109, %110, %cst_58 {dimension_numbers = #tpu.dot_dimension_numbers<[1], [1], [0], [0], [0, 0, 1, 0], [], []>} : vector<8x64xbf16>, vector<8x64xbf16>, vector<8x8xf32> -> vector<8x8xf32>
    %cst_59 = arith.constant dense<0xFF800000> : vector<8xf32>
    %113 = vector.multi_reduction <maximumf>, %112, %cst_59 [1] : vector<8x8xf32> to vector<8xf32>
    %114 = vector.shape_cast %113 : vector<8xf32> to vector<8x1xf32>
    %115 = vector.broadcast %114 : vector<8x1xf32> to vector<8x8xf32>
    %116 = arith.subf %112, %115 : vector<8x8xf32>
    %117 = math.exp %116 : vector<8x8xf32>
    %cst_60 = arith.constant dense<0.000000e+00> : vector<8xf32>
    %118 = vector.multi_reduction <add>, %117, %cst_60 [1] : vector<8x8xf32> to vector<8xf32>
    %119 = vector.shape_cast %118 : vector<8xf32> to vector<8x1xf32>
    %120 = vector.broadcast %119 : vector<8x1xf32> to vector<8x8xf32>
    %121 = arith.divf %117, %120 : vector<8x8xf32>
    %c0_61 = arith.constant 0 : index
    %c2 = arith.constant 2 : index
    %c0_62 = arith.constant 0 : index
    %c0_63 = arith.constant 0 : index
    %122 = vector.load %arg14[%c0_61, %c2, %c0_62, %c0_63] : memref<2x8x8x8xf32, #tpu.memory_space<vmem>>, vector<1x1x8x8xf32>
    %123 = vector.shape_cast %122 : vector<1x1x8x8xf32> to vector<8x8xf32>
    %124 = vector.shape_cast %121 : vector<8x8xf32> to vector<1x1x8x8xf32>
    tpu.vector_store %arg14[%c0_61, %c2, %c0_62, %c0_63], %124 {strides = array<i32>} : memref<2x8x8x8xf32, #tpu.memory_space<vmem>>, vector<1x1x8x8xf32>,
    %125 = arith.truncf %121 : vector<8x8xf32> to vector<8x8xbf16>
    %cst_64 = arith.constant dense<0.000000e+00> : vector<8x64xf32>
    %126 = tpu.matmul %125, %111, %cst_64 {dimension_numbers = #tpu.dot_dimension_numbers<[1], [0], [0], [1], [0, 0, 1, 1], [], []>} : vector<8x8xbf16>, vector<8x64xbf16>, vector<8x64xf32> -> vector<8x64xf32>
    %127 = arith.truncf %126 : vector<8x64xf32> to vector<8x64xbf16>
    %c0_65 = arith.constant 0 : index
    %c128_66 = arith.constant 128 : index
    %128 = vector.load %arg17[%c0_65, %c128_66] : memref<16x512xbf16, #tpu.memory_space<vmem>>, vector<8x64xbf16>
    tpu.vector_store %arg17[%c0_65, %c128_66], %127 {strides = array<i32>} : memref<16x512xbf16, #tpu.memory_space<vmem>>, vector<8x64xbf16>,
    %129 = vector.extract_strided_slice %106 {offsets = [8, 0], sizes = [8, 64], strides = [1, 1]} : vector<16x64xbf16> to vector<8x64xbf16>
    %130 = vector.extract_strided_slice %107 {offsets = [8, 0], sizes = [8, 64], strides = [1, 1]} : vector<16x64xbf16> to vector<8x64xbf16>
    %131 = vector.extract_strided_slice %108 {offsets = [8, 0], sizes = [8, 64], strides = [1, 1]} : vector<16x64xbf16> to vector<8x64xbf16>
    %cst_67 = arith.constant dense<0.000000e+00> : vector<8x8xf32>
    %132 = tpu.matmul %129, %130, %cst_67 {dimension_numbers = #tpu.dot_dimension_numbers<[1], [1], [0], [0], [0, 0, 1, 0], [], []>} : vector<8x64xbf16>, vector<8x64xbf16>, vector<8x8xf32> -> vector<8x8xf32>
    %cst_68 = arith.constant dense<0xFF800000> : vector<8xf32>
    %133 = vector.multi_reduction <maximumf>, %132, %cst_68 [1] : vector<8x8xf32> to vector<8xf32>
    %134 = vector.shape_cast %133 : vector<8xf32> to vector<8x1xf32>
    %135 = vector.broadcast %134 : vector<8x1xf32> to vector<8x8xf32>
    %136 = arith.subf %132, %135 : vector<8x8xf32>
    %137 = math.exp %136 : vector<8x8xf32>
    %cst_69 = arith.constant dense<0.000000e+00> : vector<8xf32>
    %138 = vector.multi_reduction <add>, %137, %cst_69 [1] : vector<8x8xf32> to vector<8xf32>
    %139 = vector.shape_cast %138 : vector<8xf32> to vector<8x1xf32>
    %140 = vector.broadcast %139 : vector<8x1xf32> to vector<8x8xf32>
    %141 = arith.divf %137, %140 : vector<8x8xf32>
    %c1_70 = arith.constant 1 : index
    %c2_71 = arith.constant 2 : index
    %c0_72 = arith.constant 0 : index
    %c0_73 = arith.constant 0 : index
    %142 = vector.load %arg14[%c1_70, %c2_71, %c0_72, %c0_73] : memref<2x8x8x8xf32, #tpu.memory_space<vmem>>, vector<1x1x8x8xf32>
    %143 = vector.shape_cast %142 : vector<1x1x8x8xf32> to vector<8x8xf32>
    %144 = vector.shape_cast %141 : vector<8x8xf32> to vector<1x1x8x8xf32>
    tpu.vector_store %arg14[%c1_70, %c2_71, %c0_72, %c0_73], %144 {strides = array<i32>} : memref<2x8x8x8xf32, #tpu.memory_space<vmem>>, vector<1x1x8x8xf32>,
    %145 = arith.truncf %141 : vector<8x8xf32> to vector<8x8xbf16>
    %cst_74 = arith.constant dense<0.000000e+00> : vector<8x64xf32>
    %146 = tpu.matmul %145, %131, %cst_74 {dimension_numbers = #tpu.dot_dimension_numbers<[1], [0], [0], [1], [0, 0, 1, 1], [], []>} : vector<8x8xbf16>, vector<8x64xbf16>, vector<8x64xf32> -> vector<8x64xf32>
    %147 = arith.truncf %146 : vector<8x64xf32> to vector<8x64xbf16>
    %c8_75 = arith.constant 8 : index
    %c128_76 = arith.constant 128 : index
    %148 = vector.load %arg17[%c8_75, %c128_76] : memref<16x512xbf16, #tpu.memory_space<vmem>>, vector<8x64xbf16>
    tpu.vector_store %arg17[%c8_75, %c128_76], %147 {strides = array<i32>} : memref<16x512xbf16, #tpu.memory_space<vmem>>, vector<8x64xbf16>,
    %149 = vector.extract_strided_slice %10 {offsets = [0, 192], sizes = [16, 64], strides = [1, 1]} : vector<16x512xf32> to vector<16x64xf32>
    %cst_77 = arith.constant 1.250000e-01 : f32
    %150 = vector.broadcast %cst_77 : f32 to vector<16x64xf32>
    %151 = arith.mulf %149, %150 : vector<16x64xf32>
    %152 = arith.truncf %151 : vector<16x64xf32> to vector<16x64xbf16>
    %c0_78 = arith.constant 0 : index
    %c192 = arith.constant 192 : index
    %153 = vector.load %arg15[%c0_78, %c192] : memref<16x512xbf16, #tpu.memory_space<vmem>>, vector<16x64xbf16>
    %c0_79 = arith.constant 0 : index
    %c192_80 = arith.constant 192 : index
    %154 = vector.load %arg16[%c0_79, %c192_80] : memref<16x512xbf16, #tpu.memory_space<vmem>>, vector<16x64xbf16>
    %155 = vector.extract_strided_slice %152 {offsets = [0, 0], sizes = [8, 64], strides = [1, 1]} : vector<16x64xbf16> to vector<8x64xbf16>
    %156 = vector.extract_strided_slice %153 {offsets = [0, 0], sizes = [8, 64], strides = [1, 1]} : vector<16x64xbf16> to vector<8x64xbf16>
    %157 = vector.extract_strided_slice %154 {offsets = [0, 0], sizes = [8, 64], strides = [1, 1]} : vector<16x64xbf16> to vector<8x64xbf16>
    %cst_81 = arith.constant dense<0.000000e+00> : vector<8x8xf32>
    %158 = tpu.matmul %155, %156, %cst_81 {dimension_numbers = #tpu.dot_dimension_numbers<[1], [1], [0], [0], [0, 0, 1, 0], [], []>} : vector<8x64xbf16>, vector<8x64xbf16>, vector<8x8xf32> -> vector<8x8xf32>
    %cst_82 = arith.constant dense<0xFF800000> : vector<8xf32>
    %159 = vector.multi_reduction <maximumf>, %158, %cst_82 [1] : vector<8x8xf32> to vector<8xf32>
    %160 = vector.shape_cast %159 : vector<8xf32> to vector<8x1xf32>
    %161 = vector.broadcast %160 : vector<8x1xf32> to vector<8x8xf32>
    %162 = arith.subf %158, %161 : vector<8x8xf32>
    %163 = math.exp %162 : vector<8x8xf32>
    %cst_83 = arith.constant dense<0.000000e+00> : vector<8xf32>
    %164 = vector.multi_reduction <add>, %163, %cst_83 [1] : vector<8x8xf32> to vector<8xf32>
    %165 = vector.shape_cast %164 : vector<8xf32> to vector<8x1xf32>
    %166 = vector.broadcast %165 : vector<8x1xf32> to vector<8x8xf32>
    %167 = arith.divf %163, %166 : vector<8x8xf32>
    %c0_84 = arith.constant 0 : index
    %c3 = arith.constant 3 : index
    %c0_85 = arith.constant 0 : index
    %c0_86 = arith.constant 0 : index
    %168 = vector.load %arg14[%c0_84, %c3, %c0_85, %c0_86] : memref<2x8x8x8xf32, #tpu.memory_space<vmem>>, vector<1x1x8x8xf32>
    %169 = vector.shape_cast %168 : vector<1x1x8x8xf32> to vector<8x8xf32>
    %170 = vector.shape_cast %167 : vector<8x8xf32> to vector<1x1x8x8xf32>
    tpu.vector_store %arg14[%c0_84, %c3, %c0_85, %c0_86], %170 {strides = array<i32>} : memref<2x8x8x8xf32, #tpu.memory_space<vmem>>, vector<1x1x8x8xf32>,
    %171 = arith.truncf %167 : vector<8x8xf32> to vector<8x8xbf16>
    %cst_87 = arith.constant dense<0.000000e+00> : vector<8x64xf32>
    %172 = tpu.matmul %171, %157, %cst_87 {dimension_numbers = #tpu.dot_dimension_numbers<[1], [0], [0], [1], [0, 0, 1, 1], [], []>} : vector<8x8xbf16>, vector<8x64xbf16>, vector<8x64xf32> -> vector<8x64xf32>
    %173 = arith.truncf %172 : vector<8x64xf32> to vector<8x64xbf16>
    %c0_88 = arith.constant 0 : index
    %c192_89 = arith.constant 192 : index
    %174 = vector.load %arg17[%c0_88, %c192_89] : memref<16x512xbf16, #tpu.memory_space<vmem>>, vector<8x64xbf16>
    tpu.vector_store %arg17[%c0_88, %c192_89], %173 {strides = array<i32>} : memref<16x512xbf16, #tpu.memory_space<vmem>>, vector<8x64xbf16>,
    %175 = vector.extract_strided_slice %152 {offsets = [8, 0], sizes = [8, 64], strides = [1, 1]} : vector<16x64xbf16> to vector<8x64xbf16>
    %176 = vector.extract_strided_slice %153 {offsets = [8, 0], sizes = [8, 64], strides = [1, 1]} : vector<16x64xbf16> to vector<8x64xbf16>
    %177 = vector.extract_strided_slice %154 {offsets = [8, 0], sizes = [8, 64], strides = [1, 1]} : vector<16x64xbf16> to vector<8x64xbf16>
    %cst_90 = arith.constant dense<0.000000e+00> : vector<8x8xf32>
    %178 = tpu.matmul %175, %176, %cst_90 {dimension_numbers = #tpu.dot_dimension_numbers<[1], [1], [0], [0], [0, 0, 1, 0], [], []>} : vector<8x64xbf16>, vector<8x64xbf16>, vector<8x8xf32> -> vector<8x8xf32>
    %cst_91 = arith.constant dense<0xFF800000> : vector<8xf32>
    %179 = vector.multi_reduction <maximumf>, %178, %cst_91 [1] : vector<8x8xf32> to vector<8xf32>
    %180 = vector.shape_cast %179 : vector<8xf32> to vector<8x1xf32>
    %181 = vector.broadcast %180 : vector<8x1xf32> to vector<8x8xf32>
    %182 = arith.subf %178, %181 : vector<8x8xf32>
    %183 = math.exp %182 : vector<8x8xf32>
    %cst_92 = arith.constant dense<0.000000e+00> : vector<8xf32>
    %184 = vector.multi_reduction <add>, %183, %cst_92 [1] : vector<8x8xf32> to vector<8xf32>
    %185 = vector.shape_cast %184 : vector<8xf32> to vector<8x1xf32>
    %186 = vector.broadcast %185 : vector<8x1xf32> to vector<8x8xf32>
    %187 = arith.divf %183, %186 : vector<8x8xf32>
    %c1_93 = arith.constant 1 : index
    %c3_94 = arith.constant 3 : index
    %c0_95 = arith.constant 0 : index
    %c0_96 = arith.constant 0 : index
    %188 = vector.load %arg14[%c1_93, %c3_94, %c0_95, %c0_96] : memref<2x8x8x8xf32, #tpu.memory_space<vmem>>, vector<1x1x8x8xf32>
    %189 = vector.shape_cast %188 : vector<1x1x8x8xf32> to vector<8x8xf32>
    %190 = vector.shape_cast %187 : vector<8x8xf32> to vector<1x1x8x8xf32>
    tpu.vector_store %arg14[%c1_93, %c3_94, %c0_95, %c0_96], %190 {strides = array<i32>} : memref<2x8x8x8xf32, #tpu.memory_space<vmem>>, vector<1x1x8x8xf32>,
    %191 = arith.truncf %187 : vector<8x8xf32> to vector<8x8xbf16>
    %cst_97 = arith.constant dense<0.000000e+00> : vector<8x64xf32>
    %192 = tpu.matmul %191, %177, %cst_97 {dimension_numbers = #tpu.dot_dimension_numbers<[1], [0], [0], [1], [0, 0, 1, 1], [], []>} : vector<8x8xbf16>, vector<8x64xbf16>, vector<8x64xf32> -> vector<8x64xf32>
    %193 = arith.truncf %192 : vector<8x64xf32> to vector<8x64xbf16>
    %c8_98 = arith.constant 8 : index
    %c192_99 = arith.constant 192 : index
    %194 = vector.load %arg17[%c8_98, %c192_99] : memref<16x512xbf16, #tpu.memory_space<vmem>>, vector<8x64xbf16>
    tpu.vector_store %arg17[%c8_98, %c192_99], %193 {strides = array<i32>} : memref<16x512xbf16, #tpu.memory_space<vmem>>, vector<8x64xbf16>,
    %195 = vector.extract_strided_slice %10 {offsets = [0, 256], sizes = [16, 64], strides = [1, 1]} : vector<16x512xf32> to vector<16x64xf32>
    %cst_100 = arith.constant 1.250000e-01 : f32
    %196 = vector.broadcast %cst_100 : f32 to vector<16x64xf32>
    %197 = arith.mulf %195, %196 : vector<16x64xf32>
    %198 = arith.truncf %197 : vector<16x64xf32> to vector<16x64xbf16>
    %c0_101 = arith.constant 0 : index
    %c256 = arith.constant 256 : index
    %199 = vector.load %arg15[%c0_101, %c256] : memref<16x512xbf16, #tpu.memory_space<vmem>>, vector<16x64xbf16>
    %c0_102 = arith.constant 0 : index
    %c256_103 = arith.constant 256 : index
    %200 = vector.load %arg16[%c0_102, %c256_103] : memref<16x512xbf16, #tpu.memory_space<vmem>>, vector<16x64xbf16>
    %201 = vector.extract_strided_slice %198 {offsets = [0, 0], sizes = [8, 64], strides = [1, 1]} : vector<16x64xbf16> to vector<8x64xbf16>
    %202 = vector.extract_strided_slice %199 {offsets = [0, 0], sizes = [8, 64], strides = [1, 1]} : vector<16x64xbf16> to vector<8x64xbf16>
    %203 = vector.extract_strided_slice %200 {offsets = [0, 0], sizes = [8, 64], strides = [1, 1]} : vector<16x64xbf16> to vector<8x64xbf16>
    %cst_104 = arith.constant dense<0.000000e+00> : vector<8x8xf32>
    %204 = tpu.matmul %201, %202, %cst_104 {dimension_numbers = #tpu.dot_dimension_numbers<[1], [1], [0], [0], [0, 0, 1, 0], [], []>} : vector<8x64xbf16>, vector<8x64xbf16>, vector<8x8xf32> -> vector<8x8xf32>
    %cst_105 = arith.constant dense<0xFF800000> : vector<8xf32>
    %205 = vector.multi_reduction <maximumf>, %204, %cst_105 [1] : vector<8x8xf32> to vector<8xf32>
    %206 = vector.shape_cast %205 : vector<8xf32> to vector<8x1xf32>
    %207 = vector.broadcast %206 : vector<8x1xf32> to vector<8x8xf32>
    %208 = arith.subf %204, %207 : vector<8x8xf32>
    %209 = math.exp %208 : vector<8x8xf32>
    %cst_106 = arith.constant dense<0.000000e+00> : vector<8xf32>
    %210 = vector.multi_reduction <add>, %209, %cst_106 [1] : vector<8x8xf32> to vector<8xf32>
    %211 = vector.shape_cast %210 : vector<8xf32> to vector<8x1xf32>
    %212 = vector.broadcast %211 : vector<8x1xf32> to vector<8x8xf32>
    %213 = arith.divf %209, %212 : vector<8x8xf32>
    %c0_107 = arith.constant 0 : index
    %c4 = arith.constant 4 : index
    %c0_108 = arith.constant 0 : index
    %c0_109 = arith.constant 0 : index
    %214 = vector.load %arg14[%c0_107, %c4, %c0_108, %c0_109] : memref<2x8x8x8xf32, #tpu.memory_space<vmem>>, vector<1x1x8x8xf32>
    %215 = vector.shape_cast %214 : vector<1x1x8x8xf32> to vector<8x8xf32>
    %216 = vector.shape_cast %213 : vector<8x8xf32> to vector<1x1x8x8xf32>
    tpu.vector_store %arg14[%c0_107, %c4, %c0_108, %c0_109], %216 {strides = array<i32>} : memref<2x8x8x8xf32, #tpu.memory_space<vmem>>, vector<1x1x8x8xf32>,
    %217 = arith.truncf %213 : vector<8x8xf32> to vector<8x8xbf16>
    %cst_110 = arith.constant dense<0.000000e+00> : vector<8x64xf32>
    %218 = tpu.matmul %217, %203, %cst_110 {dimension_numbers = #tpu.dot_dimension_numbers<[1], [0], [0], [1], [0, 0, 1, 1], [], []>} : vector<8x8xbf16>, vector<8x64xbf16>, vector<8x64xf32> -> vector<8x64xf32>
    %219 = arith.truncf %218 : vector<8x64xf32> to vector<8x64xbf16>
    %c0_111 = arith.constant 0 : index
    %c256_112 = arith.constant 256 : index
    %220 = vector.load %arg17[%c0_111, %c256_112] : memref<16x512xbf16, #tpu.memory_space<vmem>>, vector<8x64xbf16>
    tpu.vector_store %arg17[%c0_111, %c256_112], %219 {strides = array<i32>} : memref<16x512xbf16, #tpu.memory_space<vmem>>, vector<8x64xbf16>,
    %221 = vector.extract_strided_slice %198 {offsets = [8, 0], sizes = [8, 64], strides = [1, 1]} : vector<16x64xbf16> to vector<8x64xbf16>
    %222 = vector.extract_strided_slice %199 {offsets = [8, 0], sizes = [8, 64], strides = [1, 1]} : vector<16x64xbf16> to vector<8x64xbf16>
    %223 = vector.extract_strided_slice %200 {offsets = [8, 0], sizes = [8, 64], strides = [1, 1]} : vector<16x64xbf16> to vector<8x64xbf16>
    %cst_113 = arith.constant dense<0.000000e+00> : vector<8x8xf32>
    %224 = tpu.matmul %221, %222, %cst_113 {dimension_numbers = #tpu.dot_dimension_numbers<[1], [1], [0], [0], [0, 0, 1, 0], [], []>} : vector<8x64xbf16>, vector<8x64xbf16>, vector<8x8xf32> -> vector<8x8xf32>
    %cst_114 = arith.constant dense<0xFF800000> : vector<8xf32>
    %225 = vector.multi_reduction <maximumf>, %224, %cst_114 [1] : vector<8x8xf32> to vector<8xf32>
    %226 = vector.shape_cast %225 : vector<8xf32> to vector<8x1xf32>
    %227 = vector.broadcast %226 : vector<8x1xf32> to vector<8x8xf32>
    %228 = arith.subf %224, %227 : vector<8x8xf32>
    %229 = math.exp %228 : vector<8x8xf32>
    %cst_115 = arith.constant dense<0.000000e+00> : vector<8xf32>
    %230 = vector.multi_reduction <add>, %229, %cst_115 [1] : vector<8x8xf32> to vector<8xf32>
    %231 = vector.shape_cast %230 : vector<8xf32> to vector<8x1xf32>
    %232 = vector.broadcast %231 : vector<8x1xf32> to vector<8x8xf32>
    %233 = arith.divf %229, %232 : vector<8x8xf32>
    %c1_116 = arith.constant 1 : index
    %c4_117 = arith.constant 4 : index
    %c0_118 = arith.constant 0 : index
    %c0_119 = arith.constant 0 : index
    %234 = vector.load %arg14[%c1_116, %c4_117, %c0_118, %c0_119] : memref<2x8x8x8xf32, #tpu.memory_space<vmem>>, vector<1x1x8x8xf32>
    %235 = vector.shape_cast %234 : vector<1x1x8x8xf32> to vector<8x8xf32>
    %236 = vector.shape_cast %233 : vector<8x8xf32> to vector<1x1x8x8xf32>
    tpu.vector_store %arg14[%c1_116, %c4_117, %c0_118, %c0_119], %236 {strides = array<i32>} : memref<2x8x8x8xf32, #tpu.memory_space<vmem>>, vector<1x1x8x8xf32>,
    %237 = arith.truncf %233 : vector<8x8xf32> to vector<8x8xbf16>
    %cst_120 = arith.constant dense<0.000000e+00> : vector<8x64xf32>
    %238 = tpu.matmul %237, %223, %cst_120 {dimension_numbers = #tpu.dot_dimension_numbers<[1], [0], [0], [1], [0, 0, 1, 1], [], []>} : vector<8x8xbf16>, vector<8x64xbf16>, vector<8x64xf32> -> vector<8x64xf32>
    %239 = arith.truncf %238 : vector<8x64xf32> to vector<8x64xbf16>
    %c8_121 = arith.constant 8 : index
    %c256_122 = arith.constant 256 : index
    %240 = vector.load %arg17[%c8_121, %c256_122] : memref<16x512xbf16, #tpu.memory_space<vmem>>, vector<8x64xbf16>
    tpu.vector_store %arg17[%c8_121, %c256_122], %239 {strides = array<i32>} : memref<16x512xbf16, #tpu.memory_space<vmem>>, vector<8x64xbf16>,
    %241 = vector.extract_strided_slice %10 {offsets = [0, 320], sizes = [16, 64], strides = [1, 1]} : vector<16x512xf32> to vector<16x64xf32>
    %cst_123 = arith.constant 1.250000e-01 : f32
    %242 = vector.broadcast %cst_123 : f32 to vector<16x64xf32>
    %243 = arith.mulf %241, %242 : vector<16x64xf32>
    %244 = arith.truncf %243 : vector<16x64xf32> to vector<16x64xbf16>
    %c0_124 = arith.constant 0 : index
    %c320 = arith.constant 320 : index
    %245 = vector.load %arg15[%c0_124, %c320] : memref<16x512xbf16, #tpu.memory_space<vmem>>, vector<16x64xbf16>
    %c0_125 = arith.constant 0 : index
    %c320_126 = arith.constant 320 : index
    %246 = vector.load %arg16[%c0_125, %c320_126] : memref<16x512xbf16, #tpu.memory_space<vmem>>, vector<16x64xbf16>
    %247 = vector.extract_strided_slice %244 {offsets = [0, 0], sizes = [8, 64], strides = [1, 1]} : vector<16x64xbf16> to vector<8x64xbf16>
    %248 = vector.extract_strided_slice %245 {offsets = [0, 0], sizes = [8, 64], strides = [1, 1]} : vector<16x64xbf16> to vector<8x64xbf16>
    %249 = vector.extract_strided_slice %246 {offsets = [0, 0], sizes = [8, 64], strides = [1, 1]} : vector<16x64xbf16> to vector<8x64xbf16>
    %cst_127 = arith.constant dense<0.000000e+00> : vector<8x8xf32>
    %250 = tpu.matmul %247, %248, %cst_127 {dimension_numbers = #tpu.dot_dimension_numbers<[1], [1], [0], [0], [0, 0, 1, 0], [], []>} : vector<8x64xbf16>, vector<8x64xbf16>, vector<8x8xf32> -> vector<8x8xf32>
    %cst_128 = arith.constant dense<0xFF800000> : vector<8xf32>
    %251 = vector.multi_reduction <maximumf>, %250, %cst_128 [1] : vector<8x8xf32> to vector<8xf32>
    %252 = vector.shape_cast %251 : vector<8xf32> to vector<8x1xf32>
    %253 = vector.broadcast %252 : vector<8x1xf32> to vector<8x8xf32>
    %254 = arith.subf %250, %253 : vector<8x8xf32>
    %255 = math.exp %254 : vector<8x8xf32>
    %cst_129 = arith.constant dense<0.000000e+00> : vector<8xf32>
    %256 = vector.multi_reduction <add>, %255, %cst_129 [1] : vector<8x8xf32> to vector<8xf32>
    %257 = vector.shape_cast %256 : vector<8xf32> to vector<8x1xf32>
    %258 = vector.broadcast %257 : vector<8x1xf32> to vector<8x8xf32>
    %259 = arith.divf %255, %258 : vector<8x8xf32>
    %c0_130 = arith.constant 0 : index
    %c5 = arith.constant 5 : index
    %c0_131 = arith.constant 0 : index
    %c0_132 = arith.constant 0 : index
    %260 = vector.load %arg14[%c0_130, %c5, %c0_131, %c0_132] : memref<2x8x8x8xf32, #tpu.memory_space<vmem>>, vector<1x1x8x8xf32>
    %261 = vector.shape_cast %260 : vector<1x1x8x8xf32> to vector<8x8xf32>
    %262 = vector.shape_cast %259 : vector<8x8xf32> to vector<1x1x8x8xf32>
    tpu.vector_store %arg14[%c0_130, %c5, %c0_131, %c0_132], %262 {strides = array<i32>} : memref<2x8x8x8xf32, #tpu.memory_space<vmem>>, vector<1x1x8x8xf32>,
    %263 = arith.truncf %259 : vector<8x8xf32> to vector<8x8xbf16>
    %cst_133 = arith.constant dense<0.000000e+00> : vector<8x64xf32>
    %264 = tpu.matmul %263, %249, %cst_133 {dimension_numbers = #tpu.dot_dimension_numbers<[1], [0], [0], [1], [0, 0, 1, 1], [], []>} : vector<8x8xbf16>, vector<8x64xbf16>, vector<8x64xf32> -> vector<8x64xf32>
    %265 = arith.truncf %264 : vector<8x64xf32> to vector<8x64xbf16>
    %c0_134 = arith.constant 0 : index
    %c320_135 = arith.constant 320 : index
    %266 = vector.load %arg17[%c0_134, %c320_135] : memref<16x512xbf16, #tpu.memory_space<vmem>>, vector<8x64xbf16>
    tpu.vector_store %arg17[%c0_134, %c320_135], %265 {strides = array<i32>} : memref<16x512xbf16, #tpu.memory_space<vmem>>, vector<8x64xbf16>,
    %267 = vector.extract_strided_slice %244 {offsets = [8, 0], sizes = [8, 64], strides = [1, 1]} : vector<16x64xbf16> to vector<8x64xbf16>
    %268 = vector.extract_strided_slice %245 {offsets = [8, 0], sizes = [8, 64], strides = [1, 1]} : vector<16x64xbf16> to vector<8x64xbf16>
    %269 = vector.extract_strided_slice %246 {offsets = [8, 0], sizes = [8, 64], strides = [1, 1]} : vector<16x64xbf16> to vector<8x64xbf16>
    %cst_136 = arith.constant dense<0.000000e+00> : vector<8x8xf32>
    %270 = tpu.matmul %267, %268, %cst_136 {dimension_numbers = #tpu.dot_dimension_numbers<[1], [1], [0], [0], [0, 0, 1, 0], [], []>} : vector<8x64xbf16>, vector<8x64xbf16>, vector<8x8xf32> -> vector<8x8xf32>
    %cst_137 = arith.constant dense<0xFF800000> : vector<8xf32>
    %271 = vector.multi_reduction <maximumf>, %270, %cst_137 [1] : vector<8x8xf32> to vector<8xf32>
    %272 = vector.shape_cast %271 : vector<8xf32> to vector<8x1xf32>
    %273 = vector.broadcast %272 : vector<8x1xf32> to vector<8x8xf32>
    %274 = arith.subf %270, %273 : vector<8x8xf32>
    %275 = math.exp %274 : vector<8x8xf32>
    %cst_138 = arith.constant dense<0.000000e+00> : vector<8xf32>
    %276 = vector.multi_reduction <add>, %275, %cst_138 [1] : vector<8x8xf32> to vector<8xf32>
    %277 = vector.shape_cast %276 : vector<8xf32> to vector<8x1xf32>
    %278 = vector.broadcast %277 : vector<8x1xf32> to vector<8x8xf32>
    %279 = arith.divf %275, %278 : vector<8x8xf32>
    %c1_139 = arith.constant 1 : index
    %c5_140 = arith.constant 5 : index
    %c0_141 = arith.constant 0 : index
    %c0_142 = arith.constant 0 : index
    %280 = vector.load %arg14[%c1_139, %c5_140, %c0_141, %c0_142] : memref<2x8x8x8xf32, #tpu.memory_space<vmem>>, vector<1x1x8x8xf32>
    %281 = vector.shape_cast %280 : vector<1x1x8x8xf32> to vector<8x8xf32>
    %282 = vector.shape_cast %279 : vector<8x8xf32> to vector<1x1x8x8xf32>
    tpu.vector_store %arg14[%c1_139, %c5_140, %c0_141, %c0_142], %282 {strides = array<i32>} : memref<2x8x8x8xf32, #tpu.memory_space<vmem>>, vector<1x1x8x8xf32>,
    %283 = arith.truncf %279 : vector<8x8xf32> to vector<8x8xbf16>
    %cst_143 = arith.constant dense<0.000000e+00> : vector<8x64xf32>
    %284 = tpu.matmul %283, %269, %cst_143 {dimension_numbers = #tpu.dot_dimension_numbers<[1], [0], [0], [1], [0, 0, 1, 1], [], []>} : vector<8x8xbf16>, vector<8x64xbf16>, vector<8x64xf32> -> vector<8x64xf32>
    %285 = arith.truncf %284 : vector<8x64xf32> to vector<8x64xbf16>
    %c8_144 = arith.constant 8 : index
    %c320_145 = arith.constant 320 : index
    %286 = vector.load %arg17[%c8_144, %c320_145] : memref<16x512xbf16, #tpu.memory_space<vmem>>, vector<8x64xbf16>
    tpu.vector_store %arg17[%c8_144, %c320_145], %285 {strides = array<i32>} : memref<16x512xbf16, #tpu.memory_space<vmem>>, vector<8x64xbf16>,
    %287 = vector.extract_strided_slice %10 {offsets = [0, 384], sizes = [16, 64], strides = [1, 1]} : vector<16x512xf32> to vector<16x64xf32>
    %cst_146 = arith.constant 1.250000e-01 : f32
    %288 = vector.broadcast %cst_146 : f32 to vector<16x64xf32>
    %289 = arith.mulf %287, %288 : vector<16x64xf32>
    %290 = arith.truncf %289 : vector<16x64xf32> to vector<16x64xbf16>
    %c0_147 = arith.constant 0 : index
    %c384 = arith.constant 384 : index
    %291 = vector.load %arg15[%c0_147, %c384] : memref<16x512xbf16, #tpu.memory_space<vmem>>, vector<16x64xbf16>
    %c0_148 = arith.constant 0 : index
    %c384_149 = arith.constant 384 : index
    %292 = vector.load %arg16[%c0_148, %c384_149] : memref<16x512xbf16, #tpu.memory_space<vmem>>, vector<16x64xbf16>
    %293 = vector.extract_strided_slice %290 {offsets = [0, 0], sizes = [8, 64], strides = [1, 1]} : vector<16x64xbf16> to vector<8x64xbf16>
    %294 = vector.extract_strided_slice %291 {offsets = [0, 0], sizes = [8, 64], strides = [1, 1]} : vector<16x64xbf16> to vector<8x64xbf16>
    %295 = vector.extract_strided_slice %292 {offsets = [0, 0], sizes = [8, 64], strides = [1, 1]} : vector<16x64xbf16> to vector<8x64xbf16>
    %cst_150 = arith.constant dense<0.000000e+00> : vector<8x8xf32>
    %296 = tpu.matmul %293, %294, %cst_150 {dimension_numbers = #tpu.dot_dimension_numbers<[1], [1], [0], [0], [0, 0, 1, 0], [], []>} : vector<8x64xbf16>, vector<8x64xbf16>, vector<8x8xf32> -> vector<8x8xf32>
    %cst_151 = arith.constant dense<0xFF800000> : vector<8xf32>
    %297 = vector.multi_reduction <maximumf>, %296, %cst_151 [1] : vector<8x8xf32> to vector<8xf32>
    %298 = vector.shape_cast %297 : vector<8xf32> to vector<8x1xf32>
    %299 = vector.broadcast %298 : vector<8x1xf32> to vector<8x8xf32>
    %300 = arith.subf %296, %299 : vector<8x8xf32>
    %301 = math.exp %300 : vector<8x8xf32>
    %cst_152 = arith.constant dense<0.000000e+00> : vector<8xf32>
    %302 = vector.multi_reduction <add>, %301, %cst_152 [1] : vector<8x8xf32> to vector<8xf32>
    %303 = vector.shape_cast %302 : vector<8xf32> to vector<8x1xf32>
    %304 = vector.broadcast %303 : vector<8x1xf32> to vector<8x8xf32>
    %305 = arith.divf %301, %304 : vector<8x8xf32>
    %c0_153 = arith.constant 0 : index
    %c6 = arith.constant 6 : index
    %c0_154 = arith.constant 0 : index
    %c0_155 = arith.constant 0 : index
    %306 = vector.load %arg14[%c0_153, %c6, %c0_154, %c0_155] : memref<2x8x8x8xf32, #tpu.memory_space<vmem>>, vector<1x1x8x8xf32>
    %307 = vector.shape_cast %306 : vector<1x1x8x8xf32> to vector<8x8xf32>
    %308 = vector.shape_cast %305 : vector<8x8xf32> to vector<1x1x8x8xf32>
    tpu.vector_store %arg14[%c0_153, %c6, %c0_154, %c0_155], %308 {strides = array<i32>} : memref<2x8x8x8xf32, #tpu.memory_space<vmem>>, vector<1x1x8x8xf32>,
    %309 = arith.truncf %305 : vector<8x8xf32> to vector<8x8xbf16>
    %cst_156 = arith.constant dense<0.000000e+00> : vector<8x64xf32>
    %310 = tpu.matmul %309, %295, %cst_156 {dimension_numbers = #tpu.dot_dimension_numbers<[1], [0], [0], [1], [0, 0, 1, 1], [], []>} : vector<8x8xbf16>, vector<8x64xbf16>, vector<8x64xf32> -> vector<8x64xf32>
    %311 = arith.truncf %310 : vector<8x64xf32> to vector<8x64xbf16>
    %c0_157 = arith.constant 0 : index
    %c384_158 = arith.constant 384 : index
    %312 = vector.load %arg17[%c0_157, %c384_158] : memref<16x512xbf16, #tpu.memory_space<vmem>>, vector<8x64xbf16>
    tpu.vector_store %arg17[%c0_157, %c384_158], %311 {strides = array<i32>} : memref<16x512xbf16, #tpu.memory_space<vmem>>, vector<8x64xbf16>,
    %313 = vector.extract_strided_slice %290 {offsets = [8, 0], sizes = [8, 64], strides = [1, 1]} : vector<16x64xbf16> to vector<8x64xbf16>
    %314 = vector.extract_strided_slice %291 {offsets = [8, 0], sizes = [8, 64], strides = [1, 1]} : vector<16x64xbf16> to vector<8x64xbf16>
    %315 = vector.extract_strided_slice %292 {offsets = [8, 0], sizes = [8, 64], strides = [1, 1]} : vector<16x64xbf16> to vector<8x64xbf16>
    %cst_159 = arith.constant dense<0.000000e+00> : vector<8x8xf32>
    %316 = tpu.matmul %313, %314, %cst_159 {dimension_numbers = #tpu.dot_dimension_numbers<[1], [1], [0], [0], [0, 0, 1, 0], [], []>} : vector<8x64xbf16>, vector<8x64xbf16>, vector<8x8xf32> -> vector<8x8xf32>
    %cst_160 = arith.constant dense<0xFF800000> : vector<8xf32>
    %317 = vector.multi_reduction <maximumf>, %316, %cst_160 [1] : vector<8x8xf32> to vector<8xf32>
    %318 = vector.shape_cast %317 : vector<8xf32> to vector<8x1xf32>
    %319 = vector.broadcast %318 : vector<8x1xf32> to vector<8x8xf32>
    %320 = arith.subf %316, %319 : vector<8x8xf32>
    %321 = math.exp %320 : vector<8x8xf32>
    %cst_161 = arith.constant dense<0.000000e+00> : vector<8xf32>
    %322 = vector.multi_reduction <add>, %321, %cst_161 [1] : vector<8x8xf32> to vector<8xf32>
    %323 = vector.shape_cast %322 : vector<8xf32> to vector<8x1xf32>
    %324 = vector.broadcast %323 : vector<8x1xf32> to vector<8x8xf32>
    %325 = arith.divf %321, %324 : vector<8x8xf32>
    %c1_162 = arith.constant 1 : index
    %c6_163 = arith.constant 6 : index
    %c0_164 = arith.constant 0 : index
    %c0_165 = arith.constant 0 : index
    %326 = vector.load %arg14[%c1_162, %c6_163, %c0_164, %c0_165] : memref<2x8x8x8xf32, #tpu.memory_space<vmem>>, vector<1x1x8x8xf32>
    %327 = vector.shape_cast %326 : vector<1x1x8x8xf32> to vector<8x8xf32>
    %328 = vector.shape_cast %325 : vector<8x8xf32> to vector<1x1x8x8xf32>
    tpu.vector_store %arg14[%c1_162, %c6_163, %c0_164, %c0_165], %328 {strides = array<i32>} : memref<2x8x8x8xf32, #tpu.memory_space<vmem>>, vector<1x1x8x8xf32>,
    %329 = arith.truncf %325 : vector<8x8xf32> to vector<8x8xbf16>
    %cst_166 = arith.constant dense<0.000000e+00> : vector<8x64xf32>
    %330 = tpu.matmul %329, %315, %cst_166 {dimension_numbers = #tpu.dot_dimension_numbers<[1], [0], [0], [1], [0, 0, 1, 1], [], []>} : vector<8x8xbf16>, vector<8x64xbf16>, vector<8x64xf32> -> vector<8x64xf32>
    %331 = arith.truncf %330 : vector<8x64xf32> to vector<8x64xbf16>
    %c8_167 = arith.constant 8 : index
    %c384_168 = arith.constant 384 : index
    %332 = vector.load %arg17[%c8_167, %c384_168] : memref<16x512xbf16, #tpu.memory_space<vmem>>, vector<8x64xbf16>
    tpu.vector_store %arg17[%c8_167, %c384_168], %331 {strides = array<i32>} : memref<16x512xbf16, #tpu.memory_space<vmem>>, vector<8x64xbf16>,
    %333 = vector.extract_strided_slice %10 {offsets = [0, 448], sizes = [16, 64], strides = [1, 1]} : vector<16x512xf32> to vector<16x64xf32>
    %cst_169 = arith.constant 1.250000e-01 : f32
    %334 = vector.broadcast %cst_169 : f32 to vector<16x64xf32>
    %335 = arith.mulf %333, %334 : vector<16x64xf32>
    %336 = arith.truncf %335 : vector<16x64xf32> to vector<16x64xbf16>
    %c0_170 = arith.constant 0 : index
    %c448 = arith.constant 448 : index
    %337 = vector.load %arg15[%c0_170, %c448] : memref<16x512xbf16, #tpu.memory_space<vmem>>, vector<16x64xbf16>
    %c0_171 = arith.constant 0 : index
    %c448_172 = arith.constant 448 : index
    %338 = vector.load %arg16[%c0_171, %c448_172] : memref<16x512xbf16, #tpu.memory_space<vmem>>, vector<16x64xbf16>
    %339 = vector.extract_strided_slice %336 {offsets = [0, 0], sizes = [8, 64], strides = [1, 1]} : vector<16x64xbf16> to vector<8x64xbf16>
    %340 = vector.extract_strided_slice %337 {offsets = [0, 0], sizes = [8, 64], strides = [1, 1]} : vector<16x64xbf16> to vector<8x64xbf16>
    %341 = vector.extract_strided_slice %338 {offsets = [0, 0], sizes = [8, 64], strides = [1, 1]} : vector<16x64xbf16> to vector<8x64xbf16>
    %cst_173 = arith.constant dense<0.000000e+00> : vector<8x8xf32>
    %342 = tpu.matmul %339, %340, %cst_173 {dimension_numbers = #tpu.dot_dimension_numbers<[1], [1], [0], [0], [0, 0, 1, 0], [], []>} : vector<8x64xbf16>, vector<8x64xbf16>, vector<8x8xf32> -> vector<8x8xf32>
    %cst_174 = arith.constant dense<0xFF800000> : vector<8xf32>
    %343 = vector.multi_reduction <maximumf>, %342, %cst_174 [1] : vector<8x8xf32> to vector<8xf32>
    %344 = vector.shape_cast %343 : vector<8xf32> to vector<8x1xf32>
    %345 = vector.broadcast %344 : vector<8x1xf32> to vector<8x8xf32>
    %346 = arith.subf %342, %345 : vector<8x8xf32>
    %347 = math.exp %346 : vector<8x8xf32>
    %cst_175 = arith.constant dense<0.000000e+00> : vector<8xf32>
    %348 = vector.multi_reduction <add>, %347, %cst_175 [1] : vector<8x8xf32> to vector<8xf32>
    %349 = vector.shape_cast %348 : vector<8xf32> to vector<8x1xf32>
    %350 = vector.broadcast %349 : vector<8x1xf32> to vector<8x8xf32>
    %351 = arith.divf %347, %350 : vector<8x8xf32>
    %c0_176 = arith.constant 0 : index
    %c7 = arith.constant 7 : index
    %c0_177 = arith.constant 0 : index
    %c0_178 = arith.constant 0 : index
    %352 = vector.load %arg14[%c0_176, %c7, %c0_177, %c0_178] : memref<2x8x8x8xf32, #tpu.memory_space<vmem>>, vector<1x1x8x8xf32>
    %353 = vector.shape_cast %352 : vector<1x1x8x8xf32> to vector<8x8xf32>
    %354 = vector.shape_cast %351 : vector<8x8xf32> to vector<1x1x8x8xf32>
    tpu.vector_store %arg14[%c0_176, %c7, %c0_177, %c0_178], %354 {strides = array<i32>} : memref<2x8x8x8xf32, #tpu.memory_space<vmem>>, vector<1x1x8x8xf32>,
    %355 = arith.truncf %351 : vector<8x8xf32> to vector<8x8xbf16>
    %cst_179 = arith.constant dense<0.000000e+00> : vector<8x64xf32>
    %356 = tpu.matmul %355, %341, %cst_179 {dimension_numbers = #tpu.dot_dimension_numbers<[1], [0], [0], [1], [0, 0, 1, 1], [], []>} : vector<8x8xbf16>, vector<8x64xbf16>, vector<8x64xf32> -> vector<8x64xf32>
    %357 = arith.truncf %356 : vector<8x64xf32> to vector<8x64xbf16>
    %c0_180 = arith.constant 0 : index
    %c448_181 = arith.constant 448 : index
    %358 = vector.load %arg17[%c0_180, %c448_181] : memref<16x512xbf16, #tpu.memory_space<vmem>>, vector<8x64xbf16>
    tpu.vector_store %arg17[%c0_180, %c448_181], %357 {strides = array<i32>} : memref<16x512xbf16, #tpu.memory_space<vmem>>, vector<8x64xbf16>,
    %359 = vector.extract_strided_slice %336 {offsets = [8, 0], sizes = [8, 64], strides = [1, 1]} : vector<16x64xbf16> to vector<8x64xbf16>
    %360 = vector.extract_strided_slice %337 {offsets = [8, 0], sizes = [8, 64], strides = [1, 1]} : vector<16x64xbf16> to vector<8x64xbf16>
    %361 = vector.extract_strided_slice %338 {offsets = [8, 0], sizes = [8, 64], strides = [1, 1]} : vector<16x64xbf16> to vector<8x64xbf16>
    %cst_182 = arith.constant dense<0.000000e+00> : vector<8x8xf32>
    %362 = tpu.matmul %359, %360, %cst_182 {dimension_numbers = #tpu.dot_dimension_numbers<[1], [1], [0], [0], [0, 0, 1, 0], [], []>} : vector<8x64xbf16>, vector<8x64xbf16>, vector<8x8xf32> -> vector<8x8xf32>
    %cst_183 = arith.constant dense<0xFF800000> : vector<8xf32>
    %363 = vector.multi_reduction <maximumf>, %362, %cst_183 [1] : vector<8x8xf32> to vector<8xf32>
    %364 = vector.shape_cast %363 : vector<8xf32> to vector<8x1xf32>
    %365 = vector.broadcast %364 : vector<8x1xf32> to vector<8x8xf32>
    %366 = arith.subf %362, %365 : vector<8x8xf32>
    %367 = math.exp %366 : vector<8x8xf32>
    %cst_184 = arith.constant dense<0.000000e+00> : vector<8xf32>
    %368 = vector.multi_reduction <add>, %367, %cst_184 [1] : vector<8x8xf32> to vector<8xf32>
    %369 = vector.shape_cast %368 : vector<8xf32> to vector<8x1xf32>
    %370 = vector.broadcast %369 : vector<8x1xf32> to vector<8x8xf32>
    %371 = arith.divf %367, %370 : vector<8x8xf32>
    %c1_185 = arith.constant 1 : index
    %c7_186 = arith.constant 7 : index
    %c0_187 = arith.constant 0 : index
    %c0_188 = arith.constant 0 : index
    %372 = vector.load %arg14[%c1_185, %c7_186, %c0_187, %c0_188] : memref<2x8x8x8xf32, #tpu.memory_space<vmem>>, vector<1x1x8x8xf32>
    %373 = vector.shape_cast %372 : vector<1x1x8x8xf32> to vector<8x8xf32>
    %374 = vector.shape_cast %371 : vector<8x8xf32> to vector<1x1x8x8xf32>
    tpu.vector_store %arg14[%c1_185, %c7_186, %c0_187, %c0_188], %374 {strides = array<i32>} : memref<2x8x8x8xf32, #tpu.memory_space<vmem>>, vector<1x1x8x8xf32>,
    %375 = arith.truncf %371 : vector<8x8xf32> to vector<8x8xbf16>
    %cst_189 = arith.constant dense<0.000000e+00> : vector<8x64xf32>
    %376 = tpu.matmul %375, %361, %cst_189 {dimension_numbers = #tpu.dot_dimension_numbers<[1], [0], [0], [1], [0, 0, 1, 1], [], []>} : vector<8x8xbf16>, vector<8x64xbf16>, vector<8x64xf32> -> vector<8x64xf32>
    %377 = arith.truncf %376 : vector<8x64xf32> to vector<8x64xbf16>
    %c8_190 = arith.constant 8 : index
    %c448_191 = arith.constant 448 : index
    %378 = vector.load %arg17[%c8_190, %c448_191] : memref<16x512xbf16, #tpu.memory_space<vmem>>, vector<8x64xbf16>
    tpu.vector_store %arg17[%c8_190, %c448_191], %377 {strides = array<i32>} : memref<16x512xbf16, #tpu.memory_space<vmem>>, vector<8x64xbf16>,
    %c0_192 = arith.constant 0 : index
    %c0_193 = arith.constant 0 : index
    %379 = vector.load %arg17[%c0_192, %c0_193] : memref<16x512xbf16, #tpu.memory_space<vmem>>, vector<16x512xbf16>
    %c0_194 = arith.constant 0 : index
    %c0_195 = arith.constant 0 : index
    %380 = vector.load %arg8[%c0_194, %c0_195] : memref<512x512xbf16, #tpu.memory_space<vmem>>, vector<512x512xbf16>
    %cst_196 = arith.constant dense<0.000000e+00> : vector<16x512xf32>
    %381 = tpu.matmul %379, %380, %cst_196 {dimension_numbers = #tpu.dot_dimension_numbers<[1], [0], [0], [1], [0, 0, 1, 1], [], []>} : vector<16x512xbf16>, vector<512x512xbf16>, vector<16x512xf32> -> vector<16x512xf32>
    %c0_197 = arith.constant 0 : index
    %c0_198 = arith.constant 0 : index
    %382 = vector.load %arg12[%c0_197, %c0_198] : memref<1x512xf32, #tpu.memory_space<vmem>>, vector<1x512xf32>
    %383 = vector.broadcast %382 : vector<1x512xf32> to vector<16x512xf32>
    %384 = arith.addf %381, %383 : vector<16x512xf32>
    %385 = vector.extract_strided_slice %384 {offsets = [0, 0], sizes = [8, 512], strides = [1, 1]} : vector<16x512xf32> to vector<8x512xf32>
    %c0_199 = arith.constant 0 : index
    %c0_200 = arith.constant 0 : index
    %c0_201 = arith.constant 0 : index
    %386 = vector.load %arg13[%c0_199, %c0_200, %c0_201] : memref<2x8x512xf32, #tpu.memory_space<vmem>>, vector<1x8x512xf32>
    %387 = vector.shape_cast %386 : vector<1x8x512xf32> to vector<8x512xf32>
    %388 = vector.shape_cast %385 : vector<8x512xf32> to vector<1x8x512xf32>
    tpu.vector_store %arg13[%c0_199, %c0_200, %c0_201], %388 {strides = array<i32>} : memref<2x8x512xf32, #tpu.memory_space<vmem>>, vector<1x8x512xf32>,
    %389 = vector.extract_strided_slice %384 {offsets = [8, 0], sizes = [8, 512], strides = [1, 1]} : vector<16x512xf32> to vector<8x512xf32>
    %c1_202 = arith.constant 1 : index
    %c0_203 = arith.constant 0 : index
    %c0_204 = arith.constant 0 : index
    %390 = vector.load %arg13[%c1_202, %c0_203, %c0_204] : memref<2x8x512xf32, #tpu.memory_space<vmem>>, vector<1x8x512xf32>
    %391 = vector.shape_cast %390 : vector<1x8x512xf32> to vector<8x512xf32>
    %392 = vector.shape_cast %389 : vector<8x512xf32> to vector<1x8x512xf32>
    tpu.vector_store %arg13[%c1_202, %c0_203, %c0_204], %392 {strides = array<i32>} : memref<2x8x512xf32, #tpu.memory_space<vmem>>, vector<1x8x512xf32>,
    return
  }
  func.func @transform_0(%arg0: i32, %arg1: i32) -> (i32, i32, i32) {
    %c0_i32 = arith.constant 0 : i32
    %c0_i32_0 = arith.constant 0 : i32
    return %arg0, %arg1, %c0_i32 : i32, i32, i32
  }
  func.func @transform_1(%arg0: i32, %arg1: i32) -> (i32, i32, i32) {
    %c0_i32 = arith.constant 0 : i32
    %c0_i32_0 = arith.constant 0 : i32
    %c0_i32_1 = arith.constant 0 : i32
    return %arg0, %c0_i32, %c0_i32_0 : i32, i32, i32
  }
  func.func @transform_2(%arg0: i32, %arg1: i32) -> (i32, i32, i32) {
    %c0_i32 = arith.constant 0 : i32
    %c0_i32_0 = arith.constant 0 : i32
    %c0_i32_1 = arith.constant 0 : i32
    return %arg0, %c0_i32, %c0_i32_0 : i32, i32, i32
  }
  func.func @transform_3(%arg0: i32, %arg1: i32) -> (i32, i32) {
    %c0_i32 = arith.constant 0 : i32
    %c0_i32_0 = arith.constant 0 : i32
    %c0_i32_1 = arith.constant 0 : i32
    return %c0_i32, %c0_i32_0 : i32, i32
  }
  func.func @transform_4(%arg0: i32, %arg1: i32) -> (i32, i32) {
    %c0_i32 = arith.constant 0 : i32
    %c0_i32_0 = arith.constant 0 : i32
    %c0_i32_1 = arith.constant 0 : i32
    return %c0_i32, %c0_i32_0 : i32, i32
  }
  func.func @transform_5(%arg0: i32, %arg1: i32) -> (i32, i32) {
    %c0_i32 = arith.constant 0 : i32
    %c0_i32_0 = arith.constant 0 : i32
    %c0_i32_1 = arith.constant 0 : i32
    return %c0_i32, %c0_i32_0 : i32, i32
  }
  func.func @transform_6(%arg0: i32, %arg1: i32) -> (i32, i32) {
    %c0_i32 = arith.constant 0 : i32
    %c0_i32_0 = arith.constant 0 : i32
    %c0_i32_1 = arith.constant 0 : i32
    return %c0_i32, %c0_i32_0 : i32, i32
  }
  func.func @transform_7(%arg0: i32, %arg1: i32) -> (i32, i32) {
    %c0_i32 = arith.constant 0 : i32
    %c0_i32_0 = arith.constant 0 : i32
    %c0_i32_1 = arith.constant 0 : i32
    return %c0_i32, %c0_i32_0 : i32, i32
  }
  func.func @transform_8(%arg0: i32, %arg1: i32) -> (i32, i32) {
    %c0_i32 = arith.constant 0 : i32
    %c0_i32_0 = arith.constant 0 : i32
    %c0_i32_1 = arith.constant 0 : i32
    return %c0_i32, %c0_i32_0 : i32, i32
  }
  func.func @transform_9(%arg0: i32, %arg1: i32) -> (i32, i32) {
    %c0_i32 = arith.constant 0 : i32
    %c0_i32_0 = arith.constant 0 : i32
    %c0_i32_1 = arith.constant 0 : i32
    return %c0_i32, %c0_i32_0 : i32, i32
  }
  func.func @transform_10(%arg0: i32, %arg1: i32) -> (i32, i32) {
    %c0_i32 = arith.constant 0 : i32
    %c0_i32_0 = arith.constant 0 : i32
    %c0_i32_1 = arith.constant 0 : i32
    return %c0_i32, %c0_i32_0 : i32, i32
  }
  func.func @transform_11(%arg0: i32, %arg1: i32) -> (i32, i32, i32) {
    %c0_i32 = arith.constant 0 : i32
    %c0_i32_0 = arith.constant 0 : i32
    return %arg0, %arg1, %c0_i32 : i32, i32, i32
  }
  func.func @transform_12(%arg0: i32, %arg1: i32) -> (i32, i32, i32, i32) {
    %c0_i32 = arith.constant 0 : i32
    %c0_i32_0 = arith.constant 0 : i32
    %c0_i32_1 = arith.constant 0 : i32
    return %arg0, %c0_i32, %arg1, %c0_i32_0 : i32, i32, i32, i32
  }
}

</mosaic_0001>

<bundles_post_ra>
// kernel: multi_head_attention.1
= control target key start
LH: loop header
LB: loop body
LE: loop exit
PB: predicated region body
PF: predicated region fallthrough
CT: control target
= control target key end

     0   :  { %18 = vsyncpa [#allocation6], 0  ;;  %s8839_s0 = inlined_call_operand.hbm [shape: f32[2,8,512], index: 0, kind: input, shape index: {}]   ;;  %s8840_s1 = inlined_call_operand.hbm [shape: f32[2,8,512], index: 1, kind: input, shape index: {}]   ;;  %s8841_s2 = inlined_call_operand.hbm [shape: f32[2,8,512], index: 2, kind: input, shape index: {}]   ;;  %s8842_s3 = inlined_call_operand.hbm [shape: bf16[512,512], index: 3, kind: input, shape index: {}]   ;;  %s8843_s4 = inlined_call_operand.hbm [shape: bf16[512,512], index: 4, kind: input, shape index: {}]   ;;  %s8844_s5 = inlined_call_operand.hbm [shape: bf16[512,512], index: 5, kind: input, shape index: {}]   ;;  %s8845_s6 = inlined_call_operand.hbm [shape: bf16[512,512], index: 6, kind: input, shape index: {}]   ;;  %s8846_s7 = inlined_call_operand.hbm [shape: f32[1,512], index: 7, kind: input, shape index: {}]   ;;  %s8847_s8 = inlined_call_operand.hbm [shape: f32[1,512], index: 8, kind: input, shape index: {}]   ;;  %s8848_s9 = inlined_call_operand.hbm [shape: f32[1,512], index: 9, kind: input, shape index: {}]   ;;  %s8849_s10 = inlined_call_operand.hbm [shape: f32[1,512], index: 10, kind: input, shape index: {}]   ;;  %s8850_s11 = inlined_call_operand.hbm [shape: f32[2,8,512], index: 11, kind: output, shape index: {0}]   ;;  %s8851_s12 = inlined_call_operand.hbm [shape: f32[2,8,8,8], index: 12, kind: output, shape index: {1}]  }
   0x1   :  { %19 = vsyncpa [#allocation9], 0 }
   0x2   :  { %20 = vsyncpa [#allocation12], 0 }
   0x3   :  { %21 = vsyncpa [#allocation15], 0 }
   0x4   :  { %22 = vsyncpa [#allocation18], 0 }
   0x5   :  { %23 = vsyncpa [#allocation21], 0 }
   0x6   :  { %24 = vsyncpa [#allocation7], 0 }
   0x7   :  { %25 = vsyncpa [#allocation25], 0  ;;  %s8057_s21 = smov [#allocation8]   ;;  %s8058_s23 = smov [#allocation11]  }
   0x8   :  { %s43_s22 = sshll.u32 %s8057_s21, 4  ;;  %s67_s24 = sshll.u32 %s8058_s23, 4  ;;  %s44_s22 = int_to_ptr.vmem [resolvable:$true] %s43_s22  ;;  %s8144_s24 = int_to_ptr.vmem [resolvable:$true] %s67_s24 }
   0x9   :  { %s7755_s27 = scalar_lea.hbm %s8840_s1, 1024 }
   0xa   :  { %p7756_p0 = scmp.ne.s32.totalorder %s8840_s1, %s7755_s27  ;;  %p7759_p1 = scmp.lt.u32.totalorder %s7755_s27, %s8840_s1 }
   0xc   :  { %p7761_p2 = pnand %p7759_p1, %p7756_p0 }
   0xe   :  { %7764 = shalt.err (!%p7761_p2)
}
   0xf   :  { %s7765_s14 = scalar_lea.vmem %s44_s22, 1024  ;;  %p7770_p4 = scmp.lt.s32.totalorder %s44_s22, %s44_s22 }
  0x10   :  { %p7766_p3 = scmp.ne.s32.totalorder %s44_s22, %s7765_s14  ;;  %p7771_p5 = scmp.lt.s32.totalorder %s7765_s14, %s7765_s14 }
  0x12   :  { %p7772_p6 = por %p7771_p5, %p7770_p4 }
  0x14   :  { %p7773_p7 = pnand %p7772_p6, %p7766_p3 }
  0x16   :  { %7776 = shalt.err (!%p7773_p7)
}
  0x17   :  { %s8059_s15 = smov 512   ;;  %s8060_s16 = smov 32  }
  0x18   :  { %49 = dma.hbm_to_vmem [thread:$0]  %s8840_s1, 1024, %s44_s22, [#allocation9], %s8059_s15, %s8059_s15, %s8060_s16  }
  0x19   :  { %s7777_s21 = scalar_lea.hbm %s8842_s3, 16384 }
  0x1a   :  { %p7778_p8 = scmp.ne.s32.totalorder %s8842_s3, %s7777_s21  ;;  %p7781_p9 = scmp.lt.u32.totalorder %s7777_s21, %s8842_s3 }
  0x1c   :  { %p7783_p10 = pnand %p7781_p9, %p7778_p8 }
  0x1e   :  { %7786 = shalt.err (!%p7783_p10)
}
  0x1f   :  { %s7787_s28 = scalar_lea.vmem %s8144_s24, 16384  ;;  %p7792_p12 = scmp.lt.s32.totalorder %s8144_s24, %s8144_s24 }
  0x20   :  { %p7788_p11 = scmp.ne.s32.totalorder %s8144_s24, %s7787_s28  ;;  %p7793_p13 = scmp.lt.s32.totalorder %s7787_s28, %s7787_s28 }
  0x22   :  { %p7794_p0 = por %p7793_p13, %p7792_p12 }
  0x24   :  { %p7795_p1 = pnand %p7794_p0, %p7788_p11 }
  0x26   :  { %7798 = shalt.err (!%p7795_p1)
}
  0x27   :  { %s8061_s1 = smov 256   ;;  %s8062_s22 = smov 16  }
  0x28   :  { %73 = dma.hbm_to_vmem [thread:$0]  %s8842_s3, 16384, %s8144_s24, [#allocation12], %s8061_s1, %s8061_s1, %s8062_s22  }
  0x29   :  { %s8063_s13 = smov [#allocation14]   ;;  %s8064_s17 = smov [#allocation17]  }
  0x2a   :  { %s91_s14 = sshll.u32 %s8063_s13, 4  ;;  %s116_s18 = sshll.u32 %s8064_s17, 4  ;;  %s92_s14 = int_to_ptr.vmem [resolvable:$true] %s91_s14  ;;  %s117_s18 = int_to_ptr.vmem [resolvable:$true] %s116_s18 }
  0x2b   :  { %s7799_s21 = scalar_lea.hbm %s8844_s5, 16384 }
  0x2c   :  { %p7800_p2 = scmp.ne.s32.totalorder %s8844_s5, %s7799_s21  ;;  %p7803_p3 = scmp.lt.u32.totalorder %s7799_s21, %s8844_s5 }
  0x2e   :  { %p7805_p4 = pnand %p7803_p3, %p7800_p2 }
  0x30   :  { %7808 = shalt.err (!%p7805_p4)
}
  0x31   :  { %s7809_s3 = scalar_lea.vmem %s92_s14, 16384  ;;  %p7814_p6 = scmp.lt.s32.totalorder %s92_s14, %s92_s14 }
  0x32   :  { %p7810_p5 = scmp.ne.s32.totalorder %s92_s14, %s7809_s3  ;;  %p7815_p7 = scmp.lt.s32.totalorder %s7809_s3, %s7809_s3 }
  0x34   :  { %p7816_p8 = por %p7815_p7, %p7814_p6 }
  0x36   :  { %p7817_p9 = pnand %p7816_p8, %p7810_p5 }
  0x38   :  { %7820 = shalt.err (!%p7817_p9)
}
  0x39   :  { %97 = dma.hbm_to_vmem [thread:$0]  %s8844_s5, 16384, %s92_s14, [#allocation15], %s8061_s1, %s8061_s1, %s8062_s22  }
  0x3a   :  { %s7821_s13 = scalar_lea.hbm %s8846_s7, 64 }
  0x3b   :  { %p7822_p10 = scmp.ne.s32.totalorder %s8846_s7, %s7821_s13  ;;  %p7825_p11 = scmp.lt.u32.totalorder %s7821_s13, %s8846_s7 }
  0x3d   :  { %p7827_p12 = pnand %p7825_p11, %p7822_p10 }
  0x3f   :  { %7830 = shalt.err (!%p7827_p12)
}
  0x40   :  { %s7831_s23 = scalar_lea.vmem %s117_s18, 64  ;;  %p7836_p0 = scmp.lt.s32.totalorder %s117_s18, %s117_s18 }
  0x41   :  { %p7832_p13 = scmp.ne.s32.totalorder %s117_s18, %s7831_s23  ;;  %p7837_p1 = scmp.lt.s32.totalorder %s7831_s23, %s7831_s23 }
  0x43   :  { %p7838_p2 = por %p7837_p1, %p7836_p0 }
  0x45   :  { %p7839_p3 = pnand %p7838_p2, %p7832_p13 }
  0x47   :  { %7842 = shalt.err (!%p7839_p3)
}
  0x48   :  { %119 = dma.hbm_to_vmem [thread:$0]  %s8846_s7, 64, %s117_s18, [#allocation18]  }
  0x49   :  { %s8065_s25 = smov [#allocation20]   ;;  %s8066_s27 = smov [#allocation5]  }
  0x4a   :  { %s136_s26 = sshll.u32 %s8065_s25, 4  ;;  %s31_s3 = sshll.u32 %s8066_s27, 4  ;;  %s137_s26 = int_to_ptr.vmem [resolvable:$true] %s136_s26  ;;  %s8208_s3 = int_to_ptr.vmem [resolvable:$true] %s31_s3 }
  0x4b   :  { %s7843_s29 = scalar_lea.hbm %s8848_s9, 64 }
  0x4c   :  { %p7844_p4 = scmp.ne.s32.totalorder %s8848_s9, %s7843_s29  ;;  %p7847_p5 = scmp.lt.u32.totalorder %s7843_s29, %s8848_s9 }
  0x4e   :  { %p7849_p6 = pnand %p7847_p5, %p7844_p4 }
  0x50   :  { %7852 = shalt.err (!%p7849_p6)
}
  0x51   :  { %s7853_s7 = scalar_lea.vmem %s137_s26, 64  ;;  %p7858_p8 = scmp.lt.s32.totalorder %s137_s26, %s137_s26 }
  0x52   :  { %p7854_p7 = scmp.ne.s32.totalorder %s137_s26, %s7853_s7  ;;  %p7859_p9 = scmp.lt.s32.totalorder %s7853_s7, %s7853_s7 }
  0x54   :  { %p7860_p10 = por %p7859_p9, %p7858_p8 }
  0x56   :  { %p7861_p11 = pnand %p7860_p10, %p7854_p7 }
  0x58   :  { %7864 = shalt.err (!%p7861_p11)
}
  0x59   :  { %139 = dma.hbm_to_vmem [thread:$0]  %s8848_s9, 64, %s137_s26, [#allocation21]  }
  0x5a   :  { %s7865_s5 = scalar_lea.hbm %s8839_s0, 1024 }
  0x5b   :  { %p7866_p12 = scmp.ne.s32.totalorder %s8839_s0, %s7865_s5  ;;  %p7869_p13 = scmp.lt.u32.totalorder %s7865_s5, %s8839_s0 }
  0x5d   :  { %p7871_p0 = pnand %p7869_p13, %p7866_p12 }
  0x5f   :  { %7874 = shalt.err (!%p7871_p0)
}
  0x60   :  { %s7875_s28 = scalar_lea.vmem %s8208_s3, 1024  ;;  %p7880_p2 = scmp.lt.s32.totalorder %s8208_s3, %s8208_s3 }
  0x61   :  { %p7876_p1 = scmp.ne.s32.totalorder %s8208_s3, %s7875_s28  ;;  %p7881_p3 = scmp.lt.s32.totalorder %s7875_s28, %s7875_s28 }
  0x63   :  { %p7882_p4 = por %p7881_p3, %p7880_p2 }
  0x65   :  { %p7883_p5 = pnand %p7882_p4, %p7876_p1 }
  0x67   :  { %7886 = shalt.err (!%p7883_p5)
}
  0x68   :  { %37 = dma.hbm_to_vmem [thread:$0]  %s8839_s0, 1024, %s8208_s3, [#allocation6], %s8059_s15, %s8059_s15, %s8060_s16  }
  0x69   :  { %s8067_s29 = smov [#allocation10]   ;;  %s8068_s13 = smov [#allocation13]  }
  0x6a   :  { %s55_s30 = sshll.u32 %s8067_s29, 4  ;;  %s79_s17 = sshll.u32 %s8068_s13, 4  ;;  %s56_s30 = int_to_ptr.vmem [resolvable:$true] %s55_s30  ;;  %s8242_s17 = int_to_ptr.vmem [resolvable:$true] %s79_s17 }
  0x6b   :  { %s7887_s18 = scalar_lea.hbm %s8841_s2, 1024 }
  0x6c   :  { %p7888_p6 = scmp.ne.s32.totalorder %s8841_s2, %s7887_s18  ;;  %p7891_p7 = scmp.lt.u32.totalorder %s7887_s18, %s8841_s2 }
  0x6e   :  { %p7893_p8 = pnand %p7891_p7, %p7888_p6 }
  0x70   :  { %7896 = shalt.err (!%p7893_p8)
}
  0x71   :  { %s7897_s0 = scalar_lea.vmem %s56_s30, 1024  ;;  %p7902_p10 = scmp.lt.s32.totalorder %s56_s30, %s56_s30 }
  0x72   :  { %p7898_p9 = scmp.ne.s32.totalorder %s56_s30, %s7897_s0  ;;  %p7903_p11 = scmp.lt.s32.totalorder %s7897_s0, %s7897_s0 }
  0x74   :  { %p7904_p12 = por %p7903_p11, %p7902_p10 }
  0x76   :  { %p7905_p13 = pnand %p7904_p12, %p7898_p9 }
  0x78   :  { %7908 = shalt.err (!%p7905_p13)
}
  0x79   :  { %61 = dma.hbm_to_vmem [thread:$0]  %s8841_s2, 1024, %s56_s30, [#allocation9], %s8059_s15, %s8059_s15, %s8060_s16  }
  0x7a   :  { %s7909_s24 = scalar_lea.hbm %s8843_s4, 16384 }
  0x7b   :  { %p7910_p0 = scmp.ne.s32.totalorder %s8843_s4, %s7909_s24  ;;  %p7913_p1 = scmp.lt.u32.totalorder %s7909_s24, %s8843_s4 }
  0x7d   :  { %p7915_p2 = pnand %p7913_p1, %p7910_p0 }
  0x7f   :  { %7918 = shalt.err (!%p7915_p2)
}
  0x80   :  { %s7919_s13 = scalar_lea.vmem %s8242_s17, 16384  ;;  %p7924_p4 = scmp.lt.s32.totalorder %s8242_s17, %s8242_s17 }
  0x81   :  { %p7920_p3 = scmp.ne.s32.totalorder %s8242_s17, %s7919_s13  ;;  %p7925_p5 = scmp.lt.s32.totalorder %s7919_s13, %s7919_s13 }
  0x83   :  { %p7926_p6 = por %p7925_p5, %p7924_p4 }
  0x85   :  { %p7927_p7 = pnand %p7926_p6, %p7920_p3 }
  0x87   :  { %7930 = shalt.err (!%p7927_p7)
}
  0x88   :  { %85 = dma.hbm_to_vmem [thread:$0]  %s8843_s4, 16384, %s8242_s17, [#allocation12], %s8061_s1, %s8061_s1, %s8062_s22  }
  0x89   :  { %s8069_s19 = smov [#allocation16]   ;;  %s8070_s18 = smov [#allocation19]  }
  0x8a   :  { %s103_s7 = sshll.u32 %s8069_s19, 4  ;;  %s126_s20 = sshll.u32 %s8070_s18, 4  ;;  %s104_s7 = int_to_ptr.vmem [resolvable:$true] %s103_s7  ;;  %s127_s20 = int_to_ptr.vmem [resolvable:$true] %s126_s20 }
  0x8b   :  { %s7931_s5 = scalar_lea.hbm %s8845_s6, 16384 }
  0x8c   :  { %p7932_p8 = scmp.ne.s32.totalorder %s8845_s6, %s7931_s5  ;;  %p7935_p9 = scmp.lt.u32.totalorder %s7931_s5, %s8845_s6 }
  0x8e   :  { %p7937_p10 = pnand %p7935_p9, %p7932_p8 }
  0x90   :  { %7940 = shalt.err (!%p7937_p10)
}
  0x91   :  { %s7941_s4 = scalar_lea.vmem %s104_s7, 16384  ;;  %p7946_p12 = scmp.lt.s32.totalorder %s104_s7, %s104_s7 }
  0x92   :  { %p7942_p11 = scmp.ne.s32.totalorder %s104_s7, %s7941_s4  ;;  %p7947_p13 = scmp.lt.s32.totalorder %s7941_s4, %s7941_s4 }
  0x94   :  { %p7948_p0 = por %p7947_p13, %p7946_p12 }
  0x96   :  { %p7949_p1 = pnand %p7948_p0, %p7942_p11 }
  0x98   :  { %7952 = shalt.err (!%p7949_p1)
}
  0x99   :  { %109 = dma.hbm_to_vmem [thread:$0]  %s8845_s6, 16384, %s104_s7, [#allocation15], %s8061_s1, %s8061_s1, %s8062_s22  }
  0x9a   :  { %s7953_s9 = scalar_lea.hbm %s8847_s8, 64 }
  0x9b   :  { %p7954_p2 = scmp.ne.s32.totalorder %s8847_s8, %s7953_s9  ;;  %p7957_p3 = scmp.lt.u32.totalorder %s7953_s9, %s8847_s8 }
  0x9d   :  { %p7959_p4 = pnand %p7957_p3, %p7954_p2 }
  0x9f   :  { %7962 = shalt.err (!%p7959_p4)
}
  0xa0   :  { %s7963_s30 = scalar_lea.vmem %s127_s20, 64  ;;  %p7968_p6 = scmp.lt.s32.totalorder %s127_s20, %s127_s20 }
  0xa1   :  { %p7964_p5 = scmp.ne.s32.totalorder %s127_s20, %s7963_s30  ;;  %p7969_p7 = scmp.lt.s32.totalorder %s7963_s30, %s7963_s30 }
  0xa3   :  { %p7970_p8 = por %p7969_p7, %p7968_p6 }
  0xa5   :  { %p7971_p9 = pnand %p7970_p8, %p7964_p5 }
  0xa7   :  { %7974 = shalt.err (!%p7971_p9)
}
  0xa8   :  { %129 = dma.hbm_to_vmem [thread:$0]  %s8847_s8, 64, %s127_s20, [#allocation18]  }
  0xa9   :  { %s8071_s22 = smov [#allocation22]   ;;  %s7975_s21 = scalar_lea.hbm %s8849_s10, 64 }
  0xaa   :  { %s146_s19 = sshll.u32 %s8071_s22, 4  ;;  %p7976_p10 = scmp.ne.s32.totalorder %s8849_s10, %s7975_s21  ;;  %s147_s19 = int_to_ptr.vmem [resolvable:$true] %s146_s19 }
  0xab   :  { %p7979_p11 = scmp.lt.u32.totalorder %s7975_s21, %s8849_s10 }
  0xad   :  { %p7981_p12 = pnand %p7979_p11, %p7976_p10 }
  0xaf   :  { %7984 = shalt.err (!%p7981_p12)
}
  0xb0   :  { %s7985_s14 = scalar_lea.vmem %s147_s19, 64  ;;  %p7990_p0 = scmp.lt.s32.totalorder %s147_s19, %s147_s19 }
  0xb1   :  { %p7986_p13 = scmp.ne.s32.totalorder %s147_s19, %s7985_s14  ;;  %p7991_p1 = scmp.lt.s32.totalorder %s7985_s14, %s7985_s14 }
  0xb3   :  { %p7992_p2 = por %p7991_p1, %p7990_p0 }
  0xb5   :  { %p7993_p3 = pnand %p7992_p2, %p7986_p13 }
  0xb7   :  { %7996 = shalt.err (!%p7993_p3)
}
  0xb8   :  { %149 = dma.hbm_to_vmem [thread:$0]  %s8849_s10, 64, %s147_s19, [#allocation21]  }
  0xb9   :  { %8041 = dma.done.wait [#allocation6], 1024  }
  0xba   :  { %8042 = vsyncadd [#allocation6], 4294966272 }
  0xbb   :  { %8043 = dma.done.wait [#allocation9], 2048  }
  0xbc   :  { %8044 = vsyncadd [#allocation9], 4294965248 }
  0xbd   :  { %8045 = dma.done.wait [#allocation12], 32768  }
  0xbe   :  { %8046 = vsyncadd [#allocation12], 4294934528 }
  0xbf   :  { %8047 = dma.done.wait [#allocation15], 32768  }
  0xc0   :  { %8048 = vsyncadd [#allocation15], 4294934528 }
  0xc1   :  { %8049 = dma.done.wait [#allocation18], 128  }
  0xc2   :  { %8050 = vsyncadd [#allocation18], 4294967168 }
  0xc3   :  { %8051 = dma.done.wait [#allocation21], 128  }
  0xc4   :  { %8052 = vsyncadd [#allocation21], 4294967168  ;;  %v6923_v0 = vld [vmem:[#allocation13 + $0x4] ss:$16 sps:$4 sm:$0xff]   ;;  %v6925_v1 = vld [vmem:[#allocation13] ss:$16 sps:$4 sm:$0xff]  }
  0xc5   :  { %1002 = vmatprep.subr.bf16.mxu0 %v6923_v0  ;;  %v6926_v2 = vld [vmem:[#allocation13 + $0x24] ss:$16 sps:$4 sm:$0xff]   ;;  %v6928_v3 = vld [vmem:[#allocation13 + $0x20] ss:$16 sps:$4 sm:$0xff]   ;;  %v6938_v6 = vld [vmem:[#allocation13 + $0xc] ss:$16 sps:$4 sm:$0xff]  }
  0xc6   :  { %1003 = vmatpush1.bf16.msra.mxu0 %v6925_v1  ;;  %v6929_v4 = vld [vmem:[#allocation13 + $0x44] ss:$16 sps:$4 sm:$0xff]   ;;  %v6931_v5 = vld [vmem:[#allocation13 + $0x40] ss:$16 sps:$4 sm:$0xff]   ;;  %v6940_v7 = vld [vmem:[#allocation13 + $0x8] ss:$16 sps:$4 sm:$0xff]   ;;  %1088 = vmatprep.subr.bf16.mxu1 %v6938_v6 }
  0xc7   :  { %1004 = vmatprep.subr.bf16.mxu0 %v6926_v2  ;;  %v6932_v8 = vld [vmem:[#allocation13 + $0x64] ss:$16 sps:$4 sm:$0xff]   ;;  %1089 = vmatpush1.bf16.msra.mxu1 %v6940_v7  ;;  %v6944_v9 = vld [vmem:[#allocation13 + $0x2c] ss:$16 sps:$4 sm:$0xff]   ;;  %v6946_v10 = vld [vmem:[#allocation13 + $0x28] ss:$16 sps:$4 sm:$0xff]  }
  0xc8   :  { %v6934_v11 = vld [vmem:[#allocation13 + $0x60] ss:$16 sps:$4 sm:$0xff]   ;;  %v6935_v12 = vld [vmem:[#allocation13 + $0x84] ss:$16 sps:$4 sm:$0xff]   ;;  %1090 = vmatprep.subr.bf16.mxu1 %v6944_v9  ;;  %v6950_v13 = vld [vmem:[#allocation13 + $0x4c] ss:$16 sps:$4 sm:$0xff]  }
  0xc9   :  { %v6952_v14 = vld [vmem:[#allocation13 + $0x48] ss:$16 sps:$4 sm:$0xff]   ;;  %v6937_v15 = vld [vmem:[#allocation13 + $0x80] ss:$16 sps:$4 sm:$0xff]   ;;  %v6956_v16 = vld [vmem:[#allocation13 + $0x6c] ss:$16 sps:$4 sm:$0xff]  }
  0xca   :  { %1005 = vmatpush1.bf16.msra.mxu0 %v6928_v3  ;;  %v6941_v17 = vld [vmem:[#allocation13 + $0xa4] ss:$16 sps:$4 sm:$0xff]   ;;  %v6958_v18 = vld [vmem:[#allocation13 + $0x68] ss:$16 sps:$4 sm:$0xff]   ;;  %v6943_v19 = vld [vmem:[#allocation13 + $0xa0] ss:$16 sps:$4 sm:$0xff]  }
  0xcb   :  { %1006 = vmatprep.subr.bf16.mxu0 %v6929_v4  ;;  %1091 = vmatpush1.bf16.msra.mxu1 %v6946_v10  ;;  %v6962_v20 = vld [vmem:[#allocation13 + $0x8c] ss:$16 sps:$4 sm:$0xff]   ;;  %v6947_v21 = vld [vmem:[#allocation13 + $0xc4] ss:$16 sps:$4 sm:$0xff]   ;;  %v6964_v22 = vld [vmem:[#allocation13 + $0x88] ss:$16 sps:$4 sm:$0xff]  }
  0xcc   :  { %1092 = vmatprep.subr.bf16.mxu1 %v6950_v13  ;;  %v6949_v23 = vld [vmem:[#allocation13 + $0xc0] ss:$16 sps:$4 sm:$0xff]   ;;  %v6968_v24 = vld [vmem:[#allocation13 + $0xac] ss:$16 sps:$4 sm:$0xff]   ;;  %v6953_v25 = vld [vmem:[#allocation13 + $0xe4] ss:$16 sps:$4 sm:$0xff]  }
  0xcd   :  { %v6970_v26 = vld [vmem:[#allocation13 + $0xa8] ss:$16 sps:$4 sm:$0xff]   ;;  %v6955_v27 = vld [vmem:[#allocation13 + $0xe0] ss:$16 sps:$4 sm:$0xff]   ;;  %v6974_v28 = vld [vmem:[#allocation13 + $0xcc] ss:$16 sps:$4 sm:$0xff]  }
  0xce   :  { %1007 = vmatpush1.bf16.msra.mxu0 %v6931_v5  ;;  %v6959_v29 = vld [vmem:[#allocation13 + $0x104] ss:$16 sps:$4 sm:$0xff]   ;;  %v6976_v30 = vld [vmem:[#allocation13 + $0xc8] ss:$16 sps:$4 sm:$0xff]   ;;  %v6961_v31 = vld [vmem:[#allocation13 + $0x100] ss:$16 sps:$4 sm:$0xff]  }
  0xcf   :  { %1008 = vmatprep.subr.bf16.mxu0 %v6932_v8  ;;  %1093 = vmatpush1.bf16.msra.mxu1 %v6952_v14  ;;  %v6980_v32 = vld [vmem:[#allocation13 + $0xec] ss:$16 sps:$4 sm:$0xff]   ;;  %v6965_v33 = vld [vmem:[#allocation13 + $0x124] ss:$16 sps:$4 sm:$0xff]   ;;  %v6982_v34 = vld [vmem:[#allocation13 + $0xe8] ss:$16 sps:$4 sm:$0xff]  }
  0xd0   :  { %1094 = vmatprep.subr.bf16.mxu1 %v6956_v16  ;;  %v6967_v35 = vld [vmem:[#allocation13 + $0x120] ss:$16 sps:$4 sm:$0xff]   ;;  %v6986_v36 = vld [vmem:[#allocation13 + $0x10c] ss:$16 sps:$4 sm:$0xff]   ;;  %v6971_v37 = vld [vmem:[#allocation13 + $0x144] ss:$16 sps:$4 sm:$0xff]  }
  0xd1   :  { %v189_v38 = vld [vmem:[#allocation8 + $0x8] sm:$0xff]  ;;  %v6973_v42 = vld [vmem:[#allocation13 + $0x140] ss:$16 sps:$4 sm:$0xff]   ;;  %v6977_v44 = vld [vmem:[#allocation13 + $0x164] ss:$16 sps:$4 sm:$0xff]   ;;  %s8072_s10 = smov 64  }
  0xd2   :  { %1009 = vmatpush1.bf16.msra.mxu0 %v6934_v11  ;;  %v193_v39 = vld [vmem:[#allocation8 + $0x28] sm:$0xff]  ;;  %v6979_v46 = vld [vmem:[#allocation13 + $0x160] ss:$16 sps:$4 sm:$0xff]   ;;  %v6983_v48 = vld [vmem:[#allocation13 + $0x184] ss:$16 sps:$4 sm:$0xff]   ;;  %vm3131_vm0 = vcmask 523264  }
  0xd3   :  { %1010 = vmatprep.subr.bf16.mxu0 %v6935_v12  ;;  %1095 = vmatpush1.bf16.msra.mxu1 %v6958_v18  ;;  %v6988_v40 = vld [vmem:[#allocation13 + $0x108] ss:$16 sps:$4 sm:$0xff]   ;;  %v197_v41 = vpack.c.bf16 %v193_v39, %v189_v38  ;;  %v6992_v43 = vld [vmem:[#allocation13 + $0x12c] ss:$16 sps:$4 sm:$0xff]   ;;  %v6985_v50 = vld [vmem:[#allocation13 + $0x180] ss:$16 sps:$4 sm:$0xff]  }
  0xd4   :  { %1096 = vmatprep.subr.bf16.mxu1 %v6962_v20  ;;  %v6994_v45 = vld [vmem:[#allocation13 + $0x128] ss:$16 sps:$4 sm:$0xff]   ;;  %v6998_v47 = vld [vmem:[#allocation13 + $0x14c] ss:$16 sps:$4 sm:$0xff]   ;;  %v6989_v52 = vld [vmem:[#allocation13 + $0x1a4] ss:$16 sps:$4 sm:$0xff]  }
  0xd5   :  { %1034 = vmatprep.mubr.bf16.mxu0 %v197_v41  ;;  %1120 = vmatprep.mubr.bf16.mxu1 %v197_v41  ;;  %v7000_v49 = vld [vmem:[#allocation13 + $0x148] ss:$16 sps:$4 sm:$0xff]   ;;  %v7004_v51 = vld [vmem:[#allocation13 + $0x16c] ss:$16 sps:$4 sm:$0xff]   ;;  %v6991_v54 = vld [vmem:[#allocation13 + $0x1a0] ss:$16 sps:$4 sm:$0xff]  }
  0xd6   :  { %1011 = vmatpush1.bf16.msra.mxu0 %v6937_v15  ;;  %v7006_v53 = vld [vmem:[#allocation13 + $0x168] ss:$16 sps:$4 sm:$0xff]   ;;  %v7010_v55 = vld [vmem:[#allocation13 + $0x18c] ss:$16 sps:$4 sm:$0xff]   ;;  %v6995_v56 = vld [vmem:[#allocation13 + $0x1c4] ss:$16 sps:$4 sm:$0xff]  }
  0xd7   :  { %1012 = vmatprep.subr.bf16.mxu0 %v6941_v17  ;;  %1097 = vmatpush1.bf16.msra.mxu1 %v6964_v22  ;;  %v7012_v57 = vld [vmem:[#allocation13 + $0x188] ss:$16 sps:$4 sm:$0xff]   ;;  %v6997_v58 = vld [vmem:[#allocation13 + $0x1c0] ss:$16 sps:$4 sm:$0xff]   ;;  %v7016_v59 = vld [vmem:[#allocation13 + $0x1ac] ss:$16 sps:$4 sm:$0xff]  }
  0xd8   :  { %1098 = vmatprep.subr.bf16.mxu1 %v6968_v24  ;;  %v7001_v60 = vld [vmem:[#allocation13 + $0x1e4] ss:$16 sps:$4 sm:$0xff]   ;;  %v7003_v61 = vld [vmem:[#allocation13 + $0x1e0] ss:$16 sps:$4 sm:$0xff]   ;;  %v7018_v63 = vld [vmem:[#allocation13 + $0x1a8] ss:$16 sps:$4 sm:$0xff]  }
  0xd9   :  { %v188_v62 = vld [vmem:[#allocation8] sm:$0xff]  ;;  %v7022_v1 = vld [vmem:[#allocation13 + $0x1cc] ss:$16 sps:$4 sm:$0xff]   ;;  %v7024_v4 = vld [vmem:[#allocation13 + $0x1c8] ss:$16 sps:$4 sm:$0xff]   ;;  %vm3195_vm1 = vcmask 1043456  }
  0xda   :  { %1013 = vmatpush1.bf16.msra.mxu0 %v6943_v19  ;;  %v192_v0 = vld [vmem:[#allocation8 + $0x20] sm:$0xff]  ;;  %v7028_v6 = vld [vmem:[#allocation13 + $0x1ec] ss:$16 sps:$4 sm:$0xff]   ;;  %v7030_v8 = vld [vmem:[#allocation13 + $0x1e8] ss:$16 sps:$4 sm:$0xff]   ;;  %vm8074_vm2 = vmmov 0  }
  0xdb   :  { %1014 = vmatprep.subr.bf16.mxu0 %v6947_v21  ;;  %1099 = vmatpush1.bf16.msra.mxu1 %v6970_v26  ;;  %v7009_v2 = vld [vmem:[#allocation13 + $0x204] ss:$16 sps:$4 sm:$0xff]   ;;  %v196_v3 = vpack.c.bf16 %v192_v0, %v188_v62  ;;  %v7007_v5 = vld [vmem:[#allocation13 + $0x200] ss:$16 sps:$4 sm:$0xff]   ;;  %v7036_v10 = vld [vmem:[#allocation13 + $0x20c] ss:$16 sps:$4 sm:$0xff]  }
  0xdc   :  { %1100 = vmatprep.subr.bf16.mxu1 %v6974_v28  ;;  %v7015_v7 = vld [vmem:[#allocation13 + $0x224] ss:$16 sps:$4 sm:$0xff]   ;;  %v7013_v9 = vld [vmem:[#allocation13 + $0x220] ss:$16 sps:$4 sm:$0xff]   ;;  %v7034_v12 = vld [vmem:[#allocation13 + $0x208] ss:$16 sps:$4 sm:$0xff]  }
  0xdd   :  { %v7021_v11 = vld [vmem:[#allocation13 + $0x244] ss:$16 sps:$4 sm:$0xff]   ;;  %v7019_v13 = vld [vmem:[#allocation13 + $0x240] ss:$16 sps:$4 sm:$0xff]   ;;  %v7042_v14 = vld [vmem:[#allocation13 + $0x22c] ss:$16 sps:$4 sm:$0xff]  }
  0xde   :  { %1015 = vmatpush1.bf16.msra.mxu0 %v6949_v23  ;;  %v7027_v15 = vld [vmem:[#allocation13 + $0x264] ss:$16 sps:$4 sm:$0xff]   ;;  %v7040_v16 = vld [vmem:[#allocation13 + $0x228] ss:$16 sps:$4 sm:$0xff]   ;;  %v7025_v17 = vld [vmem:[#allocation13 + $0x260] ss:$16 sps:$4 sm:$0xff]  }
  0xdf   :  { %1016 = vmatprep.subr.bf16.mxu0 %v6953_v25  ;;  %1101 = vmatpush1.bf16.msra.mxu1 %v6976_v30  ;;  %v7048_v18 = vld [vmem:[#allocation13 + $0x24c] ss:$16 sps:$4 sm:$0xff]   ;;  %v7033_v19 = vld [vmem:[#allocation13 + $0x284] ss:$16 sps:$4 sm:$0xff]   ;;  %v7046_v20 = vld [vmem:[#allocation13 + $0x248] ss:$16 sps:$4 sm:$0xff]  }
  0xe0   :  { %1102 = vmatprep.subr.bf16.mxu1 %v6980_v32  ;;  %v7031_v21 = vld [vmem:[#allocation13 + $0x280] ss:$16 sps:$4 sm:$0xff]   ;;  %v7054_v22 = vld [vmem:[#allocation13 + $0x26c] ss:$16 sps:$4 sm:$0xff]   ;;  %v7039_v23 = vld [vmem:[#allocation13 + $0x2a4] ss:$16 sps:$4 sm:$0xff]  }
  0xe1   :  { %v191_v24 = vld [vmem:[#allocation8 + $0x18] sm:$0xff]  ;;  %v7037_v28 = vld [vmem:[#allocation13 + $0x2a0] ss:$16 sps:$4 sm:$0xff]   ;;  %v7045_v30 = vld [vmem:[#allocation13 + $0x2c4] ss:$16 sps:$4 sm:$0xff]   ;;  %vm3178_vm3 = vcmask 64512  }
  0xe2   :  { %1017 = vmatpush1.bf16.msra.mxu0 %v6955_v27  ;;  %v195_v25 = vld [vmem:[#allocation8 + $0x38] sm:$0xff]  ;;  %v7043_v32 = vld [vmem:[#allocation13 + $0x2c0] ss:$16 sps:$4 sm:$0xff]   ;;  %v7057_v38 = vld [vmem:[#allocation13 + $0x304] ss:$16 sps:$4 sm:$0xff]   ;;  %vm3240_vm4 = vcmask 519168  }
  0xe3   :  { %1018 = vmatprep.subr.bf16.mxu0 %v6959_v29  ;;  %1103 = vmatpush1.bf16.msra.mxu1 %v6982_v34  ;;  %v7052_v26 = vld [vmem:[#allocation13 + $0x268] ss:$16 sps:$4 sm:$0xff]   ;;  %v199_v27 = vpack.c.bf16 %v195_v25, %v191_v24  ;;  %v7060_v29 = vld [vmem:[#allocation13 + $0x28c] ss:$16 sps:$4 sm:$0xff]   ;;  %v7051_v34 = vld [vmem:[#allocation13 + $0x2e4] ss:$16 sps:$4 sm:$0xff]  }
  0xe4   :  { %1104 = vmatprep.subr.bf16.mxu1 %v6986_v36  ;;  %v7049_v36 = vld [vmem:[#allocation13 + $0x2e0] ss:$16 sps:$4 sm:$0xff]   ;;  %v7070_v39 = vld [vmem:[#allocation13 + $0x2c8] ss:$16 sps:$4 sm:$0xff]   ;;  %v7078_v41 = vld [vmem:[#allocation13 + $0x2ec] ss:$16 sps:$4 sm:$0xff]  }
  0xe5   :  { %v7093_v62 = vld [vmem:[#allocation13 + $0x3c4] ss:$16 sps:$4 sm:$0xff]   ;;  %v7091_v0 = vld [vmem:[#allocation13 + $0x3c0] ss:$16 sps:$4 sm:$0xff]   ;;  %v7136_v25 = vld [vmem:[#allocation14 + $0x28] ss:$16 sps:$4 sm:$0xff]  }
  0xe6   :  { %1019 = vmatpush1.bf16.msra.mxu0 %v6961_v31  ;;  %v7058_v31 = vld [vmem:[#allocation13 + $0x288] ss:$16 sps:$4 sm:$0xff]   ;;  %v7123_v24 = vld [vmem:[#allocation14 + $0x64] ss:$16 sps:$4 sm:$0xff]   ;;  %vm3358_vm5 = vcmask 523268   ;;  %vm3481_vm6 = vcmask 1043968  }
  0xe7   :  { %1020 = vmatprep.subr.bf16.mxu0 %v6965_v33  ;;  %1105 = vmatpush1.bf16.msra.mxu1 %v6988_v40  ;;  %v7066_v33 = vld [vmem:[#allocation13 + $0x2ac] ss:$16 sps:$4 sm:$0xff]   ;;  %v7055_v40 = vld [vmem:[#allocation13 + $0x300] ss:$16 sps:$4 sm:$0xff]   ;;  %vm3603_vm7 = vcmask 1048068   ;;  %s8075_s25 = smov [#allocation24]  }
  0xe8   :  { %1106 = vmatprep.subr.bf16.mxu1 %v6992_v43  ;;  %v7076_v43 = vld [vmem:[#allocation13 + $0x2e8] ss:$16 sps:$4 sm:$0xff]   ;;  %s6016_s4 = sshll.u32 %s8075_s25, 4  ;;  %s6017_s4 = int_to_ptr.vmem [resolvable:$true] %s6016_s4 }
  0xe9   :  { %s7997_s17 = scalar_lea.vmem %s6017_s4, 2048  ;;  %p8002_p5 = scmp.lt.s32.totalorder %s6017_s4, %s6017_s4 }
  0xea   :  { %1021 = vmatpush1.bf16.msra.mxu0 %v6967_v35  ;;  %v7064_v35 = vld [vmem:[#allocation13 + $0x2a8] ss:$16 sps:$4 sm:$0xff]   ;;  %p7998_p4 = scmp.ne.s32.totalorder %s6017_s4, %s7997_s17  ;;  %p8003_p6 = scmp.lt.s32.totalorder %s7997_s17, %s7997_s17 }
  0xeb   :  { %1022 = vmatprep.subr.bf16.mxu0 %v6971_v37  ;;  %1107 = vmatpush1.bf16.msra.mxu1 %v6994_v45  ;;  %v7072_v37 = vld [vmem:[#allocation13 + $0x2cc] ss:$16 sps:$4 sm:$0xff]  }
  0xec   :  { %1108 = vmatprep.subr.bf16.mxu1 %v6998_v47  ;;  %v7084_v45 = vld [vmem:[#allocation13 + $0x30c] ss:$16 sps:$4 sm:$0xff]   ;;  %v7082_v47 = vld [vmem:[#allocation13 + $0x308] ss:$16 sps:$4 sm:$0xff]   ;;  %p8004_p7 = por %p8003_p6, %p8002_p5 }
  0xee   :  { %1023 = vmatpush1.bf16.msra.mxu0 %v6973_v42  ;;  %v7063_v42 = vld [vmem:[#allocation13 + $0x324] ss:$16 sps:$4 sm:$0xff]   ;;  %p8005_p8 = pnand %p8004_p7, %p7998_p4 }
  0xef   :  { %1024 = vmatprep.subr.bf16.mxu0 %v6977_v44  ;;  %1109 = vmatpush1.bf16.msra.mxu1 %v7000_v49  ;;  %v7061_v44 = vld [vmem:[#allocation13 + $0x320] ss:$16 sps:$4 sm:$0xff]   ;;  %v7090_v49 = vld [vmem:[#allocation13 + $0x32c] ss:$16 sps:$4 sm:$0xff]  }
  0xf0   :  { %1110 = vmatprep.subr.bf16.mxu1 %v7004_v51  ;;  %v7088_v51 = vld [vmem:[#allocation13 + $0x328] ss:$16 sps:$4 sm:$0xff]  }
  0xf2   :  { %1025 = vmatpush1.bf16.msra.mxu0 %v6979_v46  ;;  %v7069_v46 = vld [vmem:[#allocation13 + $0x344] ss:$16 sps:$4 sm:$0xff]  }
  0xf3   :  { %1026 = vmatprep.subr.bf16.mxu0 %v6983_v48  ;;  %1111 = vmatpush1.bf16.msra.mxu1 %v7006_v53  ;;  %v7067_v48 = vld [vmem:[#allocation13 + $0x340] ss:$16 sps:$4 sm:$0xff]   ;;  %v7096_v53 = vld [vmem:[#allocation13 + $0x34c] ss:$16 sps:$4 sm:$0xff]  }
  0xf4   :  { %1112 = vmatprep.subr.bf16.mxu1 %v7010_v55  ;;  %v7094_v55 = vld [vmem:[#allocation13 + $0x348] ss:$16 sps:$4 sm:$0xff]  }
  0xf6   :  { %1027 = vmatpush1.bf16.msra.mxu0 %v6985_v50  ;;  %v7075_v50 = vld [vmem:[#allocation13 + $0x364] ss:$16 sps:$4 sm:$0xff]  }
  0xf7   :  { %1028 = vmatprep.subr.bf16.mxu0 %v6989_v52  ;;  %1113 = vmatpush1.bf16.msra.mxu1 %v7012_v57  ;;  %v7073_v52 = vld [vmem:[#allocation13 + $0x360] ss:$16 sps:$4 sm:$0xff]   ;;  %v7102_v57 = vld [vmem:[#allocation13 + $0x36c] ss:$16 sps:$4 sm:$0xff]  }
  0xf8   :  { %1114 = vmatprep.subr.bf16.mxu1 %v7016_v59  ;;  %v7100_v59 = vld [vmem:[#allocation13 + $0x368] ss:$16 sps:$4 sm:$0xff]  }
  0xfa   :  { %1029 = vmatpush1.bf16.msra.mxu0 %v6991_v54  ;;  %v7081_v54 = vld [vmem:[#allocation13 + $0x384] ss:$16 sps:$4 sm:$0xff]  }
  0xfb   :  { %1030 = vmatprep.subr.bf16.mxu0 %v6995_v56  ;;  %1115 = vmatpush1.bf16.msra.mxu1 %v7018_v63  ;;  %v7079_v56 = vld [vmem:[#allocation13 + $0x380] ss:$16 sps:$4 sm:$0xff]   ;;  %v7106_v63 = vld [vmem:[#allocation13 + $0x388] ss:$16 sps:$4 sm:$0xff]  }
  0xfc   :  { %1116 = vmatprep.subr.bf16.mxu1 %v7022_v1  ;;  %v7114_v1 = vld [vmem:[#allocation13 + $0x3ac] ss:$16 sps:$4 sm:$0xff]  }
  0xfe   :  { %1031 = vmatpush1.bf16.msra.mxu0 %v6997_v58  ;;  %v7087_v58 = vld [vmem:[#allocation13 + $0x3a4] ss:$16 sps:$4 sm:$0xff]  }
  0xff   :  { %1032 = vmatprep.subr.bf16.mxu0 %v7001_v60  ;;  %1117 = vmatpush1.bf16.msra.mxu1 %v7024_v4  ;;  %v7085_v60 = vld [vmem:[#allocation13 + $0x3a0] ss:$16 sps:$4 sm:$0xff]  }
 0x100   :  { %1118 = vmatprep.subr.bf16.mxu1 %v7028_v6  ;;  %v190_v4 = vld [vmem:[#allocation8 + $0x10] sm:$0xff] }
 0x101   :  { %v194_v6 = vld [vmem:[#allocation8 + $0x30] sm:$0xff] }
 0x102   :  { %1033 = vmatpush1.bf16.msra.mxu0 %v7003_v61  ;;  %v7108_v61 = vld [vmem:[#allocation13 + $0x38c] ss:$16 sps:$4 sm:$0xff]  }
 0x103   :  { %1045 = vmatprep.subr.bf16.mxu0 %v7009_v2  ;;  %1119 = vmatpush1.bf16.msra.mxu1 %v7030_v8  ;;  %v7099_v2 = vld [vmem:[#allocation13 + $0x3e4] ss:$16 sps:$4 sm:$0xff]  }
 0x104   :  { %1131 = vmatprep.subr.bf16.mxu1 %v7036_v10  ;;  %v7105_v8 = vld [vmem:[#allocation14 + $0x4] ss:$16 sps:$4 sm:$0xff]   ;;  %v205_v10 = vld [vmem:[#allocation10 + $0x28] sm:$0xff] }
 0x105   :  { %1035 = vmatmul.mubr.bf16.vlgmr.msra.gmra.mrb[0].mxu0 %v196_v3 }
 0x106   :  { %1046 = vmatpush1.bf16.msra.mxu0 %v7007_v5  ;;  %1121 = vmatmul.mubr.bf16.vlgmr.msra.gmra.mrb[0].mxu1 %v196_v3  ;;  %v7097_v3 = vld [vmem:[#allocation13 + $0x3e0] ss:$16 sps:$4 sm:$0xff]   ;;  %v7112_v5 = vld [vmem:[#allocation13 + $0x3a8] ss:$16 sps:$4 sm:$0xff]  }
 0x107   :  { %1047 = vmatprep.subr.bf16.mxu0 %v7015_v7  ;;  %1132 = vmatpush1.bf16.msra.mxu1 %v7034_v12  ;;  %v7120_v7 = vld [vmem:[#allocation13 + $0x3cc] ss:$16 sps:$4 sm:$0xff]   ;;  %v7118_v12 = vld [vmem:[#allocation13 + $0x3c8] ss:$16 sps:$4 sm:$0xff]  }
 0x108   :  { %1133 = vmatprep.subr.bf16.mxu1 %v7042_v14  ;;  %1077 = vmatprep.mubr.bf16.mxu0 %v199_v27  ;;  %v7126_v14 = vld [vmem:[#allocation13 + $0x3ec] ss:$16 sps:$4 sm:$0xff]  }
 0x109   :  { %1163 = vmatprep.mubr.bf16.mxu1 %v199_v27  ;;  %v7144_v27 = vld [vmem:[#allocation14 + $0x4c] ss:$16 sps:$4 sm:$0xff]  }
 0x10a   :  { %1048 = vmatpush1.bf16.msra.mxu0 %v7013_v9  ;;  %v201_v9 = vld [vmem:[#allocation10 + $0x8] sm:$0xff] }
 0x10b   :  { %1049 = vmatprep.subr.bf16.mxu0 %v7021_v11  ;;  %1134 = vmatpush1.bf16.msra.mxu1 %v7040_v16  ;;  %v198_v11 = vpack.c.bf16 %v194_v6, %v190_v4  ;;  %v209_v16 = vpack.c.bf16 %v205_v10, %v201_v9  ;;  %v7189_v4 = vld [vmem:[#allocation14 + $0x1c4] ss:$16 sps:$4 sm:$0xff]   ;;  %v7187_v6 = vld [vmem:[#allocation14 + $0x1c0] ss:$16 sps:$4 sm:$0xff]  }
 0x10c   :  { %1135 = vmatprep.subr.bf16.mxu1 %v7048_v18  ;;  %v7109_v18 = vld [vmem:[#allocation14 + $0x20] ss:$16 sps:$4 sm:$0xff]   ;;  %v7201_v10 = vld [vmem:[#allocation14 + $0x204] ss:$16 sps:$4 sm:$0xff]  }
 0x10d   :  { %v7193_v9 = vld [vmem:[#allocation14 + $0x1e0] ss:$16 sps:$4 sm:$0xff]  }
 0x10e   :  { %1050 = vmatpush1.bf16.msra.mxu0 %v7019_v13  ;;  %v7103_v13 = vld [vmem:[#allocation14] ss:$16 sps:$4 sm:$0xff]  }
 0x10f   :  { %1051 = vmatprep.subr.bf16.mxu0 %v7027_v15  ;;  %1136 = vmatpush1.bf16.msra.mxu1 %v7046_v20  ;;  %v7111_v15 = vld [vmem:[#allocation14 + $0x24] ss:$16 sps:$4 sm:$0xff]  }
 0x110   :  { %1137 = vmatprep.subr.bf16.mxu1 %v7054_v22  ;;  %v7117_v20 = vld [vmem:[#allocation14 + $0x44] ss:$16 sps:$4 sm:$0xff]   ;;  %v7115_v22 = vld [vmem:[#allocation14 + $0x40] ss:$16 sps:$4 sm:$0xff]  }
 0x112   :  { %1052 = vmatpush1.bf16.msra.mxu0 %v7025_v17  ;;  %v7124_v17 = vld [vmem:[#allocation13 + $0x3e8] ss:$16 sps:$4 sm:$0xff]  }
 0x113   :  { %1053 = vmatprep.subr.bf16.mxu0 %v7033_v19  ;;  %1138 = vmatpush1.bf16.msra.mxu1 %v7052_v26  ;;  %v7132_v19 = vld [vmem:[#allocation14 + $0xc] ss:$16 sps:$4 sm:$0xff]   ;;  %v7121_v26 = vld [vmem:[#allocation14 + $0x60] ss:$16 sps:$4 sm:$0xff]  }
 0x114   :  { %1139 = vmatprep.subr.bf16.mxu1 %v7060_v29  ;;  %v7142_v29 = vld [vmem:[#allocation14 + $0x48] ss:$16 sps:$4 sm:$0xff]  }
 0x116   :  { %1054 = vmatpush1.bf16.msra.mxu0 %v7031_v21  ;;  %v7130_v21 = vld [vmem:[#allocation14 + $0x8] ss:$16 sps:$4 sm:$0xff]  }
 0x117   :  { %1055 = vmatprep.subr.bf16.mxu0 %v7039_v23  ;;  %1140 = vmatpush1.bf16.msra.mxu1 %v7058_v31  ;;  %v7138_v23 = vld [vmem:[#allocation14 + $0x2c] ss:$16 sps:$4 sm:$0xff]  }
 0x118   :  { %1141 = vmatprep.subr.bf16.mxu1 %v7066_v33  ;;  %v7150_v31 = vld [vmem:[#allocation14 + $0x6c] ss:$16 sps:$4 sm:$0xff]   ;;  %v7148_v33 = vld [vmem:[#allocation14 + $0x68] ss:$16 sps:$4 sm:$0xff]  }
 0x11a   :  { %1056 = vmatpush1.bf16.msra.mxu0 %v7037_v28  ;;  %v7129_v28 = vld [vmem:[#allocation14 + $0x84] ss:$16 sps:$4 sm:$0xff]  }
 0x11b   :  { %1057 = vmatprep.subr.bf16.mxu0 %v7045_v30  ;;  %1142 = vmatpush1.bf16.msra.mxu1 %v7064_v35  ;;  %v7127_v30 = vld [vmem:[#allocation14 + $0x80] ss:$16 sps:$4 sm:$0xff]   ;;  %v7156_v35 = vld [vmem:[#allocation14 + $0x8c] ss:$16 sps:$4 sm:$0xff]  }
 0x11c   :  { %1143 = vmatprep.subr.bf16.mxu1 %v7072_v37  ;;  %v7154_v37 = vld [vmem:[#allocation14 + $0x88] ss:$16 sps:$4 sm:$0xff]  }
 0x11e   :  { %1058 = vmatpush1.bf16.msra.mxu0 %v7043_v32  ;;  %v7135_v32 = vld [vmem:[#allocation14 + $0xa4] ss:$16 sps:$4 sm:$0xff]  }
 0x11f   :  { %1059 = vmatprep.subr.bf16.mxu0 %v7051_v34  ;;  %1144 = vmatpush1.bf16.msra.mxu1 %v7070_v39  ;;  %v7133_v34 = vld [vmem:[#allocation14 + $0xa0] ss:$16 sps:$4 sm:$0xff]   ;;  %v7162_v39 = vld [vmem:[#allocation14 + $0xac] ss:$16 sps:$4 sm:$0xff]  }
 0x120   :  { %1145 = vmatprep.subr.bf16.mxu1 %v7078_v41  ;;  %v7160_v41 = vld [vmem:[#allocation14 + $0xa8] ss:$16 sps:$4 sm:$0xff]  }
 0x122   :  { %1060 = vmatpush1.bf16.msra.mxu0 %v7049_v36  ;;  %v7141_v36 = vld [vmem:[#allocation14 + $0xc4] ss:$16 sps:$4 sm:$0xff]  }
 0x123   :  { %1061 = vmatprep.subr.bf16.mxu0 %v7057_v38  ;;  %1146 = vmatpush1.bf16.msra.mxu1 %v7076_v43  ;;  %v7139_v38 = vld [vmem:[#allocation14 + $0xc0] ss:$16 sps:$4 sm:$0xff]   ;;  %v7168_v43 = vld [vmem:[#allocation14 + $0xcc] ss:$16 sps:$4 sm:$0xff]  }
 0x124   :  { %1147 = vmatprep.subr.bf16.mxu1 %v7084_v45  ;;  %v7166_v45 = vld [vmem:[#allocation14 + $0xc8] ss:$16 sps:$4 sm:$0xff]  }
 0x126   :  { %1062 = vmatpush1.bf16.msra.mxu0 %v7055_v40  ;;  %v7147_v40 = vld [vmem:[#allocation14 + $0xe4] ss:$16 sps:$4 sm:$0xff]  }
 0x127   :  { %1063 = vmatprep.subr.bf16.mxu0 %v7063_v42  ;;  %1148 = vmatpush1.bf16.msra.mxu1 %v7082_v47  ;;  %v7145_v42 = vld [vmem:[#allocation14 + $0xe0] ss:$16 sps:$4 sm:$0xff]   ;;  %v7174_v47 = vld [vmem:[#allocation14 + $0xec] ss:$16 sps:$4 sm:$0xff]  }
 0x128   :  { %1149 = vmatprep.subr.bf16.mxu1 %v7090_v49  ;;  %v7172_v49 = vld [vmem:[#allocation14 + $0xe8] ss:$16 sps:$4 sm:$0xff]  }
 0x12a   :  { %1064 = vmatpush1.bf16.msra.mxu0 %v7061_v44  ;;  %v7153_v44 = vld [vmem:[#allocation14 + $0x104] ss:$16 sps:$4 sm:$0xff]  }
 0x12b   :  { %1065 = vmatprep.subr.bf16.mxu0 %v7069_v46  ;;  %1150 = vmatpush1.bf16.msra.mxu1 %v7088_v51  ;;  %v7151_v46 = vld [vmem:[#allocation14 + $0x100] ss:$16 sps:$4 sm:$0xff]   ;;  %v7180_v51 = vld [vmem:[#allocation14 + $0x10c] ss:$16 sps:$4 sm:$0xff]  }
 0x12c   :  { %1151 = vmatprep.subr.bf16.mxu1 %v7096_v53  ;;  %v7178_v53 = vld [vmem:[#allocation14 + $0x108] ss:$16 sps:$4 sm:$0xff]  }
 0x12e   :  { %1066 = vmatpush1.bf16.msra.mxu0 %v7067_v48  ;;  %v7159_v48 = vld [vmem:[#allocation14 + $0x124] ss:$16 sps:$4 sm:$0xff]  }
 0x12f   :  { %1067 = vmatprep.subr.bf16.mxu0 %v7075_v50  ;;  %1152 = vmatpush1.bf16.msra.mxu1 %v7094_v55  ;;  %v7157_v50 = vld [vmem:[#allocation14 + $0x120] ss:$16 sps:$4 sm:$0xff]   ;;  %v7186_v55 = vld [vmem:[#allocation14 + $0x12c] ss:$16 sps:$4 sm:$0xff]  }
 0x130   :  { %1153 = vmatprep.subr.bf16.mxu1 %v7102_v57  ;;  %v7184_v57 = vld [vmem:[#allocation14 + $0x128] ss:$16 sps:$4 sm:$0xff]  }
 0x132   :  { %1068 = vmatpush1.bf16.msra.mxu0 %v7073_v52  ;;  %v7165_v52 = vld [vmem:[#allocation14 + $0x144] ss:$16 sps:$4 sm:$0xff]  }
 0x133   :  { %1069 = vmatprep.subr.bf16.mxu0 %v7081_v54  ;;  %1154 = vmatpush1.bf16.msra.mxu1 %v7100_v59  ;;  %v7163_v54 = vld [vmem:[#allocation14 + $0x140] ss:$16 sps:$4 sm:$0xff]   ;;  %v7192_v59 = vld [vmem:[#allocation14 + $0x14c] ss:$16 sps:$4 sm:$0xff]  }
 0x134   :  { %1155 = vmatprep.subr.bf16.mxu1 %v7108_v61  ;;  %v7190_v61 = vld [vmem:[#allocation14 + $0x148] ss:$16 sps:$4 sm:$0xff]  }
 0x136   :  { %1070 = vmatpush1.bf16.msra.mxu0 %v7079_v56  ;;  %v7171_v56 = vld [vmem:[#allocation14 + $0x164] ss:$16 sps:$4 sm:$0xff]  }
 0x137   :  { %1071 = vmatprep.subr.bf16.mxu0 %v7087_v58  ;;  %1156 = vmatpush1.bf16.msra.mxu1 %v7106_v63  ;;  %v7169_v58 = vld [vmem:[#allocation14 + $0x160] ss:$16 sps:$4 sm:$0xff]   ;;  %v7198_v63 = vld [vmem:[#allocation14 + $0x16c] ss:$16 sps:$4 sm:$0xff]  }
 0x138   :  { %1157 = vmatprep.subr.bf16.mxu1 %v7114_v1  ;;  %v7196_v1 = vld [vmem:[#allocation14 + $0x168] ss:$16 sps:$4 sm:$0xff]  }
 0x13a   :  { %1072 = vmatpush1.bf16.msra.mxu0 %v7085_v60  ;;  %v7177_v60 = vld [vmem:[#allocation14 + $0x184] ss:$16 sps:$4 sm:$0xff]  }
 0x13b   :  { %1073 = vmatprep.subr.bf16.mxu0 %v7093_v62  ;;  %1158 = vmatpush1.bf16.msra.mxu1 %v7112_v5  ;;  %v7175_v62 = vld [vmem:[#allocation14 + $0x180] ss:$16 sps:$4 sm:$0xff]   ;;  %v7202_v5 = vld [vmem:[#allocation14 + $0x188] ss:$16 sps:$4 sm:$0xff]  }
 0x13c   :  { %1159 = vmatprep.subr.bf16.mxu1 %v7120_v7  ;;  %v7210_v7 = vld [vmem:[#allocation14 + $0x1ac] ss:$16 sps:$4 sm:$0xff]  }
 0x13e   :  { %1074 = vmatpush1.bf16.msra.mxu0 %v7091_v0  ;;  %v7183_v0 = vld [vmem:[#allocation14 + $0x1a4] ss:$16 sps:$4 sm:$0xff]  }
 0x13f   :  { %1075 = vmatprep.subr.bf16.mxu0 %v7099_v2  ;;  %1160 = vmatpush1.bf16.msra.mxu1 %v7118_v12  ;;  %v7181_v2 = vld [vmem:[#allocation14 + $0x1a0] ss:$16 sps:$4 sm:$0xff]   ;;  %v7208_v12 = vld [vmem:[#allocation14 + $0x1a8] ss:$16 sps:$4 sm:$0xff]  }
 0x140   :  { %1161 = vmatprep.subr.bf16.mxu1 %v7126_v14  ;;  %v7216_v14 = vld [vmem:[#allocation14 + $0x1cc] ss:$16 sps:$4 sm:$0xff]  }
 0x142   :  { %1076 = vmatpush1.bf16.msra.mxu0 %v7097_v3  ;;  %v7204_v3 = vld [vmem:[#allocation14 + $0x18c] ss:$16 sps:$4 sm:$0xff]  }
 0x143   :  { %1964 = vmatprep.subr.bf16.mxu0 %v7105_v8  ;;  %1162 = vmatpush1.bf16.msra.mxu1 %v7124_v17  ;;  %v7195_v8 = vld [vmem:[#allocation14 + $0x1e4] ss:$16 sps:$4 sm:$0xff]  }
 0x144   :  { %2050 = vmatprep.subr.bf16.mxu1 %v7132_v19  ;;  %v7199_v19 = vld [vmem:[#allocation14 + $0x200] ss:$16 sps:$4 sm:$0xff]  }
 0x145   :  { %1078 = vmatmul.mubr.bf16.vlgmr.msra.gmra.mrb[0].mxu0 %v198_v11 }
 0x146   :  { %1965 = vmatpush1.bf16.msra.mxu0 %v7103_v13  ;;  %1996 = vmatprep.mubr.bf16.mxu0 %v209_v16  ;;  %v204_v13 = vld [vmem:[#allocation10 + $0x20] sm:$0xff] }
 0x147   :  { %1966 = vmatprep.subr.bf16.mxu0 %v7111_v15  ;;  %1164 = vmatmul.mubr.bf16.vlgmr.msra.gmra.mrb[0].mxu1 %v198_v11  ;;  %v200_v11 = vld [vmem:[#allocation10] sm:$0xff]  ;;  %v203_v15 = vld [vmem:[#allocation10 + $0x18] sm:$0xff] }
 0x148   :  { %2051 = vmatpush1.bf16.msra.mxu1 %v7130_v21  ;;  %2082 = vmatprep.mubr.bf16.mxu1 %v209_v16  ;;  %v207_v16 = vld [vmem:[#allocation10 + $0x38] sm:$0xff]  ;;  %v208_v17 = vpack.c.bf16 %v204_v13, %v200_v11  ;;  %v7207_v21 = vld [vmem:[#allocation14 + $0x224] ss:$16 sps:$4 sm:$0xff]   ;;  %v7283_v11 = vld [vmem:[#allocation14 + $0x3c0] ss:$16 sps:$4 sm:$0xff]  }
 0x149   :  { %2052 = vmatprep.subr.bf16.mxu1 %v7138_v23  ;;  %v7220_v23 = vld [vmem:[#allocation14 + $0x1e8] ss:$16 sps:$4 sm:$0xff]   ;;  %v7306_v13 = vld [vmem:[#allocation14 + $0x3ac] ss:$16 sps:$4 sm:$0xff]  }
 0x14a   :  { %1967 = vmatpush1.bf16.msra.mxu0 %v7109_v18  ;;  %v7214_v18 = vld [vmem:[#allocation14 + $0x1c8] ss:$16 sps:$4 sm:$0xff]  }
 0x14b   :  { %1968 = vmatprep.subr.bf16.mxu0 %v7117_v20  ;;  %v7222_v20 = vld [vmem:[#allocation14 + $0x1ec] ss:$16 sps:$4 sm:$0xff]  }
 0x14c   :  { %2053 = vmatpush1.bf16.msra.mxu1 %v7136_v25  ;;  %v7228_v25 = vld [vmem:[#allocation14 + $0x20c] ss:$16 sps:$4 sm:$0xff]  }
 0x14d   :  { %2054 = vmatprep.subr.bf16.mxu1 %v7144_v27  ;;  %v7226_v27 = vld [vmem:[#allocation14 + $0x208] ss:$16 sps:$4 sm:$0xff]  }
 0x14e   :  { %1969 = vmatpush1.bf16.msra.mxu0 %v7115_v22  ;;  %v211_v22 = vpack.c.bf16 %v207_v16, %v203_v15  ;;  %v7289_v15 = vld [vmem:[#allocation14 + $0x3e0] ss:$16 sps:$4 sm:$0xff]  }
 0x14f   :  { %1970 = vmatprep.subr.bf16.mxu0 %v7123_v24  ;;  %v7205_v24 = vld [vmem:[#allocation14 + $0x220] ss:$16 sps:$4 sm:$0xff]  }
 0x150   :  { %2055 = vmatpush1.bf16.msra.mxu1 %v7142_v29  ;;  %v7234_v29 = vld [vmem:[#allocation14 + $0x22c] ss:$16 sps:$4 sm:$0xff]   ;;  %v202_v16 = vld [vmem:[#allocation10 + $0x10] sm:$0xff] }
 0x151   :  { %2056 = vmatprep.subr.bf16.mxu1 %v7150_v31  ;;  %v7232_v31 = vld [vmem:[#allocation14 + $0x228] ss:$16 sps:$4 sm:$0xff]  }
 0x152   :  { %1971 = vmatpush1.bf16.msra.mxu0 %v7121_v26  ;;  %v7213_v26 = vld [vmem:[#allocation14 + $0x244] ss:$16 sps:$4 sm:$0xff]  }
 0x153   :  { %1972 = vmatprep.subr.bf16.mxu0 %v7129_v28  ;;  %v7211_v28 = vld [vmem:[#allocation14 + $0x240] ss:$16 sps:$4 sm:$0xff]  }
 0x154   :  { %2057 = vmatpush1.bf16.msra.mxu1 %v7148_v33  ;;  %v7240_v33 = vld [vmem:[#allocation14 + $0x24c] ss:$16 sps:$4 sm:$0xff]  }
 0x155   :  { %2058 = vmatprep.subr.bf16.mxu1 %v7156_v35  ;;  %v7238_v35 = vld [vmem:[#allocation14 + $0x248] ss:$16 sps:$4 sm:$0xff]  }
 0x156   :  { %1973 = vmatpush1.bf16.msra.mxu0 %v7127_v30  ;;  %v7219_v30 = vld [vmem:[#allocation14 + $0x264] ss:$16 sps:$4 sm:$0xff]  }
 0x157   :  { %1974 = vmatprep.subr.bf16.mxu0 %v7135_v32  ;;  %v7217_v32 = vld [vmem:[#allocation14 + $0x260] ss:$16 sps:$4 sm:$0xff]  }
 0x158   :  { %2059 = vmatpush1.bf16.msra.mxu1 %v7154_v37  ;;  %v7246_v37 = vld [vmem:[#allocation14 + $0x26c] ss:$16 sps:$4 sm:$0xff]  }
 0x159   :  { %2060 = vmatprep.subr.bf16.mxu1 %v7162_v39  ;;  %v7244_v39 = vld [vmem:[#allocation14 + $0x268] ss:$16 sps:$4 sm:$0xff]  }
 0x15a   :  { %1975 = vmatpush1.bf16.msra.mxu0 %v7133_v34  ;;  %v7225_v34 = vld [vmem:[#allocation14 + $0x284] ss:$16 sps:$4 sm:$0xff]  }
 0x15b   :  { %1976 = vmatprep.subr.bf16.mxu0 %v7141_v36  ;;  %v7223_v36 = vld [vmem:[#allocation14 + $0x280] ss:$16 sps:$4 sm:$0xff]  }
 0x15c   :  { %2061 = vmatpush1.bf16.msra.mxu1 %v7160_v41  ;;  %v7252_v41 = vld [vmem:[#allocation14 + $0x28c] ss:$16 sps:$4 sm:$0xff]  }
 0x15d   :  { %2062 = vmatprep.subr.bf16.mxu1 %v7168_v43  ;;  %v7250_v43 = vld [vmem:[#allocation14 + $0x288] ss:$16 sps:$4 sm:$0xff]  }
 0x15e   :  { %1977 = vmatpush1.bf16.msra.mxu0 %v7139_v38  ;;  %v7231_v38 = vld [vmem:[#allocation14 + $0x2a4] ss:$16 sps:$4 sm:$0xff]  }
 0x15f   :  { %1978 = vmatprep.subr.bf16.mxu0 %v7147_v40  ;;  %v7229_v40 = vld [vmem:[#allocation14 + $0x2a0] ss:$16 sps:$4 sm:$0xff]  }
 0x160   :  { %2063 = vmatpush1.bf16.msra.mxu1 %v7166_v45  ;;  %v7258_v45 = vld [vmem:[#allocation14 + $0x2ac] ss:$16 sps:$4 sm:$0xff]  }
 0x161   :  { %2064 = vmatprep.subr.bf16.mxu1 %v7174_v47  ;;  %v7256_v47 = vld [vmem:[#allocation14 + $0x2a8] ss:$16 sps:$4 sm:$0xff]  }
 0x162   :  { %1979 = vmatpush1.bf16.msra.mxu0 %v7145_v42  ;;  %v7237_v42 = vld [vmem:[#allocation14 + $0x2c4] ss:$16 sps:$4 sm:$0xff]  }
 0x163   :  { %1980 = vmatprep.subr.bf16.mxu0 %v7153_v44  ;;  %v7235_v44 = vld [vmem:[#allocation14 + $0x2c0] ss:$16 sps:$4 sm:$0xff]  }
 0x164   :  { %2065 = vmatpush1.bf16.msra.mxu1 %v7172_v49  ;;  %v7264_v49 = vld [vmem:[#allocation14 + $0x2cc] ss:$16 sps:$4 sm:$0xff]  }
 0x165   :  { %2066 = vmatprep.subr.bf16.mxu1 %v7180_v51  ;;  %v7262_v51 = vld [vmem:[#allocation14 + $0x2c8] ss:$16 sps:$4 sm:$0xff]  }
 0x166   :  { %1981 = vmatpush1.bf16.msra.mxu0 %v7151_v46  ;;  %v7243_v46 = vld [vmem:[#allocation14 + $0x2e4] ss:$16 sps:$4 sm:$0xff]  }
 0x167   :  { %1982 = vmatprep.subr.bf16.mxu0 %v7159_v48  ;;  %v7241_v48 = vld [vmem:[#allocation14 + $0x2e0] ss:$16 sps:$4 sm:$0xff]  }
 0x168   :  { %2067 = vmatpush1.bf16.msra.mxu1 %v7178_v53  ;;  %v7270_v53 = vld [vmem:[#allocation14 + $0x2ec] ss:$16 sps:$4 sm:$0xff]  }
 0x169   :  { %2068 = vmatprep.subr.bf16.mxu1 %v7186_v55  ;;  %v7268_v55 = vld [vmem:[#allocation14 + $0x2e8] ss:$16 sps:$4 sm:$0xff]  }
 0x16a   :  { %1983 = vmatpush1.bf16.msra.mxu0 %v7157_v50  ;;  %v7249_v50 = vld [vmem:[#allocation14 + $0x304] ss:$16 sps:$4 sm:$0xff]  }
 0x16b   :  { %1984 = vmatprep.subr.bf16.mxu0 %v7165_v52  ;;  %v7247_v52 = vld [vmem:[#allocation14 + $0x300] ss:$16 sps:$4 sm:$0xff]  }
 0x16c   :  { %2069 = vmatpush1.bf16.msra.mxu1 %v7184_v57  ;;  %v7276_v57 = vld [vmem:[#allocation14 + $0x30c] ss:$16 sps:$4 sm:$0xff]  }
 0x16d   :  { %2070 = vmatprep.subr.bf16.mxu1 %v7192_v59  ;;  %v7259_v59 = vld [vmem:[#allocation14 + $0x340] ss:$16 sps:$4 sm:$0xff]  }
 0x16e   :  { %1985 = vmatpush1.bf16.msra.mxu0 %v7163_v54  ;;  %v7255_v54 = vld [vmem:[#allocation14 + $0x324] ss:$16 sps:$4 sm:$0xff]  }
 0x16f   :  { %1986 = vmatprep.subr.bf16.mxu0 %v7171_v56  ;;  %v7253_v56 = vld [vmem:[#allocation14 + $0x320] ss:$16 sps:$4 sm:$0xff]  }
 0x170   :  { %2071 = vmatpush1.bf16.msra.mxu1 %v7190_v61  ;;  %v7282_v61 = vld [vmem:[#allocation14 + $0x32c] ss:$16 sps:$4 sm:$0xff]  }
 0x171   :  { %2072 = vmatprep.subr.bf16.mxu1 %v7198_v63  ;;  %v7265_v63 = vld [vmem:[#allocation14 + $0x360] ss:$16 sps:$4 sm:$0xff]  }
 0x172   :  { %1987 = vmatpush1.bf16.msra.mxu0 %v7169_v58  ;;  %v7261_v58 = vld [vmem:[#allocation14 + $0x344] ss:$16 sps:$4 sm:$0xff]  }
 0x173   :  { %1988 = vmatprep.subr.bf16.mxu0 %v7177_v60  ;;  %v7274_v60 = vld [vmem:[#allocation14 + $0x308] ss:$16 sps:$4 sm:$0xff]  }
 0x174   :  { %2073 = vmatpush1.bf16.msra.mxu1 %v7196_v1  ;;  %v7288_v1 = vld [vmem:[#allocation14 + $0x34c] ss:$16 sps:$4 sm:$0xff]  }
 0x175   :  { %2074 = vmatprep.subr.bf16.mxu1 %v7204_v3  ;;  %v7271_v3 = vld [vmem:[#allocation14 + $0x380] ss:$16 sps:$4 sm:$0xff]  }
 0x176   :  { %1989 = vmatpush1.bf16.msra.mxu0 %v7175_v62  ;;  %v7267_v62 = vld [vmem:[#allocation14 + $0x364] ss:$16 sps:$4 sm:$0xff]  }
 0x177   :  { %1990 = vmatprep.subr.bf16.mxu0 %v7183_v0  ;;  %v7280_v0 = vld [vmem:[#allocation14 + $0x328] ss:$16 sps:$4 sm:$0xff]  }
 0x178   :  { %2075 = vmatpush1.bf16.msra.mxu1 %v7202_v5  ;;  %v7294_v5 = vld [vmem:[#allocation14 + $0x36c] ss:$16 sps:$4 sm:$0xff]  }
 0x179   :  { %2076 = vmatprep.subr.bf16.mxu1 %v7210_v7  ;;  %v7277_v7 = vld [vmem:[#allocation14 + $0x3a0] ss:$16 sps:$4 sm:$0xff]  }
 0x17a   :  { %1991 = vmatpush1.bf16.msra.mxu0 %v7181_v2  ;;  %v7273_v2 = vld [vmem:[#allocation14 + $0x384] ss:$16 sps:$4 sm:$0xff]  }
 0x17b   :  { %1992 = vmatprep.subr.bf16.mxu0 %v7189_v4  ;;  %v7286_v4 = vld [vmem:[#allocation14 + $0x348] ss:$16 sps:$4 sm:$0xff]  }
 0x17c   :  { %2077 = vmatpush1.bf16.msra.mxu1 %v7208_v12  ;;  %v7298_v12 = vld [vmem:[#allocation14 + $0x388] ss:$16 sps:$4 sm:$0xff]  }
 0x17d   :  { %2078 = vmatprep.subr.bf16.mxu1 %v7216_v14  ;;  %v7291_v14 = vld [vmem:[#allocation14 + $0x3e4] ss:$16 sps:$4 sm:$0xff]  }
 0x17e   :  { %1993 = vmatpush1.bf16.msra.mxu0 %v7187_v6  ;;  %v7279_v6 = vld [vmem:[#allocation14 + $0x3a4] ss:$16 sps:$4 sm:$0xff]  }
 0x17f   :  { %1994 = vmatprep.subr.bf16.mxu0 %v7195_v8  ;;  %v7292_v8 = vld [vmem:[#allocation14 + $0x368] ss:$16 sps:$4 sm:$0xff]  }
 0x180   :  { %2079 = vmatpush1.bf16.msra.mxu1 %v7214_v18  ;;  %v7304_v18 = vld [vmem:[#allocation14 + $0x3a8] ss:$16 sps:$4 sm:$0xff]  }
 0x181   :  { %2080 = vmatprep.subr.bf16.mxu1 %v7222_v20  ;;  %v7297_v20 = vld [vmem:[#allocation11 + $0x4] ss:$16 sps:$4 sm:$0xff]  }
 0x182   :  { %1995 = vmatpush1.bf16.msra.mxu0 %v7193_v9  ;;  %v7300_v9 = vld [vmem:[#allocation14 + $0x38c] ss:$16 sps:$4 sm:$0xff]  }
 0x183   :  { %2007 = vmatprep.subr.bf16.mxu0 %v7201_v10  ;;  %v7285_v10 = vld [vmem:[#allocation14 + $0x3c4] ss:$16 sps:$4 sm:$0xff]  }
 0x184   :  { %2081 = vmatpush1.bf16.msra.mxu1 %v7220_v23 }
 0x185   :  { %1997 = vmatmul.mubr.bf16.vlgmr.msra.gmra.mrb[4].mxu0 %v208_v17  ;;  %2093 = vmatprep.subr.bf16.mxu1 %v7228_v25  ;;  %v7310_v25 = vld [vmem:[#allocation14 + $0x3c8] ss:$16 sps:$4 sm:$0xff]  }
 0x186   :  { %2008 = vmatpush1.bf16.msra.mxu0 %v7199_v19  ;;  %2039 = vmatprep.mubr.bf16.mxu0 %v211_v22  ;;  %v7312_v19 = vld [vmem:[#allocation14 + $0x3cc] ss:$16 sps:$4 sm:$0xff]  }
 0x187   :  { %2009 = vmatprep.subr.bf16.mxu0 %v7207_v21  ;;  %2083 = vmatmul.mubr.bf16.vlgmr.msra.gmra.mrb[4].mxu1 %v208_v17  ;;  %v206_v17 = vld [vmem:[#allocation10 + $0x30] sm:$0xff]  ;;  %v2153_v21 = vld [vmem:[#allocation5 + $0x8] sm:$0xff] }
 0x188   :  { %2094 = vmatpush1.bf16.msra.mxu1 %v7226_v27  ;;  %2125 = vmatprep.mubr.bf16.mxu1 %v211_v22  ;;  %v2157_v22 = vld [vmem:[#allocation5 + $0x28] sm:$0xff]  ;;  %v210_v23 = vpack.c.bf16 %v206_v17, %v202_v16  ;;  %v7303_v27 = vld [vmem:[#allocation11 + $0x24] ss:$16 sps:$4 sm:$0xff]  }
 0x189   :  { %2095 = vmatprep.subr.bf16.mxu1 %v7234_v29  ;;  %v7301_v29 = vld [vmem:[#allocation11 + $0x20] ss:$16 sps:$4 sm:$0xff]   ;;  %v7381_v16 = vld [vmem:[#allocation11 + $0x1c4] ss:$16 sps:$4 sm:$0xff]   ;;  %v7394_v17 = vld [vmem:[#allocation11 + $0x188] ss:$16 sps:$4 sm:$0xff]  }
 0x18a   :  { %2010 = vmatpush1.bf16.msra.mxu0 %v7205_v24  ;;  %v7295_v24 = vld [vmem:[#allocation11] ss:$16 sps:$4 sm:$0xff]  }
 0x18b   :  { %2011 = vmatprep.subr.bf16.mxu0 %v7213_v26  ;;  %v7318_v26 = vld [vmem:[#allocation14 + $0x3ec] ss:$16 sps:$4 sm:$0xff]  }
 0x18c   :  { %2096 = vmatpush1.bf16.msra.mxu1 %v7232_v31  ;;  %v7324_v31 = vld [vmem:[#allocation11 + $0xc] ss:$16 sps:$4 sm:$0xff]  }
 0x18d   :  { %2097 = vmatprep.subr.bf16.mxu1 %v7240_v33  ;;  %v7307_v33 = vld [vmem:[#allocation11 + $0x40] ss:$16 sps:$4 sm:$0xff]  }
 0x18e   :  { %2012 = vmatpush1.bf16.msra.mxu0 %v7211_v28  ;;  %v2161_v28 = vpack.c.bf16 %v2157_v22, %v2153_v21  ;;  %v7385_v21 = vld [vmem:[#allocation11 + $0x1e0] ss:$16 sps:$4 sm:$0xff]   ;;  %v7400_v22 = vld [vmem:[#allocation11 + $0x1a8] ss:$16 sps:$4 sm:$0xff]  }
 0x18f   :  { %2013 = vmatprep.subr.bf16.mxu0 %v7219_v30  ;;  %v7316_v30 = vld [vmem:[#allocation14 + $0x3e8] ss:$16 sps:$4 sm:$0xff]  }
 0x190   :  { %2098 = vmatpush1.bf16.msra.mxu1 %v7238_v35  ;;  %v7330_v35 = vld [vmem:[#allocation11 + $0x2c] ss:$16 sps:$4 sm:$0xff]  }
 0x191   :  { %2099 = vmatprep.subr.bf16.mxu1 %v7246_v37  ;;  %v7328_v37 = vld [vmem:[#allocation11 + $0x28] ss:$16 sps:$4 sm:$0xff]  }
 0x192   :  { %2014 = vmatpush1.bf16.msra.mxu0 %v7217_v32  ;;  %v7309_v32 = vld [vmem:[#allocation11 + $0x44] ss:$16 sps:$4 sm:$0xff]  }
 0x193   :  { %2015 = vmatprep.subr.bf16.mxu0 %v7225_v34  ;;  %v7322_v34 = vld [vmem:[#allocation11 + $0x8] ss:$16 sps:$4 sm:$0xff]  }
 0x194   :  { %2100 = vmatpush1.bf16.msra.mxu1 %v7244_v39  ;;  %v7336_v39 = vld [vmem:[#allocation11 + $0x4c] ss:$16 sps:$4 sm:$0xff]  }
 0x195   :  { %2101 = vmatprep.subr.bf16.mxu1 %v7252_v41  ;;  %v7334_v41 = vld [vmem:[#allocation11 + $0x48] ss:$16 sps:$4 sm:$0xff]  }
 0x196   :  { %2016 = vmatpush1.bf16.msra.mxu0 %v7223_v36  ;;  %v7315_v36 = vld [vmem:[#allocation11 + $0x64] ss:$16 sps:$4 sm:$0xff]  }
 0x197   :  { %2017 = vmatprep.subr.bf16.mxu0 %v7231_v38  ;;  %v7313_v38 = vld [vmem:[#allocation11 + $0x60] ss:$16 sps:$4 sm:$0xff]  }
 0x198   :  { %2102 = vmatpush1.bf16.msra.mxu1 %v7250_v43  ;;  %v7342_v43 = vld [vmem:[#allocation11 + $0x6c] ss:$16 sps:$4 sm:$0xff]  }
 0x199   :  { %2103 = vmatprep.subr.bf16.mxu1 %v7258_v45  ;;  %v7340_v45 = vld [vmem:[#allocation11 + $0x68] ss:$16 sps:$4 sm:$0xff]  }
 0x19a   :  { %2018 = vmatpush1.bf16.msra.mxu0 %v7229_v40  ;;  %v7321_v40 = vld [vmem:[#allocation11 + $0x84] ss:$16 sps:$4 sm:$0xff]  }
 0x19b   :  { %2019 = vmatprep.subr.bf16.mxu0 %v7237_v42  ;;  %v7319_v42 = vld [vmem:[#allocation11 + $0x80] ss:$16 sps:$4 sm:$0xff]  }
 0x19c   :  { %2104 = vmatpush1.bf16.msra.mxu1 %v7256_v47  ;;  %v7348_v47 = vld [vmem:[#allocation11 + $0x8c] ss:$16 sps:$4 sm:$0xff]  }
 0x19d   :  { %2105 = vmatprep.subr.bf16.mxu1 %v7264_v49  ;;  %v7346_v49 = vld [vmem:[#allocation11 + $0x88] ss:$16 sps:$4 sm:$0xff]  }
 0x19e   :  { %2020 = vmatpush1.bf16.msra.mxu0 %v7235_v44  ;;  %v7327_v44 = vld [vmem:[#allocation11 + $0xa4] ss:$16 sps:$4 sm:$0xff]  }
 0x19f   :  { %2021 = vmatprep.subr.bf16.mxu0 %v7243_v46  ;;  %v7325_v46 = vld [vmem:[#allocation11 + $0xa0] ss:$16 sps:$4 sm:$0xff]  }
 0x1a0   :  { %2106 = vmatpush1.bf16.msra.mxu1 %v7262_v51  ;;  %v7354_v51 = vld [vmem:[#allocation11 + $0xac] ss:$16 sps:$4 sm:$0xff]  }
 0x1a1   :  { %2107 = vmatprep.subr.bf16.mxu1 %v7270_v53  ;;  %v7352_v53 = vld [vmem:[#allocation11 + $0xa8] ss:$16 sps:$4 sm:$0xff]  }
 0x1a2   :  { %2022 = vmatpush1.bf16.msra.mxu0 %v7241_v48  ;;  %v7333_v48 = vld [vmem:[#allocation11 + $0xc4] ss:$16 sps:$4 sm:$0xff]  }
 0x1a3   :  { %2023 = vmatprep.subr.bf16.mxu0 %v7249_v50  ;;  %v7331_v50 = vld [vmem:[#allocation11 + $0xc0] ss:$16 sps:$4 sm:$0xff]  }
 0x1a4   :  { %2108 = vmatpush1.bf16.msra.mxu1 %v7268_v55  ;;  %v7360_v55 = vld [vmem:[#allocation11 + $0xcc] ss:$16 sps:$4 sm:$0xff]  }
 0x1a5   :  { %2109 = vmatprep.subr.bf16.mxu1 %v7276_v57  ;;  %v7358_v57 = vld [vmem:[#allocation11 + $0xc8] ss:$16 sps:$4 sm:$0xff]  }
 0x1a6   :  { %2024 = vmatpush1.bf16.msra.mxu0 %v7247_v52  ;;  %v7339_v52 = vld [vmem:[#allocation11 + $0xe4] ss:$16 sps:$4 sm:$0xff]  }
 0x1a7   :  { %2025 = vmatprep.subr.bf16.mxu0 %v7255_v54  ;;  %v7337_v54 = vld [vmem:[#allocation11 + $0xe0] ss:$16 sps:$4 sm:$0xff]  }
 0x1a8   :  { %2110 = vmatpush1.bf16.msra.mxu1 %v7274_v60  ;;  %v7351_v60 = vld [vmem:[#allocation11 + $0x124] ss:$16 sps:$4 sm:$0xff]  }
 0x1a9   :  { %2111 = vmatprep.subr.bf16.mxu1 %v7282_v61  ;;  %v7364_v61 = vld [vmem:[#allocation11 + $0xe8] ss:$16 sps:$4 sm:$0xff]  }
 0x1aa   :  { %2026 = vmatpush1.bf16.msra.mxu0 %v7253_v56  ;;  %v7345_v56 = vld [vmem:[#allocation11 + $0x104] ss:$16 sps:$4 sm:$0xff]  }
 0x1ab   :  { %2027 = vmatprep.subr.bf16.mxu0 %v7261_v58  ;;  %v7343_v58 = vld [vmem:[#allocation11 + $0x100] ss:$16 sps:$4 sm:$0xff]  }
 0x1ac   :  { %2112 = vmatpush1.bf16.msra.mxu1 %v7280_v0  ;;  %v7357_v0 = vld [vmem:[#allocation11 + $0x144] ss:$16 sps:$4 sm:$0xff]  }
 0x1ad   :  { %2113 = vmatprep.subr.bf16.mxu1 %v7288_v1  ;;  %v7370_v1 = vld [vmem:[#allocation11 + $0x108] ss:$16 sps:$4 sm:$0xff]  }
 0x1ae   :  { %2028 = vmatpush1.bf16.msra.mxu0 %v7259_v59  ;;  %v7366_v59 = vld [vmem:[#allocation11 + $0xec] ss:$16 sps:$4 sm:$0xff]  }
 0x1af   :  { %2029 = vmatprep.subr.bf16.mxu0 %v7267_v62  ;;  %v7349_v62 = vld [vmem:[#allocation11 + $0x120] ss:$16 sps:$4 sm:$0xff]  }
 0x1b0   :  { %2114 = vmatpush1.bf16.msra.mxu1 %v7286_v4  ;;  %v7363_v4 = vld [vmem:[#allocation11 + $0x164] ss:$16 sps:$4 sm:$0xff]  }
 0x1b1   :  { %2115 = vmatprep.subr.bf16.mxu1 %v7294_v5  ;;  %v7376_v5 = vld [vmem:[#allocation11 + $0x128] ss:$16 sps:$4 sm:$0xff]  }
 0x1b2   :  { %2030 = vmatpush1.bf16.msra.mxu0 %v7265_v63  ;;  %v7372_v63 = vld [vmem:[#allocation11 + $0x10c] ss:$16 sps:$4 sm:$0xff]  }
 0x1b3   :  { %2031 = vmatprep.subr.bf16.mxu0 %v7273_v2  ;;  %v7355_v2 = vld [vmem:[#allocation11 + $0x140] ss:$16 sps:$4 sm:$0xff]  }
 0x1b4   :  { %2116 = vmatpush1.bf16.msra.mxu1 %v7292_v8  ;;  %v7369_v8 = vld [vmem:[#allocation11 + $0x184] ss:$16 sps:$4 sm:$0xff]  }
 0x1b5   :  { %2117 = vmatprep.subr.bf16.mxu1 %v7300_v9  ;;  %v7382_v9 = vld [vmem:[#allocation11 + $0x148] ss:$16 sps:$4 sm:$0xff]  }
 0x1b6   :  { %2032 = vmatpush1.bf16.msra.mxu0 %v7271_v3  ;;  %v7378_v3 = vld [vmem:[#allocation11 + $0x12c] ss:$16 sps:$4 sm:$0xff]  }
 0x1b7   :  { %2033 = vmatprep.subr.bf16.mxu0 %v7279_v6  ;;  %v7361_v6 = vld [vmem:[#allocation11 + $0x160] ss:$16 sps:$4 sm:$0xff]  }
 0x1b8   :  { %2118 = vmatpush1.bf16.msra.mxu1 %v7298_v12  ;;  %v7375_v12 = vld [vmem:[#allocation11 + $0x1a4] ss:$16 sps:$4 sm:$0xff]  }
 0x1b9   :  { %2119 = vmatprep.subr.bf16.mxu1 %v7306_v13  ;;  %v7388_v13 = vld [vmem:[#allocation11 + $0x168] ss:$16 sps:$4 sm:$0xff]  }
 0x1ba   :  { %2034 = vmatpush1.bf16.msra.mxu0 %v7277_v7  ;;  %v7384_v7 = vld [vmem:[#allocation11 + $0x14c] ss:$16 sps:$4 sm:$0xff]  }
 0x1bb   :  { %2035 = vmatprep.subr.bf16.mxu0 %v7285_v10  ;;  %v7367_v10 = vld [vmem:[#allocation11 + $0x180] ss:$16 sps:$4 sm:$0xff]  }
 0x1bc   :  { %2120 = vmatpush1.bf16.msra.mxu1 %v7304_v18  ;;  %v7379_v18 = vld [vmem:[#allocation11 + $0x1c0] ss:$16 sps:$4 sm:$0xff]  }
 0x1bd   :  { %2121 = vmatprep.subr.bf16.mxu1 %v7312_v19  ;;  %v7402_v19 = vld [vmem:[#allocation11 + $0x1ac] ss:$16 sps:$4 sm:$0xff]  }
 0x1be   :  { %2036 = vmatpush1.bf16.msra.mxu0 %v7283_v11  ;;  %v7390_v11 = vld [vmem:[#allocation11 + $0x16c] ss:$16 sps:$4 sm:$0xff]  }
 0x1bf   :  { %2037 = vmatprep.subr.bf16.mxu0 %v7291_v14  ;;  %v7373_v14 = vld [vmem:[#allocation11 + $0x1a0] ss:$16 sps:$4 sm:$0xff]  }
 0x1c0   :  { %2122 = vmatpush1.bf16.msra.mxu1 %v7310_v25  ;;  %v7408_v25 = vld [vmem:[#allocation11 + $0x1cc] ss:$16 sps:$4 sm:$0xff]  }
 0x1c1   :  { %2123 = vmatprep.subr.bf16.mxu1 %v7318_v26  ;;  %v7393_v26 = vld [vmem:[#allocation11 + $0x204] ss:$16 sps:$4 sm:$0xff]  }
 0x1c2   :  { %2038 = vmatpush1.bf16.msra.mxu0 %v7289_v15  ;;  %v7396_v15 = vld [vmem:[#allocation11 + $0x18c] ss:$16 sps:$4 sm:$0xff]  }
 0x1c3   :  { %2954 = vmatprep.subr.bf16.mxu0 %v7297_v20  ;;  %v7387_v20 = vld [vmem:[#allocation11 + $0x1e4] ss:$16 sps:$4 sm:$0xff]  }
 0x1c4   :  { %2124 = vmatpush1.bf16.msra.mxu1 %v7316_v30  ;;  %v7406_v30 = vld [vmem:[#allocation11 + $0x1c8] ss:$16 sps:$4 sm:$0xff]  }
 0x1c5   :  { %2040 = vmatmul.mubr.bf16.vlgmr.msra.gmra.mrb[4].mxu0 %v210_v23  ;;  %3040 = vmatprep.subr.bf16.mxu1 %v7324_v31  ;;  %v7391_v31 = vld [vmem:[#allocation11 + $0x200] ss:$16 sps:$4 sm:$0xff]  }
 0x1c6   :  { %2955 = vmatpush1.bf16.msra.mxu0 %v7295_v24  ;;  %2986 = vmatprep.mubr.bf16.mxu0 %v2161_v28  ;;  %v2156_v24 = vld [vmem:[#allocation5 + $0x20] sm:$0xff] }
 0x1c7   :  { %2956 = vmatprep.subr.bf16.mxu0 %v7303_v27  ;;  %2126 = vmatmul.mubr.bf16.vlgmr.msra.gmra.mrb[4].mxu1 %v210_v23  ;;  %v2152_v23 = vld [vmem:[#allocation5] sm:$0xff]  ;;  %v2155_v27 = vld [vmem:[#allocation5 + $0x18] sm:$0xff] }
 0x1c8   :  { %3041 = vmatpush1.bf16.msra.mxu1 %v7322_v34  ;;  %3072 = vmatprep.mubr.bf16.mxu1 %v2161_v28  ;;  %v2159_v28 = vld [vmem:[#allocation5 + $0x38] sm:$0xff] }
 0x1c9   :  { %3042 = vmatprep.subr.bf16.mxu1 %v7330_v35  ;;  %v2163_v34 = vpack.c.bf16 %v2159_v28, %v2155_v27  ;;  %v7412_v35 = vld [vmem:[#allocation11 + $0x1e8] ss:$16 sps:$4 sm:$0xff]   ;;  %v7439_v27 = vld [vmem:[#allocation11 + $0x300] ss:$16 sps:$4 sm:$0xff]   ;;  %v7462_v28 = vld [vmem:[#allocation11 + $0x2ec] ss:$16 sps:$4 sm:$0xff]  }
 0x1ca   :  { %2957 = vmatpush1.bf16.msra.mxu0 %v7301_v29  ;;  %v2160_v29 = vpack.c.bf16 %v2156_v24, %v2152_v23  ;;  %v7454_v24 = vld [vmem:[#allocation11 + $0x2c8] ss:$16 sps:$4 sm:$0xff]  }
 0x1cb   :  { %2958 = vmatprep.subr.bf16.mxu0 %v7309_v32  ;;  %v7414_v32 = vld [vmem:[#allocation11 + $0x1ec] ss:$16 sps:$4 sm:$0xff]  }
 0x1cc   :  { %3043 = vmatpush1.bf16.msra.mxu1 %v7328_v37  ;;  %v7420_v37 = vld [vmem:[#allocation11 + $0x20c] ss:$16 sps:$4 sm:$0xff]  }
 0x1cd   :  { %3044 = vmatprep.subr.bf16.mxu1 %v7336_v39  ;;  %v7418_v39 = vld [vmem:[#allocation11 + $0x208] ss:$16 sps:$4 sm:$0xff]  }
 0x1ce   :  { %2959 = vmatpush1.bf16.msra.mxu0 %v7307_v33  ;;  %v7399_v33 = vld [vmem:[#allocation11 + $0x224] ss:$16 sps:$4 sm:$0xff]  }
 0x1cf   :  { %2960 = vmatprep.subr.bf16.mxu0 %v7315_v36  ;;  %v7397_v36 = vld [vmem:[#allocation11 + $0x220] ss:$16 sps:$4 sm:$0xff]  }
 0x1d0   :  { %3045 = vmatpush1.bf16.msra.mxu1 %v7334_v41  ;;  %v342_v41 = vlaneseq }
 0x1d1   :  { %3046 = vmatprep.subr.bf16.mxu1 %v7342_v43  ;;  %v7411_v43 = vld [vmem:[#allocation11 + $0x264] ss:$16 sps:$4 sm:$0xff]  }
 0x1d2   :  { %2961 = vmatpush1.bf16.msra.mxu0 %v7313_v38  ;;  %v7405_v38 = vld [vmem:[#allocation11 + $0x244] ss:$16 sps:$4 sm:$0xff]  }
 0x1d3   :  { %2962 = vmatprep.subr.bf16.mxu0 %v7321_v40  ;;  %v7403_v40 = vld [vmem:[#allocation11 + $0x240] ss:$16 sps:$4 sm:$0xff]  }
 0x1d4   :  { %3047 = vmatpush1.bf16.msra.mxu1 %v7340_v45  ;;  %v7409_v45 = vld [vmem:[#allocation11 + $0x260] ss:$16 sps:$4 sm:$0xff]  }
 0x1d5   :  { %3048 = vmatprep.subr.bf16.mxu1 %v7348_v47  ;;  %v7432_v47 = vld [vmem:[#allocation11 + $0x24c] ss:$16 sps:$4 sm:$0xff]  }
 0x1d6   :  { %2963 = vmatpush1.bf16.msra.mxu0 %v7319_v42  ;;  %v7426_v42 = vld [vmem:[#allocation11 + $0x22c] ss:$16 sps:$4 sm:$0xff]  }
 0x1d7   :  { %2964 = vmatprep.subr.bf16.mxu0 %v7327_v44  ;;  %v7424_v44 = vld [vmem:[#allocation11 + $0x228] ss:$16 sps:$4 sm:$0xff]  }
 0x1d8   :  { %3049 = vmatpush1.bf16.msra.mxu1 %v7346_v49  ;;  %v7430_v49 = vld [vmem:[#allocation11 + $0x248] ss:$16 sps:$4 sm:$0xff]  }
 0x1d9   :  { %3050 = vmatprep.subr.bf16.mxu1 %v7354_v51 }
 0x1da   :  { %2965 = vmatpush1.bf16.msra.mxu0 %v7325_v46  ;;  %v343_v46 = vshrl.u32 %v342_v41, 7  ;;  %v7474_v41 = vld [vmem:[#allocation11 + $0x32c] ss:$16 sps:$4 sm:$0xff]  }
 0x1db   :  { %2966 = vmatprep.subr.bf16.mxu0 %v7333_v48  ;;  %v7417_v48 = vld [vmem:[#allocation11 + $0x284] ss:$16 sps:$4 sm:$0xff]  }
 0x1dc   :  { %3051 = vmatpush1.bf16.msra.mxu1 %v7352_v53  ;;  %v8318_v51 = vsub.s32 1, %v343_v46  ;;  %v340_v53 = vld [vmem:[#allocation19] sm:$0xf] }
 0x1dd   :  { %3052 = vmatprep.subr.bf16.mxu1 %v7360_v55  ;;  %v7423_v55 = vld [vmem:[#allocation11 + $0x2a4] ss:$16 sps:$4 sm:$0xff]  }
 0x1de   :  { %2967 = vmatpush1.bf16.msra.mxu0 %v7331_v50  ;;  %v7415_v50 = vld [vmem:[#allocation11 + $0x280] ss:$16 sps:$4 sm:$0xff]  }
 0x1df   :  { %2968 = vmatprep.subr.bf16.mxu0 %v7339_v52  ;;  %v7438_v52 = vld [vmem:[#allocation11 + $0x26c] ss:$16 sps:$4 sm:$0xff]  }
 0x1e0   :  { %3053 = vmatpush1.bf16.msra.mxu1 %v7358_v57  ;;  %v349_v57 = vrot.slane %v340_v53, %v8318_v51 }
 0x1e1   :  { %3054 = vmatprep.subr.bf16.mxu1 %v7366_v59  ;;  %v7444_v59 = vld [vmem:[#allocation11 + $0x28c] ss:$16 sps:$4 sm:$0xff]  }
 0x1e2   :  { %2969 = vmatpush1.bf16.msra.mxu0 %v7337_v54  ;;  %v8320_v54 = vsub.s32 0, %v343_v46 }
 0x1e3   :  { %2970 = vmatprep.subr.bf16.mxu0 %v7345_v56  ;;  %v7436_v56 = vld [vmem:[#allocation11 + $0x268] ss:$16 sps:$4 sm:$0xff]  }
 0x1e4   :  { %3055 = vmatpush1.bf16.msra.mxu1 %v7364_v61  ;;  %v7429_v61 = vld [vmem:[#allocation11 + $0x2c4] ss:$16 sps:$4 sm:$0xff]  }
 0x1e5   :  { %3056 = vmatprep.subr.bf16.mxu1 %v7372_v63  ;;  %v8324_v63 = vsub.s32 2, %v343_v46 }
 0x1e6   :  { %2971 = vmatpush1.bf16.msra.mxu0 %v7343_v58  ;;  %v7421_v58 = vld [vmem:[#allocation11 + $0x2a0] ss:$16 sps:$4 sm:$0xff]  }
 0x1e7   :  { %2972 = vmatprep.subr.bf16.mxu0 %v7351_v60  ;;  %v345_v60 = vrot.slane %v340_v53, %v8320_v54 }
 0x1e8   :  { %3057 = vmatpush1.bf16.msra.mxu1 %v7370_v1  ;;  %v7442_v1 = vld [vmem:[#allocation11 + $0x288] ss:$16 sps:$4 sm:$0xff]  }
 0x1e9   :  { %3058 = vmatprep.subr.bf16.mxu1 %v7378_v3 }
 0x1ea   :  { %2973 = vmatpush1.bf16.msra.mxu0 %v7349_v62 }
 0x1eb   :  { %2974 = vmatprep.subr.bf16.mxu0 %v7357_v0 }
 0x1ec   :  { %3059 = vmatpush1.bf16.msra.mxu1 %v7376_v5  ;;  %v7427_v5 = vld [vmem:[#allocation11 + $0x2c0] ss:$16 sps:$4 sm:$0xff]  }
 0x1ed   :  { %3060 = vmatprep.subr.bf16.mxu1 %v7384_v7 }
 0x1ee   :  { %2975 = vmatpush1.bf16.msra.mxu0 %v7355_v2  ;;  %v8326_v2 = vsub.s32 3, %v343_v46  ;;  %v7465_v46 = vld [vmem:[#allocation11 + $0x384] ss:$16 sps:$4 sm:$0xff]  }
 0x1ef   :  { %2976 = vmatprep.subr.bf16.mxu0 %v7363_v4 }
 0x1f0   :  { %3061 = vmatpush1.bf16.msra.mxu1 %v7382_v9 }
 0x1f1   :  { %3062 = vmatprep.subr.bf16.mxu1 %v7390_v11 }
 0x1f2   :  { %2977 = vmatpush1.bf16.msra.mxu0 %v7361_v6  ;;  %v7450_v6 = vld [vmem:[#allocation11 + $0x2ac] ss:$16 sps:$4 sm:$0xff]  }
 0x1f3   :  { %2978 = vmatprep.subr.bf16.mxu0 %v7369_v8 }
 0x1f4   :  { %3063 = vmatpush1.bf16.msra.mxu1 %v7388_v13 }
 0x1f5   :  { %3064 = vmatprep.subr.bf16.mxu1 %v7396_v15  ;;  %v357_v15 = vrot.slane %v340_v53, %v8326_v2 }
 0x1f6   :  { %2979 = vmatpush1.bf16.msra.mxu0 %v7367_v10  ;;  %v7435_v10 = vld [vmem:[#allocation11 + $0x2e4] ss:$16 sps:$4 sm:$0xff]  }
 0x1f7   :  { %2980 = vmatprep.subr.bf16.mxu0 %v7375_v12  ;;  %v353_v12 = vrot.slane %v340_v53, %v8324_v63  ;;  %v7469_v53 = vld [vmem:[#allocation11 + $0x3a0] ss:$16 sps:$4 sm:$0xff]  }
 0x1f8   :  { %3065 = vmatpush1.bf16.msra.mxu1 %v7394_v17  ;;  %v7433_v17 = vld [vmem:[#allocation11 + $0x2e0] ss:$16 sps:$4 sm:$0xff]  }
 0x1f9   :  { %3066 = vmatprep.subr.bf16.mxu1 %v7402_v19 }
 0x1fa   :  { %2981 = vmatpush1.bf16.msra.mxu0 %v7373_v14  ;;  %v7448_v14 = vld [vmem:[#allocation11 + $0x2a8] ss:$16 sps:$4 sm:$0xff]  }
 0x1fb   :  { %2982 = vmatprep.subr.bf16.mxu0 %v7381_v16 }
 0x1fc   :  { %3067 = vmatpush1.bf16.msra.mxu1 %v7400_v22 }
 0x1fd   :  { %3068 = vmatprep.subr.bf16.mxu1 %v7408_v25 }
 0x1fe   :  { %2983 = vmatpush1.bf16.msra.mxu0 %v7379_v18  ;;  %v7456_v18 = vld [vmem:[#allocation11 + $0x2cc] ss:$16 sps:$4 sm:$0xff]  }
 0x1ff   :  { %2984 = vmatprep.subr.bf16.mxu0 %v7387_v20  ;;  %v7441_v20 = vld [vmem:[#allocation11 + $0x304] ss:$16 sps:$4 sm:$0xff]  }
 0x200   :  { %3069 = vmatpush1.bf16.msra.mxu1 %v7406_v30 }
 0x201   :  { %3070 = vmatprep.subr.bf16.mxu1 %v7414_v32 }
 0x202   :  { %2985 = vmatpush1.bf16.msra.mxu0 %v7385_v21 }
 0x203   :  { %2997 = vmatprep.subr.bf16.mxu0 %v7393_v26 }
 0x204   :  { %3071 = vmatpush1.bf16.msra.mxu1 %v7412_v35 }
 0x205   :  { %2987 = vmatmul.mubr.bf16.vlgmr.msra.gmra.mrb[8].mxu0 %v2160_v29  ;;  %3083 = vmatprep.subr.bf16.mxu1 %v7420_v37  ;;  %v7468_v37 = vld [vmem:[#allocation11 + $0x30c] ss:$16 sps:$4 sm:$0xff]  }
 0x206   :  { %2998 = vmatpush1.bf16.msra.mxu0 %v7391_v31  ;;  %3029 = vmatprep.mubr.bf16.mxu0 %v2163_v34  ;;  %v7447_v31 = vld [vmem:[#allocation11 + $0x324] ss:$16 sps:$4 sm:$0xff]  }
 0x207   :  { %2999 = vmatprep.subr.bf16.mxu0 %v7399_v33  ;;  %3073 = vmatmul.mubr.bf16.vlgmr.msra.gmra.mrb[8].mxu1 %v2160_v29 }
 0x208   :  { %3084 = vmatpush1.bf16.msra.mxu1 %v7418_v39  ;;  %3115 = vmatprep.mubr.bf16.mxu1 %v2163_v34  ;;  %v7460_v34 = vld [vmem:[#allocation11 + $0x2e8] ss:$16 sps:$4 sm:$0xff]  }
 0x209   :  { %3085 = vmatprep.subr.bf16.mxu1 %v7426_v42  ;;  %v7466_v39 = vld [vmem:[#allocation11 + $0x308] ss:$16 sps:$4 sm:$0xff]   ;;  %v7459_v42 = vld [vmem:[#allocation11 + $0x364] ss:$16 sps:$4 sm:$0xff]  }
 0x20a   :  { %3000 = vmatpush1.bf16.msra.mxu0 %v7397_v36  ;;  %v7445_v36 = vld [vmem:[#allocation11 + $0x320] ss:$16 sps:$4 sm:$0xff]  }
 0x20b   :  { %3001 = vmatprep.subr.bf16.mxu0 %v7405_v38  ;;  %v7453_v38 = vld [vmem:[#allocation11 + $0x344] ss:$16 sps:$4 sm:$0xff]  }
 0x20c   :  { %3086 = vmatpush1.bf16.msra.mxu1 %v7424_v44  ;;  %v7457_v44 = vld [vmem:[#allocation11 + $0x360] ss:$16 sps:$4 sm:$0xff]  }
 0x20d   :  { %3087 = vmatprep.subr.bf16.mxu1 %v7432_v47  ;;  %v7478_v47 = vld [vmem:[#allocation11 + $0x348] ss:$16 sps:$4 sm:$0xff]  }
 0x20e   :  { %3002 = vmatpush1.bf16.msra.mxu0 %v7403_v40  ;;  %v7451_v40 = vld [vmem:[#allocation11 + $0x340] ss:$16 sps:$4 sm:$0xff]  }
 0x20f   :  { %3003 = vmatprep.subr.bf16.mxu0 %v7411_v43  ;;  %v7472_v43 = vld [vmem:[#allocation11 + $0x328] ss:$16 sps:$4 sm:$0xff]  }
 0x210   :  { %3088 = vmatpush1.bf16.msra.mxu1 %v7430_v49  ;;  %v7486_v49 = vld [vmem:[#allocation11 + $0x36c] ss:$16 sps:$4 sm:$0xff]  }
 0x211   :  { %3089 = vmatprep.subr.bf16.mxu1 %v7438_v52  ;;  %v7484_v52 = vld [vmem:[#allocation11 + $0x368] ss:$16 sps:$4 sm:$0xff]  }
 0x212   :  { %3004 = vmatpush1.bf16.msra.mxu0 %v7409_v45  ;;  %v7480_v45 = vld [vmem:[#allocation11 + $0x34c] ss:$16 sps:$4 sm:$0xff]  }
 0x213   :  { %3005 = vmatprep.subr.bf16.mxu0 %v7417_v48  ;;  %v7463_v48 = vld [vmem:[#allocation11 + $0x380] ss:$16 sps:$4 sm:$0xff]  }
 0x214   :  { %3090 = vmatpush1.bf16.msra.mxu1 %v7436_v56  ;;  %v7477_v56 = vld [vmem:[#allocation11 + $0x3c4] ss:$16 sps:$4 sm:$0xff]  }
 0x215   :  { %3091 = vmatprep.subr.bf16.mxu1 %v7444_v59  ;;  %v7492_v59 = vld [vmem:[#allocation11 + $0x3ac] ss:$16 sps:$4 sm:$0xff]  }
 0x216   :  { %3006 = vmatpush1.bf16.msra.mxu0 %v7415_v50  ;;  %v7471_v50 = vld [vmem:[#allocation11 + $0x3a4] ss:$16 sps:$4 sm:$0xff]  }
 0x217   :  { %3007 = vmatprep.subr.bf16.mxu0 %v7423_v55  ;;  %v7489_v55 = vld [vmem:[#allocation11 + $0x38c] ss:$16 sps:$4 sm:$0xff]  }
 0x218   :  { %v1079_v62 = vpop.f32.mrb[0].mxu0  ;;  %3092 = vmatpush1.bf16.msra.mxu1 %v7442_v1  ;;  %v2158_v1 = vld [vmem:[#allocation5 + $0x30] sm:$0xff] }
 0x219   :  { %v1081_v0 = vpop.f32.mrb[1].mxu0  ;;  %v6837_v7 = vadd.f32 %v1079_v62, %v345_v60  ;;  %3093 = vmatprep.subr.bf16.mxu1 %v7450_v6  ;;  %v7490_v62 = vld [vmem:[#allocation11 + $0x3a8] ss:$16 sps:$4 sm:$0xff]   ;;  %v7498_v6 = vld [vmem:[#allocation11 + $0x3ec] ss:$16 sps:$4 sm:$0xff]  }
 0x21a   :  { %v6838_v3 = vadd.f32 %v1081_v0, %v349_v57  ;;  %v1083_v4 = vpop.f32.mrb[2].mxu0  ;;  %3008 = vmatpush1.bf16.msra.mxu0 %v7421_v58  ;;  %v1165_v21 = vpop.f32.mrb[0].mxu1  ;;  %v7475_v58 = vld [vmem:[#allocation11 + $0x3c0] ss:$16 sps:$4 sm:$0xff]  }
 0x21b   :  { %v6839_v8 = vadd.f32 %v1083_v4, %v345_v60  ;;  %v1085_v9 = vpop.f32.mrb[3].mxu0  ;;  %3009 = vmatprep.subr.bf16.mxu0 %v7429_v61  ;;  %v6841_v22 = vadd.f32 %v1165_v21, %v353_v12  ;;  %v1167_v23 = vpop.f32.mrb[1].mxu1  ;;  %v7483_v60 = vld [vmem:[#allocation11 + $0x3e4] ss:$16 sps:$4 sm:$0xff]   ;;  %v7481_v61 = vld [vmem:[#allocation11 + $0x3e0] ss:$16 sps:$4 sm:$0xff]  }
 0x21c   :  { %v6840_v11 = vadd.f32 %v1085_v9, %v349_v57  ;;  %3094 = vmatpush1.bf16.msra.mxu1 %v7448_v14  ;;  %v6842_v25 = vadd.f32 %v1167_v23, %v357_v15  ;;  %v1169_v26 = vpop.f32.mrb[2].mxu1  ;;  %v7487_v57 = vld [vmem:[#allocation11 + $0x388] ss:$16 sps:$4 sm:$0xff]   ;;  %v2154_v0 = vld [vmem:[#allocation5 + $0x10] sm:$0xff] }
 0x21d   :  { %v8329_v13 = vpack.c.bf16 %v6839_v8, %v6837_v7  ;;  %3095 = vmatprep.subr.bf16.mxu1 %v7456_v18  ;;  %v6843_v29 = vadd.f32 %v1169_v26, %v353_v12  ;;  %v1171_v30 = vpop.f32.mrb[3].mxu1  ;;  %v2162_v4 = vpack.c.bf16 %v2158_v1, %v2154_v0  ;;  %v8073_v7 = vmov 0.0   ;;  %v7496_v8 = vld [vmem:[#allocation11 + $0x3e8] ss:$16 sps:$4 sm:$0xff]  }
 0x21e   :  { %v8332_v16 = vpack.c.bf16 %v6840_v11, %v6838_v3  ;;  %3010 = vmatpush1.bf16.msra.mxu0 %v7427_v5  ;;  %v6844_v32 = vadd.f32 %v1171_v30, %v357_v15  ;;  %v7495_v3 = vld [vmem:[#allocation11 + $0x3cc] ss:$16 sps:$4 sm:$0xff]   ;;  %v7493_v5 = vld [vmem:[#allocation11 + $0x3c8] ss:$16 sps:$4 sm:$0xff]  }
 0x21f   :  { %3365 = vrot.lane.b32.xlu0 %v8329_v13, %s8072_s10  ;;  %3011 = vmatprep.subr.bf16.mxu0 %v7435_v10  ;;  %v3245_v19 = vrot.slane %v8329_v13, 4  ;;  %v8340_v33 = vpack.c.bf16 %v6843_v29, %v6841_v22  ;;  %v3136_v9 = vsel %vm3131_vm0, %v8329_v13, 0  ;;  %v1302_v10 = vld [vmem:[#allocation20] sm:$0xf] }
 0x220   :  { %3096 = vmatpush1.bf16.msra.mxu1 %v7454_v24  ;;  %v8342_v35 = vpack.c.bf16 %v6844_v32, %v6842_v25  ;;  %v1311_v11 = vrot.slane %v1302_v10, %v8318_v51  ;;  %v1307_v12 = vrot.slane %v1302_v10, %v8320_v54  ;;  %v1315_v24 = vrot.slane %v1302_v10, %v8324_v63 }
 0x221   :  { %3486 = vrot.lane.b32.xlu1 %v3245_v19, %s8072_s10  ;;  %3097 = vmatprep.subr.bf16.mxu1 %v7462_v28  ;;  %v1319_v26 = vrot.slane %v1302_v10, %v8326_v2 }
 0x222   :  { %3012 = vmatpush1.bf16.msra.mxu0 %v7433_v17 }
 0x223   :  { %3013 = vmatprep.subr.bf16.mxu0 %v7441_v20 }
 0x224   :  { %3098 = vmatpush1.bf16.msra.mxu1 %v7460_v34 }
 0x225   :  { %3099 = vmatprep.subr.bf16.mxu1 %v7468_v37 }
 0x226   :  { %3014 = vmatpush1.bf16.msra.mxu0 %v7439_v27 }
 0x227   :  { %3015 = vmatprep.subr.bf16.mxu0 %v7447_v31 }
 0x228   :  { %3100 = vmatpush1.bf16.msra.mxu1 %v7466_v39 }
 0x229   :  { %3101 = vmatprep.subr.bf16.mxu1 %v7474_v41  ;;  %v2292_v41 = vld [vmem:[#allocation17] sm:$0xf] }
 0x22a   :  { %3016 = vmatpush1.bf16.msra.mxu0 %v7445_v36 }
 0x22b   :  { %3017 = vmatprep.subr.bf16.mxu0 %v7453_v38 }
 0x22c   :  { %3102 = vmatpush1.bf16.msra.mxu1 %v7472_v43  ;;  %v2301_v43 = vrot.slane %v2292_v41, %v8318_v51 }
 0x22d   :  { %3103 = vmatprep.subr.bf16.mxu1 %v7480_v45 }
 0x22e   :  { %3018 = vmatpush1.bf16.msra.mxu0 %v7451_v40 }
 0x22f   :  { %3019 = vmatprep.subr.bf16.mxu0 %v7459_v42  ;;  %v2297_v42 = vrot.slane %v2292_v41, %v8320_v54 }
 0x230   :  { %3104 = vmatpush1.bf16.msra.mxu1 %v7478_v47 }
 0x231   :  { %3105 = vmatprep.subr.bf16.mxu1 %v7486_v49 }
 0x232   :  { %3020 = vmatpush1.bf16.msra.mxu0 %v7457_v44 }
 0x233   :  { %3021 = vmatprep.subr.bf16.mxu0 %v7465_v46 }
 0x234   :  { %3106 = vmatpush1.bf16.msra.mxu1 %v7484_v52 }
 0x235   :  { %3107 = vmatprep.subr.bf16.mxu1 %v7489_v55 }
 0x236   :  { %3022 = vmatpush1.bf16.msra.mxu0 %v7463_v48 }
 0x237   :  { %3023 = vmatprep.subr.bf16.mxu0 %v7471_v50 }
 0x238   :  { %3108 = vmatpush1.bf16.msra.mxu1 %v7487_v57  ;;  %v2309_v57 = vrot.slane %v2292_v41, %v8326_v2 }
 0x239   :  { %3109 = vmatprep.subr.bf16.mxu1 %v7492_v59 }
 0x23a   :  { %3024 = vmatpush1.bf16.msra.mxu0 %v7469_v53  ;;  %v2305_v53 = vrot.slane %v2292_v41, %v8324_v63 }
 0x23b   :  { %3025 = vmatprep.subr.bf16.mxu0 %v7477_v56 }
 0x23c   :  { %3110 = vmatpush1.bf16.msra.mxu1 %v7490_v62 }
 0x23d   :  { %3111 = vmatprep.subr.bf16.mxu1 %v7495_v3  ;;  %v3250_v3 = vsel %vm3131_vm0, %v3245_v19, 0 }
 0x23e   :  { %3026 = vmatpush1.bf16.msra.mxu0 %v7475_v58 }
 0x23f   :  { %3027 = vmatprep.subr.bf16.mxu0 %v7483_v60 }
 0x240   :  { %3112 = vmatpush1.bf16.msra.mxu1 %v7493_v5 }
 0x241   :  { %3113 = vmatprep.subr.bf16.mxu1 %v7498_v6 }
 0x242   :  { %3028 = vmatpush1.bf16.msra.mxu0 %v7481_v61 }
 0x243   :  { %6645 = vmatprep.subr.bf16.mxu0 %v8073_v7 }
 0x244   :  { %3114 = vmatpush1.bf16.msra.mxu1 %v7496_v8 }
 0x245   :  { %3030 = vmatmul.mubr.bf16.vlgmr.msra.gmra.mrb[8].mxu0 %v2162_v4  ;;  %6651 = vmatprep.subr.bf16.mxu1 %v8073_v7 }
 0x246   :  { %6647 = vmatprep.mubr.msk.bf16.mxu0 %vm8074_vm2, %v8073_v7 }
 0x247   :  { %3116 = vmatmul.mubr.bf16.vlgmr.msra.gmra.mrb[8].mxu1 %v2162_v4 }
 0x248   :  { %6653 = vmatprep.mubr.msk.bf16.mxu1 %vm8074_vm2, %v8073_v7 }
 0x24b   :  { %6646 = vmatpush3.bf16.xpose.msra.mxu0 %v3136_v9 }
 0x24c   :  { %6657 = vmatprep.subr.bf16.mxu0 %v8073_v7 }
 0x291   :  { %v3366_v19 = vpop.permute.xlu0 %3365 }
 0x298   :  { %v2041_v14 = vpop.f32.mrb[4].mxu0 }
 0x299   :  { %v2043_v15 = vpop.f32.mrb[5].mxu0  ;;  %v6845_v20 = vadd.f32 %v2041_v14, %v1307_v12 }
 0x29a   :  { %v6846_v17 = vadd.f32 %v2043_v15, %v1311_v11  ;;  %v2045_v18 = vpop.f32.mrb[6].mxu0  ;;  %v2127_v29 = vpop.f32.mrb[4].mxu1 }
 0x29b   :  { %v6847_v21 = vadd.f32 %v2045_v18, %v1307_v12  ;;  %v2047_v22 = vpop.f32.mrb[7].mxu0  ;;  %v6849_v30 = vadd.f32 %v2127_v29, %v1315_v24  ;;  %v2129_v31 = vpop.f32.mrb[5].mxu1 }
 0x29c   :  { %v6848_v23 = vadd.f32 %v2047_v22, %v1311_v11  ;;  %v6850_v32 = vadd.f32 %v2129_v31, %v1319_v26  ;;  %v2131_v34 = vpop.f32.mrb[6].mxu1  ;;  %v4194_v22 = vrot.slane %v8340_v33, 4 }
 0x29d   :  { %v8352_v25 = vpack.c.bf16 %v6847_v21, %v6845_v20  ;;  %v6851_v36 = vadd.f32 %v2131_v34, %v1315_v24  ;;  %v2133_v37 = vpop.f32.mrb[7].mxu1  ;;  %v3371_v20 = vsel %vm3131_vm0, %v3366_v19, 0  ;;  %v4667_v24 = vrot.slane %v8342_v35, 4 }
 0x29e   :  { %v8355_v27 = vpack.c.bf16 %v6848_v23, %v6846_v17  ;;  %v6852_v38 = vadd.f32 %v2133_v37, %v1319_v26  ;;  %v3721_v17 = vrot.slane %v8332_v16, 4 }
 0x29f   :  { %v3197_v28 = vsel %vm3195_vm1, %v8352_v25, 0  ;;  %v8364_v39 = vpack.c.bf16 %v6851_v36, %v6849_v30 }
 0x2a0   :  { %6652 = vmatpush3.bf16.msra.mxu1 %v3197_v28  ;;  %v8366_v40 = vpack.c.bf16 %v6852_v38, %v6850_v32  ;;  %v3487_v28 = vpop.permute.xlu1 %3486  ;;  %v3614_v32 = vsel %vm3131_vm0, %v8332_v16, 0  ;;  %v3726_v34 = vsel %vm3131_vm0, %v3721_v17, 0 }
 0x2a1   :  { %6663 = vmatprep.subr.bf16.mxu1 %v8073_v7  ;;  %v3492_v30 = vsel %vm3131_vm0, %v3487_v28, 0 }
 0x318   :  { %v3031_v44 = vpop.f32.mrb[8].mxu0 }
 0x319   :  { %v6853_v45 = vadd.f32 %v3031_v44, %v2297_v42  ;;  %v3033_v46 = vpop.f32.mrb[9].mxu0  ;;  %v4199_v44 = vsel %vm3131_vm0, %v4194_v22, 0 }
 0x31a   :  { %v6854_v47 = vadd.f32 %v3033_v46, %v2301_v43  ;;  %v3035_v48 = vpop.f32.mrb[10].mxu0  ;;  %v3117_v61 = vpop.f32.mrb[8].mxu1 }
 0x31b   :  { %v6855_v49 = vadd.f32 %v3035_v48, %v2297_v42  ;;  %v3037_v50 = vpop.f32.mrb[11].mxu0  ;;  %v3126_v55 = vmul.f32 0.125, %v6853_v45  ;;  %v6857_v0 = vadd.f32 %v3117_v61, %v2305_v53  ;;  %v3119_v1 = vpop.f32.mrb[9].mxu1 }
 0x31c   :  { %v6856_v52 = vadd.f32 %v3037_v50, %v2301_v43  ;;  %v3605_v58 = vmul.f32 0.125, %v6854_v47  ;;  %v6858_v5 = vadd.f32 %v3119_v1, %v2309_v57  ;;  %v3121_v6 = vpop.f32.mrb[10].mxu1  ;;  %v4087_v43 = vsel %vm3131_vm0, %v8340_v33, 0 }
 0x31d   :  { %v3127_v56 = vmul.f32 0.125, %v6855_v49  ;;  %v4078_v8 = vmul.f32 0.125, %v6857_v0  ;;  %v6859_v9 = vadd.f32 %v3121_v6, %v2305_v53  ;;  %v3123_v10 = vpop.f32.mrb[11].mxu1  ;;  %v4560_v50 = vsel %vm3131_vm0, %v8342_v35, 0 }
 0x31e   :  { %v3606_v59 = vmul.f32 0.125, %v6856_v52  ;;  %v4551_v11 = vmul.f32 0.125, %v6858_v5  ;;  %v6860_v12 = vadd.f32 %v3123_v10, %v2309_v57  ;;  %v4672_v52 = vsel %vm3131_vm0, %v4667_v24, 0 }
 0x31f   :  { %v3128_v60 = vpack.c.bf16 %v3127_v56, %v3126_v55  ;;  %v4079_v14 = vmul.f32 0.125, %v6859_v9 }
 0x320   :  { %v8372_v62 = vpack.c.bf16 %v3606_v59, %v3605_v58  ;;  %v4552_v13 = vmul.f32 0.125, %v6860_v12 }
 0x321   :  { %3362 = vrot.lane.b32.xlu0 %v3128_v60, %s8072_s10  ;;  %6648 = vmatmul.mubr.msk.bf16.vlgmr.msra.gmra.mrb[12].mxu0 %vm3131_vm0, %v3128_v60  ;;  %v3243_v4 = vrot.slane %v3128_v60, 4  ;;  %v8385_v15 = vpack.c.bf16 %v4079_v14, %v4078_v8 }
 0x322   :  { %6658 = vmatpush3.bf16.xpose.msra.mxu0 %v3250_v3  ;;  %6659 = vmatprep.mubr.msk.bf16.mxu0 %vm8074_vm2, %v8073_v7  ;;  %v8390_v18 = vpack.c.bf16 %v4552_v13, %v4551_v11  ;;  %v3719_v21 = vrot.slane %v8372_v62, 4 }
 0x323   :  { %3483 = vrot.lane.b32.xlu1 %v3243_v4, %s8072_s10  ;;  %6669 = vmatprep.subr.bf16.mxu0 %v8073_v7  ;;  %v4192_v23 = vrot.slane %v8385_v15, 4 }
 0x324   :  { %v4665_v26 = vrot.slane %v8390_v18, 4 }
 0x325   :  { %3840 = vrot.lane.b32.xlu0 %v8332_v16, %s8072_s10 }
 0x327   :  { %3837 = vrot.lane.b32.xlu1 %v8372_v62, %s8072_s10 }
 0x329   :  { %3960 = vrot.lane.b32.xlu0 %v3721_v17, %s8072_s10  ;;  %6660 = vmatmul.mubr.msk.bf16.vlgmr.msra.gmra.mrb[16].mxu0 %vm3131_vm0, %v3243_v4 }
 0x32a   :  { %6670 = vmatpush3.bf16.xpose.msra.mxu0 %v3371_v20  ;;  %6671 = vmatprep.mubr.msk.bf16.mxu0 %vm8074_vm2, %v8073_v7 }
 0x32b   :  { %3957 = vrot.lane.b32.xlu1 %v3719_v21, %s8072_s10  ;;  %6681 = vmatprep.subr.bf16.mxu0 %v8073_v7 }
 0x32d   :  { %4313 = vrot.lane.b32.xlu0 %v8340_v33, %s8072_s10 }
 0x32f   :  { %4310 = vrot.lane.b32.xlu1 %v8385_v15, %s8072_s10 }
 0x331   :  { %4433 = vrot.lane.b32.xlu0 %v4194_v22, %s8072_s10 }
 0x333   :  { %4430 = vrot.lane.b32.xlu1 %v4192_v23, %s8072_s10 }
 0x335   :  { %4786 = vrot.lane.b32.xlu0 %v8342_v35, %s8072_s10 }
 0x337   :  { %4783 = vrot.lane.b32.xlu1 %v8390_v18, %s8072_s10 }
 0x339   :  { %4906 = vrot.lane.b32.xlu0 %v4667_v24, %s8072_s10 }
 0x33b   :  { %4903 = vrot.lane.b32.xlu1 %v4665_v26, %s8072_s10 }
 0x393   :  { %v3363_v29 = vpop.permute.xlu0 %3362 }
 0x394   :  { %6672 = vmatmul.mubr.msk.bf16.vlgmr.msra.gmra.mrb[20].mxu0 %vm3131_vm0, %v3363_v29 }
 0x395   :  { %6682 = vmatpush3.bf16.xpose.msra.mxu0 %v3492_v30  ;;  %6683 = vmatprep.mubr.msk.bf16.mxu0 %vm8074_vm2, %v8073_v7  ;;  %v3484_v31 = vpop.permute.xlu1 %3483 }
 0x396   :  { %6693 = vmatprep.subr.bf16.mxu0 %v8073_v7 }
 0x397   :  { %v3841_v36 = vpop.permute.xlu0 %3840 }
 0x398   :  { %v3846_v16 = vsel %vm3131_vm0, %v3841_v36, 0 }
 0x399   :  { %v3838_v38 = vpop.permute.xlu1 %3837 }
 0x39b   :  { %v3961_v37 = vpop.permute.xlu0 %3960 }
 0x39c   :  { %6684 = vmatmul.mubr.msk.bf16.vlgmr.msra.gmra.mrb[24].mxu0 %vm3131_vm0, %v3484_v31  ;;  %v3966_v41 = vsel %vm3131_vm0, %v3961_v37, 0 }
 0x39d   :  { %6694 = vmatpush3.bf16.xpose.msra.mxu0 %v3614_v32  ;;  %6695 = vmatprep.mubr.msk.bf16.mxu0 %vm8074_vm2, %v8073_v7  ;;  %v3958_v42 = vpop.permute.xlu1 %3957 }
 0x39e   :  { %6705 = vmatprep.subr.bf16.mxu0 %v8073_v7 }
 0x39f   :  { %v4314_v45 = vpop.permute.xlu0 %4313 }
 0x3a0   :  { %v4319_v33 = vsel %vm3131_vm0, %v4314_v45, 0 }
 0x3a1   :  { %v4311_v47 = vpop.permute.xlu1 %4310 }
 0x3a3   :  { %v4434_v46 = vpop.permute.xlu0 %4433 }
 0x3a4   :  { %6696 = vmatmul.mubr.msk.bf16.vlgmr.msra.gmra.mrb[28].mxu0 %vm3131_vm0, %v8372_v62  ;;  %v4439_v48 = vsel %vm3131_vm0, %v4434_v46, 0 }
 0x3a5   :  { %6706 = vmatpush3.bf16.xpose.msra.mxu0 %v3726_v34  ;;  %6707 = vmatprep.mubr.msk.bf16.mxu0 %vm8074_vm2, %v8073_v7  ;;  %v4431_v49 = vpop.permute.xlu1 %4430 }
 0x3a6   :  { %6717 = vmatprep.subr.bf16.mxu0 %v8073_v7 }
 0x3a7   :  { %v4787_v53 = vpop.permute.xlu0 %4786 }
 0x3a8   :  { %v4792_v55 = vsel %vm3131_vm0, %v4787_v53, 0 }
 0x3a9   :  { %v4784_v56 = vpop.permute.xlu1 %4783 }
 0x3ab   :  { %v4907_v35 = vpop.permute.xlu0 %4906 }
 0x3ac   :  { %6708 = vmatmul.mubr.msk.bf16.vlgmr.msra.gmra.mrb[32].mxu0 %vm3131_vm0, %v3719_v21  ;;  %v4912_v57 = vsel %vm3131_vm0, %v4907_v35, 0 }
 0x3ad   :  { %6718 = vmatpush3.bf16.xpose.msra.mxu0 %v3846_v16  ;;  %6719 = vmatprep.mubr.msk.bf16.mxu0 %vm8074_vm2, %v8073_v7  ;;  %v4904_v0 = vpop.permute.xlu1 %4903 }
 0x3ae   :  { %6729 = vmatprep.subr.bf16.mxu0 %v8073_v7 }
 0x3b4   :  { %6720 = vmatmul.mubr.msk.bf16.vlgmr.msra.gmra.mrb[36].mxu0 %vm3131_vm0, %v3838_v38 }
 0x3b5   :  { %6730 = vmatpush3.bf16.xpose.msra.mxu0 %v3966_v41  ;;  %6731 = vmatprep.mubr.msk.bf16.mxu0 %vm8074_vm2, %v8073_v7 }
 0x3b6   :  { %6741 = vmatprep.subr.bf16.mxu0 %v8073_v7 }
 0x3bc   :  { %6732 = vmatmul.mubr.msk.bf16.vlgmr.msra.gmra.mrb[40].mxu0 %vm3131_vm0, %v3958_v42 }
 0x3bd   :  { %6742 = vmatpush3.bf16.xpose.msra.mxu0 %v4087_v43  ;;  %6743 = vmatprep.mubr.msk.bf16.mxu0 %vm8074_vm2, %v8073_v7 }
 0x3be   :  { %6753 = vmatprep.subr.bf16.mxu0 %v8073_v7 }
 0x3c4   :  { %6744 = vmatmul.mubr.msk.bf16.vlgmr.msra.gmra.mrb[44].mxu0 %vm3131_vm0, %v8385_v15 }
 0x3c5   :  { %6754 = vmatpush3.bf16.xpose.msra.mxu0 %v4199_v44  ;;  %6755 = vmatprep.mubr.msk.bf16.mxu0 %vm8074_vm2, %v8073_v7 }
 0x3c6   :  { %6765 = vmatprep.subr.bf16.mxu0 %v8073_v7 }
 0x3cc   :  { %6756 = vmatmul.mubr.msk.bf16.vlgmr.msra.gmra.mrb[48].mxu0 %vm3131_vm0, %v4192_v23 }
 0x3cd   :  { %6766 = vmatpush3.bf16.xpose.msra.mxu0 %v4319_v33  ;;  %6767 = vmatprep.mubr.msk.bf16.mxu0 %vm8074_vm2, %v8073_v7 }
 0x3ce   :  { %6777 = vmatprep.subr.bf16.mxu0 %v8073_v7 }
 0x3d4   :  { %6768 = vmatmul.mubr.msk.bf16.vlgmr.msra.gmra.mrb[52].mxu0 %vm3131_vm0, %v4311_v47 }
 0x3d5   :  { %6778 = vmatpush3.bf16.xpose.msra.mxu0 %v4439_v48  ;;  %6779 = vmatprep.mubr.msk.bf16.mxu0 %vm8074_vm2, %v8073_v7 }
 0x3d6   :  { %6789 = vmatprep.subr.bf16.mxu0 %v8073_v7 }
 0x3dc   :  { %6780 = vmatmul.mubr.msk.bf16.vlgmr.msra.gmra.mrb[56].mxu0 %vm3131_vm0, %v4431_v49 }
 0x3dd   :  { %6790 = vmatpush3.bf16.xpose.msra.mxu0 %v4560_v50  ;;  %6791 = vmatprep.mubr.msk.bf16.mxu0 %vm8074_vm2, %v8073_v7 }
 0x3de   :  { %6801 = vmatprep.subr.bf16.mxu0 %v8073_v7 }
 0x3e4   :  { %6792 = vmatmul.mubr.msk.bf16.vlgmr.msra.gmra.mrb[60].mxu0 %vm3131_vm0, %v8390_v18 }
 0x3e5   :  { %6802 = vmatpush3.bf16.xpose.msra.mxu0 %v4672_v52  ;;  %6803 = vmatprep.mubr.msk.bf16.mxu0 %vm8074_vm2, %v8073_v7 }
 0x3e6   :  { %6813 = vmatprep.subr.bf16.mxu0 %v8073_v7 }
 0x3ec   :  { %6804 = vmatmul.mubr.msk.bf16.vlgmr.msra.gmra.mrb[64].mxu0 %vm3131_vm0, %v4665_v26 }
 0x3ed   :  { %6814 = vmatpush3.bf16.xpose.msra.mxu0 %v4792_v55  ;;  %6815 = vmatprep.mubr.msk.bf16.mxu0 %vm8074_vm2, %v8073_v7 }
 0x3ee   :  { %6825 = vmatprep.subr.bf16.mxu0 %v8073_v7 }
 0x3f4   :  { %v3172_v58 = vpop.f32.mrb[12].mxu0  ;;  %6816 = vmatmul.mubr.msk.bf16.vlgmr.msra.gmra.mrb[68].mxu0 %vm3131_vm0, %v4784_v56 }
 0x3f5   :  { %6826 = vmatpush3.bf16.xpose.msra.mxu0 %v4912_v57  ;;  %v6649_v59 = vpop.f32.mrb[13].mxu0  ;;  %v3179_v60 = vsel %vm3178_vm3, %v3172_v58, -inf  ;;  %6827 = vmatprep.mubr.msk.bf16.mxu0 %vm8074_vm2, %v8073_v7 }
 0x3f6   :  { %3180 = vmax.xlane.f32.xlu0 %v3179_v60  ;;  %v3175_v61 = vpop.f32.mrb[14].mxu0 }
 0x3f7   :  { %v6650_v62 = vpop.f32.mrb[15].mxu0  ;;  %v3307_v61 = vrot.slane %v8352_v25, 4 }
 0x3fc   :  { %v8495_v1 = vpop.f32.mrb[16].mxu0  ;;  %6828 = vmatmul.mubr.msk.bf16.vlgmr.msra.gmra.mrb[72].mxu0 %vm3131_vm0, %v4904_v0 }
 0x3fd   :  { %v6661_v3 = vpop.f32.mrb[17].mxu0  ;;  %v3292_v4 = vsel %vm3178_vm3, %v8495_v1, -inf }
 0x3fe   :  { %3293 = vmax.xlane.f32.xlu1 %v3292_v4  ;;  %v3289_v5 = vpop.f32.mrb[18].mxu0 }
 0x3ff   :  { %v6662_v6 = vpop.f32.mrb[19].mxu0 }
 0x467   :  { %v8500_v8 = vpop.f32.mrb[20].mxu0 }
 0x468   :  { %v6673_v9 = vpop.f32.mrb[21].mxu0  ;;  %v3413_v10 = vsel %vm3178_vm3, %v8500_v8, -inf }
 0x469   :  { %3414 = vmax.xlane.f32.xlu0 %v3413_v10  ;;  %v3410_v11 = vpop.f32.mrb[22].mxu0 }
 0x46a   :  { %v6674_v12 = vpop.f32.mrb[23].mxu0 }
 0x46f   :  { %v8504_v14 = vpop.f32.mrb[24].mxu0 }
 0x470   :  { %v6685_v13 = vpop.f32.mrb[25].mxu0  ;;  %v3534_v19 = vsel %vm3178_vm3, %v8504_v14, -inf }
 0x471   :  { %3535 = vmax.xlane.f32.xlu0 %v3534_v19  ;;  %v3531_v15 = vpop.f32.mrb[26].mxu0 }
 0x472   :  { %v6686_v17 = vpop.f32.mrb[27].mxu0 }
 0x477   :  { %v8508_v18 = vpop.f32.mrb[28].mxu0 }
 0x478   :  { %v6697_v20 = vpop.f32.mrb[29].mxu0  ;;  %v3656_v21 = vsel %vm3178_vm3, %v8508_v18, -inf }
 0x479   :  { %3657 = vmax.xlane.f32.xlu1 %v3656_v21  ;;  %v3653_v22 = vpop.f32.mrb[30].mxu0 }
 0x47a   :  { %v6698_v23 = vpop.f32.mrb[31].mxu0 }
 0x47f   :  { %v8512_v24 = vpop.f32.mrb[32].mxu0 }
 0x480   :  { %v6709_v26 = vpop.f32.mrb[33].mxu0  ;;  %v3768_v28 = vsel %vm3178_vm3, %v8512_v24, -inf }
 0x481   :  { %3769 = vmax.xlane.f32.xlu0 %v3768_v28  ;;  %v3765_v29 = vpop.f32.mrb[34].mxu0 }
 0x482   :  { %v6710_v30 = vpop.f32.mrb[35].mxu0 }
 0x483   :  { %v3181_v31 = vpop.xlane.xlu0 %3180 }
 0x484   :  { %v3182_v32 = vsub.f32 %v3172_v58, %v3181_v31 }
 0x486   :  { %v3183_v34 = vmul.f32 1.442695, %v3182_v32 }
 0x487   :  { %v8516_v36 = vpop.f32.mrb[36].mxu0 }
 0x488   :  { %7691 = vpow2.f32 %v3183_v34  ;;  %v6721_v16 = vpop.f32.mrb[37].mxu0  ;;  %v3888_v37 = vsel %vm3178_vm3, %v8516_v36, -inf }
 0x489   :  { %3889 = vmax.xlane.f32.xlu1 %v3888_v37  ;;  %v3885_v38 = vpop.f32.mrb[38].mxu0 }
 0x48a   :  { %v6722_v41 = vpop.f32.mrb[39].mxu0 }
 0x48b   :  { %v3294_v4 = vpop.xlane.xlu1 %3293 }
 0x48c   :  { %v3295_v9 = vsub.f32 %v8495_v1, %v3294_v4 }
 0x48e   :  { %v3296_v11 = vmul.f32 1.442695, %v3295_v9 }
 0x48f   :  { %v8520_v42 = vpop.f32.mrb[40].mxu0 }
 0x490   :  { %v6733_v43 = vpop.f32.mrb[41].mxu0  ;;  %v4008_v44 = vsel %vm3178_vm3, %v8520_v42, -inf  ;;  %7693 = vpow2.f32 %v3296_v11  ;;  %v3783_v11 = vrot.slane %v8355_v27, 4 }
 0x491   :  { %4009 = vmax.xlane.f32.xlu0 %v4008_v44  ;;  %v4005_v45 = vpop.f32.mrb[42].mxu0 }
 0x492   :  { %v8524_v33 = vpop.eup %7691  ;;  %v6734_v46 = vpop.f32.mrb[43].mxu0 }
 0x493   :  { %v3185_v47 = vsel %vm3178_vm3, %v8524_v33, 0.0 }
 0x495   :  { %3186 = vadd.xlane.f32.xlu0 %v3185_v47 }
 0x497   :  { %v8528_v48 = vpop.f32.mrb[44].mxu0 }
 0x498   :  { %v6745_v49 = vpop.f32.mrb[45].mxu0  ;;  %v4129_v50 = vsel %vm3178_vm3, %v8528_v48, -inf }
 0x499   :  { %4130 = vmax.xlane.f32.xlu1 %v4129_v50  ;;  %v4126_v52 = vpop.f32.mrb[46].mxu0 }
 0x49a   :  { %v6746_v53 = vpop.f32.mrb[47].mxu0  ;;  %v8549_v22 = vpop.eup %7693 }
 0x49b   :  { %v3298_v1 = vsel %vm3178_vm3, %v8549_v22, 0.0 }
 0x49f   :  { %v8532_v55 = vpop.f32.mrb[48].mxu0 }
 0x4a0   :  { %v6757_v35 = vpop.f32.mrb[49].mxu0  ;;  %v4241_v30 = vsel %vm3178_vm3, %v8532_v55, -inf }
 0x4a1   :  { %v4238_v56 = vpop.f32.mrb[50].mxu0 }
 0x4a2   :  { %v6758_v57 = vpop.f32.mrb[51].mxu0 }
 0x4a7   :  { %v8534_v58 = vpop.f32.mrb[52].mxu0 }
 0x4a8   :  { %v6769_v59 = vpop.f32.mrb[53].mxu0  ;;  %v4361_v31 = vsel %vm3178_vm3, %v8534_v58, -inf }
 0x4a9   :  { %v4358_v60 = vpop.f32.mrb[54].mxu0 }
 0x4aa   :  { %3428 = vrot.lane.b32.xlu1 %v8352_v25, %s8072_s10  ;;  %v6770_v62 = vpop.f32.mrb[55].mxu0 }
 0x4ab   :  { %3549 = vrot.lane.b32.xlu0 %v3307_v61, %s8072_s10 }
 0x4af   :  { %v8542_v0 = vpop.f32.mrb[56].mxu0 }
 0x4b0   :  { %v6781_v3 = vpop.f32.mrb[57].mxu0  ;;  %v4481_v37 = vsel %vm3178_vm3, %v8542_v0, -inf }
 0x4b1   :  { %v4478_v5 = vpop.f32.mrb[58].mxu0 }
 0x4b2   :  { %v6782_v6 = vpop.f32.mrb[59].mxu0 }
 0x4b7   :  { %v8545_v10 = vpop.f32.mrb[60].mxu0 }
 0x4b8   :  { %v6793_v12 = vpop.f32.mrb[61].mxu0  ;;  %v4602_v41 = vsel %vm3178_vm3, %v8545_v10, -inf }
 0x4b9   :  { %v4599_v13 = vpop.f32.mrb[62].mxu0 }
 0x4ba   :  { %v6794_v19 = vpop.f32.mrb[63].mxu0 }
 0x4bf   :  { %v8547_v15 = vpop.f32.mrb[64].mxu0 }
 0x4c0   :  { %v6805_v17 = vpop.f32.mrb[65].mxu0  ;;  %v4714_v43 = vsel %vm3178_vm3, %v8547_v15, -inf }
 0x4c1   :  { %v4711_v20 = vpop.f32.mrb[66].mxu0 }
 0x4c2   :  { %v6806_v21 = vpop.f32.mrb[67].mxu0  ;;  %v3312_v20 = vsel %vm3195_vm1, %v3307_v61, 0 }
 0x4c7   :  { %v8551_v23 = vpop.f32.mrb[68].mxu0 }
 0x4c8   :  { %v6817_v26 = vpop.f32.mrb[69].mxu0  ;;  %v4834_v44 = vsel %vm3178_vm3, %v8551_v23, -inf }
 0x4c9   :  { %v4831_v28 = vpop.f32.mrb[70].mxu0 }
 0x4ca   :  { %3299 = vadd.xlane.f32.xlu0 %v3298_v1  ;;  %v6818_v29 = vpop.f32.mrb[71].mxu0 }
 0x4ce   :  { %4242 = vmax.xlane.f32.xlu0 %v4241_v30  ;;  %4362 = vmax.xlane.f32.xlu1 %v4361_v31 }
 0x4cf   :  { %v8559_v32 = vpop.f32.mrb[72].mxu0 }
 0x4d0   :  { %v6829_v34 = vpop.f32.mrb[73].mxu0  ;;  %v4954_v45 = vsel %vm3178_vm3, %v8559_v32, -inf }
 0x4d1   :  { %v4951_v16 = vpop.f32.mrb[74].mxu0 }
 0x4d2   :  { %4482 = vmax.xlane.f32.xlu1 %v4481_v37  ;;  %v6830_v38 = vpop.f32.mrb[75].mxu0 }
 0x4d6   :  { %4603 = vmax.xlane.f32.xlu1 %v4602_v41 }
 0x4da   :  { %4715 = vmax.xlane.f32.xlu1 %v4714_v43 }
 0x4de   :  { %4835 = vmax.xlane.f32.xlu1 %v4834_v44 }
 0x4e2   :  { %4955 = vmax.xlane.f32.xlu1 %v4954_v45 }
 0x4f3   :  { %3903 = vrot.lane.b32.xlu1 %v8355_v27, %s8072_s10 }
 0x4f6   :  { %v3415_v46 = vpop.xlane.xlu0 %3414 }
 0x4f7   :  { %v3416_v47 = vsub.f32 %v8500_v8, %v3415_v46 }
 0x4f9   :  { %v3417_v49 = vmul.f32 1.442695, %v3416_v47 }
 0x4fb   :  { %7695 = vpow2.f32 %v3417_v49 }
 0x4fe   :  { %v3536_v50 = vpop.xlane.xlu0 %3535 }
 0x4ff   :  { %v3537_v52 = vsub.f32 %v8504_v14, %v3536_v50 }
 0x501   :  { %v3538_v53 = vmul.f32 1.442695, %v3537_v52 }
 0x503   :  { %7697 = vpow2.f32 %v3538_v53 }
 0x505   :  { %v8575_v35 = vpop.eup %7695 }
 0x506   :  { %v3658_v56 = vpop.xlane.xlu1 %3657  ;;  %v3419_v57 = vsel %vm3178_vm3, %v8575_v35, 0.0 }
 0x507   :  { %v3659_v59 = vsub.f32 %v8508_v18, %v3658_v56  ;;  %3420 = vadd.xlane.f32.xlu0 %v3419_v57 }
 0x509   :  { %v3660_v60 = vmul.f32 1.442695, %v3659_v59 }
 0x50b   :  { %7699 = vpow2.f32 %v3660_v60 }
 0x50d   :  { %v8580_v62 = vpop.eup %7697 }
 0x50e   :  { %v3540_v8 = vsel %vm3178_vm3, %v8580_v62, 0.0  ;;  %v3770_v4 = vpop.xlane.xlu0 %3769 }
 0x50f   :  { %3541 = vadd.xlane.f32.xlu0 %v3540_v8  ;;  %v3771_v21 = vsub.f32 %v8512_v24, %v3770_v4 }
 0x515   :  { %v8584_v14 = vpop.eup %7699 }
 0x516   :  { %v3662_v3 = vsel %vm3178_vm3, %v8584_v14, 0.0  ;;  %v3890_v26 = vpop.xlane.xlu1 %3889 }
 0x517   :  { %3663 = vadd.xlane.f32.xlu0 %v3662_v3  ;;  %v3891_v28 = vsub.f32 %v8516_v36, %v3890_v26 }
 0x519   :  { %v3892_v29 = vmul.f32 1.442695, %v3891_v28 }
 0x51e   :  { %v4010_v5 = vpop.xlane.xlu0 %4009 }
 0x51f   :  { %v4011_v6 = vsub.f32 %v8520_v42, %v4010_v5 }
 0x521   :  { %v4012_v18 = vmul.f32 1.442695, %v4011_v6 }
 0x522   :  { %v3187_v9 = vpop.xlane.xlu0 %3186 }
 0x523   :  { %7701 = vpow2.f32 %v4012_v18 }
 0x524   :  { %7703 = vrcp.f32 %v3187_v9 }
 0x526   :  { %v4131_v1 = vpop.xlane.xlu1 %4130  ;;  %v8619_v16 = vpop.permute.xlu0 %3549 }
 0x527   :  { %v4132_v30 = vsub.f32 %v8528_v48, %v4131_v1 }
 0x529   :  { %v4133_v25 = vmul.f32 1.442695, %v4132_v30 }
 0x52a   :  { %v3429_v37 = vpop.permute.xlu1 %3428 }
 0x52d   :  { %v8590_v12 = vpop.eup %7701  ;;  %4023 = vrot.lane.b32.xlu0 %v3783_v11, %s8072_s10 }
 0x52e   :  { %v7704_v13 = vpop.eup %7703  ;;  %v4014_v19 = vsel %vm3178_vm3, %v8590_v12, 0.0 }
 0x52f   :  { %v3189_v17 = vmul.f32 %v7704_v13, %v8524_v33  ;;  %4015 = vadd.xlane.f32.xlu1 %v4014_v19  ;;  %v3772_v33 = vmul.f32 1.442695, %v3771_v21 }
 0x531   :  { %3190 = vst.msk [vmem:[#allocation24] sm:$0xff] %vm3178_vm3, %v3189_v17  ;;  %v3191_v42 = vpack.c.bf16 %v3189_v17, %v3189_v17  ;;  %7705 = vpow2.f32 %v3772_v33  ;;  %v4256_v17 = vrot.slane %v8364_v39, 4 }
 0x532   :  { %7707 = vpow2.f32 %v3892_v29 }
 0x533   :  { %6654 = vmatmul.mubr.msk.bf16.vlgmr.msra.gmra.mrb[12].mxu1 %vm3178_vm3, %v3191_v42  ;;  %7709 = vpow2.f32 %v4133_v25 }
 0x534   :  { %6664 = vmatpush3.bf16.msra.mxu1 %v3312_v20  ;;  %6665 = vmatprep.mubr.msk.bf16.mxu1 %vm8074_vm2, %v8073_v7 }
 0x535   :  { %6675 = vmatprep.subr.bf16.mxu1 %v8073_v7 }
 0x53b   :  { %v8609_v61 = vpop.eup %7705 }
 0x53c   :  { %v3774_v31 = vsel %vm3178_vm3, %v8609_v61, 0.0  ;;  %v8613_v34 = vpop.eup %7707 }
 0x53d   :  { %v3894_v24 = vsel %vm3178_vm3, %v8613_v34, 0.0  ;;  %v8617_v36 = vpop.eup %7709 }
 0x53e   :  { %v4135_v48 = vsel %vm3178_vm3, %v8617_v36, 0.0 }
 0x54c   :  { %3775 = vadd.xlane.f32.xlu0 %v3774_v31 }
 0x550   :  { %3895 = vadd.xlane.f32.xlu0 %v3894_v24 }
 0x554   :  { %4136 = vadd.xlane.f32.xlu0 %v4135_v48 }
 0x557   :  { %v3300_v38 = vpop.xlane.xlu0 %3299 }
 0x558   :  { %7711 = vrcp.f32 %v3300_v38 }
 0x55b   :  { %v4243_v41 = vpop.xlane.xlu0 %4242  ;;  %v4363_v43 = vpop.xlane.xlu1 %4362 }
 0x55c   :  { %v4244_v44 = vsub.f32 %v8532_v55, %v4243_v41  ;;  %v4364_v45 = vsub.f32 %v8534_v58, %v4363_v43  ;;  %v3434_v58 = vsel %vm3195_vm1, %v3429_v37, 0  ;;  %v3674_v41 = vsel %vm3195_vm1, %v8355_v27, 0 }
 0x55e   :  { %v4245_v46 = vmul.f32 1.442695, %v4244_v44  ;;  %v4365_v47 = vmul.f32 1.442695, %v4364_v45 }
 0x55f   :  { %v4483_v49 = vpop.xlane.xlu1 %4482 }
 0x560   :  { %7713 = vpow2.f32 %v4245_v46  ;;  %v4484_v50 = vsub.f32 %v8542_v0, %v4483_v49  ;;  %v3788_v46 = vsel %vm3195_vm1, %v3783_v11, 0 }
 0x561   :  { %7715 = vpow2.f32 %v4365_v47 }
 0x562   :  { %v7712_v52 = vpop.eup %7711  ;;  %v4485_v53 = vmul.f32 1.442695, %v4484_v50 }
 0x563   :  { %v3302_v56 = vmul.f32 %v7712_v52, %v8549_v22  ;;  %v4604_v57 = vpop.xlane.xlu1 %4603 }
 0x564   :  { %7717 = vpow2.f32 %v4485_v53  ;;  %v4605_v59 = vsub.f32 %v8545_v10, %v4604_v57 }
 0x565   :  { %3304 = vst.msk [vmem:[#allocation24 + $0x40] sm:$0xff] %vm3178_vm3, %v3302_v56  ;;  %v3305_v55 = vpack.c.bf16 %v3302_v56, %v3302_v56 }
 0x566   :  { %v4606_v60 = vmul.f32 1.442695, %v4605_v59 }
 0x567   :  { %6666 = vmatmul.mubr.msk.bf16.vlgmr.msra.gmra.mrb[16].mxu1 %vm3178_vm3, %v3305_v55  ;;  %v4716_v8 = vpop.xlane.xlu1 %4715 }
 0x568   :  { %7719 = vpow2.f32 %v4606_v60  ;;  %6676 = vmatpush3.bf16.msra.mxu1 %v3434_v58  ;;  %v4717_v0 = vsub.f32 %v8547_v15, %v4716_v8  ;;  %6677 = vmatprep.mubr.msk.bf16.mxu1 %vm8074_vm2, %v8073_v7 }
 0x569   :  { %6687 = vmatprep.subr.bf16.mxu1 %v8073_v7 }
 0x56a   :  { %v8635_v22 = vpop.eup %7713  ;;  %v4718_v10 = vmul.f32 1.442695, %v4717_v0 }
 0x56b   :  { %v8637_v3 = vpop.eup %7715  ;;  %v4247_v4 = vsel %vm3178_vm3, %v8635_v22, 0.0  ;;  %v4836_v42 = vpop.xlane.xlu1 %4835 }
 0x56c   :  { %7721 = vpow2.f32 %v4718_v10  ;;  %v4367_v5 = vsel %vm3178_vm3, %v8637_v3, 0.0  ;;  %4248 = vadd.xlane.f32.xlu1 %v4247_v4  ;;  %v4837_v20 = vsub.f32 %v8551_v23, %v4836_v42  ;;  %v3555_v23 = vsel %vm3195_vm1, %v8619_v16, 0 }
 0x56d   :  { %4368 = vadd.xlane.f32.xlu0 %v4367_v5  ;;  %v4147_v4 = vsel %vm3195_vm1, %v8364_v39, 0  ;;  %v4261_v42 = vsel %vm3195_vm1, %v4256_v17, 0 }
 0x56e   :  { %v8643_v15 = vpop.eup %7717  ;;  %v4838_v33 = vmul.f32 1.442695, %v4837_v20 }
 0x56f   :  { %v4487_v6 = vsel %vm3178_vm3, %v8643_v15, 0.0  ;;  %v4956_v21 = vpop.xlane.xlu1 %4955 }
 0x570   :  { %4488 = vadd.xlane.f32.xlu1 %v4487_v6  ;;  %v4957_v28 = vsub.f32 %v8559_v32, %v4956_v21 }
 0x572   :  { %v8647_v18 = vpop.eup %7719  ;;  %v4958_v1 = vmul.f32 1.442695, %v4957_v28 }
 0x573   :  { %v4608_v9 = vsel %vm3178_vm3, %v8647_v18, 0.0  ;;  %v3904_v47 = vpop.permute.xlu1 %3903 }
 0x574   :  { %4609 = vadd.xlane.f32.xlu0 %v4608_v9  ;;  %v3909_v58 = vsel %vm3195_vm1, %v3904_v47, 0 }
 0x576   :  { %v8651_v13 = vpop.eup %7721 }
 0x577   :  { %v4720_v19 = vsel %vm3178_vm3, %v8651_v13, 0.0 }
 0x578   :  { %4721 = vadd.xlane.f32.xlu1 %v4720_v19 }
 0x589   :  { %4376 = vrot.lane.b32.xlu1 %v8364_v39, %s8072_s10 }
 0x58a   :  { %4496 = vrot.lane.b32.xlu0 %v4256_v17, %s8072_s10 }
 0x594   :  { %v3421_v26 = vpop.xlane.xlu0 %3420 }
 0x595   :  { %7723 = vrcp.f32 %v3421_v26 }
 0x596   :  { %7725 = vpow2.f32 %v4838_v33 }
 0x59c   :  { %v3542_v29 = vpop.xlane.xlu0 %3541 }
 0x59d   :  { %7727 = vrcp.f32 %v3542_v29 }
 0x59e   :  { %7729 = vpow2.f32 %v4958_v1 }
 0x59f   :  { %v7724_v30 = vpop.eup %7723 }
 0x5a0   :  { %v3423_v25 = vmul.f32 %v7724_v30, %v8575_v35  ;;  %v8668_v48 = vpop.eup %7725 }
 0x5a1   :  { %v4840_v37 = vsel %vm3178_vm3, %v8668_v48, 0.0 }
 0x5a2   :  { %3425 = vst.msk [vmem:[#allocation24 + $0x8] sm:$0xff] %vm3178_vm3, %v3423_v25  ;;  %v3426_v31 = vpack.c.bf16 %v3423_v25, %v3423_v25 }
 0x5a4   :  { %6678 = vmatmul.mubr.msk.bf16.vlgmr.msra.gmra.mrb[20].mxu1 %vm3178_vm3, %v3426_v31  ;;  %v3664_v24 = vpop.xlane.xlu0 %3663 }
 0x5a5   :  { %6688 = vmatpush3.bf16.msra.mxu1 %v3555_v23  ;;  %7731 = vrcp.f32 %v3664_v24  ;;  %6689 = vmatprep.mubr.msk.bf16.mxu1 %vm8074_vm2, %v8073_v7 }
 0x5a6   :  { %6699 = vmatprep.subr.bf16.mxu1 %v8073_v7 }
 0x5a7   :  { %v7728_v32 = vpop.eup %7727 }
 0x5a8   :  { %v3544_v35 = vmul.f32 %v7728_v32, %v8580_v62  ;;  %v8676_v38 = vpop.eup %7729  ;;  %v4024_v50 = vpop.permute.xlu0 %4023 }
 0x5a9   :  { %4841 = vadd.xlane.f32.xlu0 %v4840_v37  ;;  %v4960_v43 = vsel %vm3178_vm3, %v8676_v38, 0.0  ;;  %v4029_v10 = vsel %vm3195_vm1, %v4024_v50, 0 }
 0x5aa   :  { %3546 = vst.msk [vmem:[#allocation24 + $0x48] sm:$0xff] %vm3178_vm3, %v3544_v35  ;;  %v3547_v16 = vpack.c.bf16 %v3544_v35, %v3544_v35 }
 0x5ac   :  { %6690 = vmatmul.mubr.msk.bf16.vlgmr.msra.gmra.mrb[24].mxu1 %vm3178_vm3, %v3547_v16 }
 0x5ad   :  { %6700 = vmatpush3.bf16.msra.mxu1 %v3674_v41  ;;  %4961 = vadd.xlane.f32.xlu1 %v4960_v43  ;;  %v4620_v43 = vsel %vm3195_vm1, %v8366_v40, 0 }
 0x5ae   :  { %6701 = vmatprep.mubr.msk.bf16.mxu1 %vm8074_vm2, %v8073_v7  ;;  %6711 = vmatprep.subr.bf16.mxu1 %v8073_v7 }
 0x5af   :  { %v7732_v62 = vpop.eup %7731 }
 0x5b0   :  { %v3666_v44 = vmul.f32 %v7732_v62, %v8584_v14  ;;  %v4729_v14 = vrot.slane %v8366_v40, 4 }
 0x5b2   :  { %3668 = vst.msk [vmem:[#allocation24 + $0x10] sm:$0xff] %vm3178_vm3, %v3666_v44  ;;  %v3669_v45 = vpack.c.bf16 %v3666_v44, %v3666_v44  ;;  %v4734_v62 = vsel %vm3195_vm1, %v4729_v14, 0 }
 0x5b4   :  { %6702 = vmatmul.mubr.msk.bf16.vlgmr.msra.gmra.mrb[28].mxu1 %vm3178_vm3, %v3669_v45 }
 0x5b5   :  { %6712 = vmatpush3.bf16.msra.mxu1 %v3788_v46  ;;  %6713 = vmatprep.mubr.msk.bf16.mxu1 %vm8074_vm2, %v8073_v7 }
 0x5b6   :  { %6723 = vmatprep.subr.bf16.mxu1 %v8073_v7 }
 0x5bc   :  { %v4016_v49 = vpop.xlane.xlu1 %4015 }
 0x5bd   :  { %7733 = vrcp.f32 %v4016_v49 }
 0x5bf   :  { %4849 = vrot.lane.b32.xlu0 %v8366_v40, %s8072_s10 }
 0x5c3   :  { %4969 = vrot.lane.b32.xlu0 %v4729_v14, %s8072_s10 }
 0x5c7   :  { %v7734_v27 = vpop.eup %7733 }
 0x5c8   :  { %v4018_v11 = vmul.f32 %v7734_v27, %v8590_v12 }
 0x5ca   :  { %4020 = vst.msk [vmem:[#allocation24 + $0x58] sm:$0xff] %vm3178_vm3, %v4018_v11 }
 0x5d9   :  { %v3776_v52 = vpop.xlane.xlu0 %3775 }
 0x5da   :  { %7735 = vrcp.f32 %v3776_v52 }
 0x5dd   :  { %v3896_v53 = vpop.xlane.xlu0 %3895 }
 0x5de   :  { %7737 = vrcp.f32 %v3896_v53 }
 0x5e1   :  { %v4137_v56 = vpop.xlane.xlu0 %4136 }
 0x5e2   :  { %7739 = vrcp.f32 %v4137_v56 }
 0x5e4   :  { %v7736_v57 = vpop.eup %7735 }
 0x5e5   :  { %v3778_v59 = vmul.f32 %v7736_v57, %v8609_v61 }
 0x5e7   :  { %3780 = vst.msk [vmem:[#allocation24 + $0x50] sm:$0xff] %vm3178_vm3, %v3778_v59  ;;  %v3781_v55 = vpack.c.bf16 %v3778_v59, %v3778_v59 }
 0x5e8   :  { %v7738_v60 = vpop.eup %7737 }
 0x5e9   :  { %v3898_v12 = vmul.f32 %v7738_v60, %v8613_v34  ;;  %6714 = vmatmul.mubr.msk.bf16.vlgmr.msra.gmra.mrb[32].mxu1 %vm3178_vm3, %v3781_v55  ;;  %v4021_v34 = vpack.c.bf16 %v4018_v11, %v4018_v11 }
 0x5ea   :  { %6724 = vmatpush3.bf16.msra.mxu1 %v3909_v58  ;;  %6725 = vmatprep.mubr.msk.bf16.mxu1 %vm8074_vm2, %v8073_v7 }
 0x5eb   :  { %3900 = vst.msk [vmem:[#allocation24 + $0x18] sm:$0xff] %vm3178_vm3, %v3898_v12  ;;  %6735 = vmatprep.subr.bf16.mxu1 %v8073_v7  ;;  %v3901_v0 = vpack.c.bf16 %v3898_v12, %v3898_v12 }
 0x5ec   :  { %v7740_v8 = vpop.eup %7739 }
 0x5ed   :  { %v4139_v61 = vmul.f32 %v7740_v8, %v8617_v36 }
 0x5ef   :  { %4141 = vst.msk [vmem:[#allocation24 + $0x20] sm:$0xff] %vm3178_vm3, %v4139_v61  ;;  %v4142_v9 = vpack.c.bf16 %v4139_v61, %v4139_v61 }
 0x5f1   :  { %6726 = vmatmul.mubr.msk.bf16.vlgmr.msra.gmra.mrb[36].mxu1 %vm3178_vm3, %v3901_v0 }
 0x5f2   :  { %6736 = vmatpush3.bf16.msra.mxu1 %v4029_v10  ;;  %6737 = vmatprep.mubr.msk.bf16.mxu1 %vm8074_vm2, %v8073_v7 }
 0x5f3   :  { %6747 = vmatprep.subr.bf16.mxu1 %v8073_v7 }
 0x5f9   :  { %6738 = vmatmul.mubr.msk.bf16.vlgmr.msra.gmra.mrb[40].mxu1 %vm3178_vm3, %v4021_v34  ;;  %v4249_v36 = vpop.xlane.xlu1 %4248 }
 0x5fa   :  { %v4369_v5 = vpop.xlane.xlu0 %4368  ;;  %6748 = vmatpush3.bf16.msra.mxu1 %v4147_v4  ;;  %7741 = vrcp.f32 %v4249_v36  ;;  %6749 = vmatprep.mubr.msk.bf16.mxu1 %vm8074_vm2, %v8073_v7  ;;  %v7499_v36 = vld [vmem:[#allocation16] ss:$16 sps:$4 sm:$0xff]  }
 0x5fb   :  { %7743 = vrcp.f32 %v4369_v5  ;;  %6759 = vmatprep.subr.bf16.mxu1 %v8073_v7  ;;  %v7501_v5 = vld [vmem:[#allocation16 + $0x4] ss:$16 sps:$4 sm:$0xff]  }
 0x5fc   :  { %5818 = vmatprep.subr.bf16.mxu0 %v7501_v5 }
 0x5fd   :  { %v4489_v6 = vpop.xlane.xlu1 %4488  ;;  %5819 = vmatpush1.bf16.msra.mxu0 %v7499_v36 }
 0x5fe   :  { %7745 = vrcp.f32 %v4489_v6 }
 0x601   :  { %v4610_v19 = vpop.xlane.xlu0 %4609  ;;  %6750 = vmatmul.mubr.msk.bf16.vlgmr.msra.gmra.mrb[44].mxu1 %vm3178_vm3, %v4142_v9  ;;  %v7504_v9 = vld [vmem:[#allocation16 + $0xc] ss:$16 sps:$4 sm:$0xff]  }
 0x602   :  { %7747 = vrcp.f32 %v4610_v19  ;;  %6760 = vmatpush3.bf16.msra.mxu1 %v4261_v42  ;;  %6761 = vmatprep.mubr.msk.bf16.mxu1 %vm8074_vm2, %v8073_v7  ;;  %v7507_v19 = vld [vmem:[#allocation16 + $0x24] ss:$16 sps:$4 sm:$0xff]   ;;  %v7505_v42 = vld [vmem:[#allocation16 + $0x20] ss:$16 sps:$4 sm:$0xff]  }
 0x603   :  { %6771 = vmatprep.subr.bf16.mxu1 %v8073_v7  ;;  %5820 = vmatprep.subr.bf16.mxu0 %v7507_v19 }
 0x604   :  { %v7742_v20 = vpop.eup %7741  ;;  %5821 = vmatpush1.bf16.msra.mxu0 %v7505_v42  ;;  %v7577_v42 = vld [vmem:[#allocation16 + $0x1a0] ss:$16 sps:$4 sm:$0xff]  }
 0x605   :  { %v7744_v21 = vpop.eup %7743  ;;  %v4251_v26 = vmul.f32 %v7742_v20, %v8635_v22  ;;  %v4722_v33 = vpop.xlane.xlu1 %4721  ;;  %v7510_v20 = vld [vmem:[#allocation16 + $0x2c] ss:$16 sps:$4 sm:$0xff]  }
 0x606   :  { %v4371_v28 = vmul.f32 %v7744_v21, %v8637_v3  ;;  %v3233_v1 = vpop.f32.mrb[12].mxu1  ;;  %7749 = vrcp.f32 %v4722_v33  ;;  %v7508_v21 = vld [vmem:[#allocation16 + $0x28] ss:$16 sps:$4 sm:$0xff]   ;;  %v7516_v33 = vld [vmem:[#allocation16 + $0x4c] ss:$16 sps:$4 sm:$0xff]  }
 0x607   :  { %4253 = vst.msk [vmem:[#allocation24 + $0x60] sm:$0xff] %vm3178_vm3, %v4251_v26  ;;  %v3239_v39 = vpack.c.bf16 %v3233_v1, %v3233_v1  ;;  %v6655_v17 = vpop.f32.mrb[13].mxu1  ;;  %v4254_v29 = vpack.c.bf16 %v4251_v26, %v4251_v26  ;;  %v7513_v26 = vld [vmem:[#allocation16 + $0x44] ss:$16 sps:$4 sm:$0xff]  }
 0x608   :  { %v7746_v30 = vpop.eup %7745  ;;  %4373 = vst.msk [vmem:[#allocation24 + $0x28] sm:$0xff] %vm3178_vm3, %v4371_v28  ;;  %v3236_v25 = vpop.f32.mrb[14].mxu1  ;;  %v4374_v35 = vpack.c.bf16 %v4371_v28, %v4371_v28  ;;  %v7511_v17 = vld [vmem:[#allocation16 + $0x40] ss:$16 sps:$4 sm:$0xff]   ;;  %5822 = vmatprep.subr.bf16.mxu0 %v7513_v26 }
 0x609   :  { %v4491_v31 = vmul.f32 %v7746_v30, %v8643_v15  ;;  %3241 = vst.msk [vmem:[#allocation4] sm:$0xf] %vm3240_vm4, %v3239_v39  ;;  %v6656_v22 = vpop.f32.mrb[15].mxu1  ;;  %6762 = vmatmul.mubr.msk.bf16.vlgmr.msra.gmra.mrb[48].mxu1 %vm3178_vm3, %v4254_v29  ;;  %v4377_v3 = vpop.permute.xlu1 %4376  ;;  %v7514_v30 = vld [vmem:[#allocation16 + $0x48] ss:$16 sps:$4 sm:$0xff]   ;;  %5823 = vmatpush1.bf16.msra.mxu0 %v7511_v17 }
 0x60a   :  { %v4382_v23 = vsel %vm3195_vm1, %v4377_v3, 0  ;;  %6773 = vmatprep.mubr.msk.bf16.mxu1 %vm8074_vm2, %v8073_v7  ;;  %v4497_v15 = vpop.permute.xlu0 %4496  ;;  %v7519_v22 = vld [vmem:[#allocation16 + $0x64] ss:$16 sps:$4 sm:$0xff]   ;;  %v7520_v3 = vld [vmem:[#allocation16 + $0x68] ss:$16 sps:$4 sm:$0xff]  }
 0x60b   :  { %4493 = vst.msk [vmem:[#allocation24 + $0x68] sm:$0xff] %vm3178_vm3, %v4491_v31  ;;  %6772 = vmatpush3.bf16.msra.mxu1 %v4382_v23  ;;  %v4502_v16 = vsel %vm3195_vm1, %v4497_v15, 0  ;;  %v7522_v23 = vld [vmem:[#allocation16 + $0x6c] ss:$16 sps:$4 sm:$0xff]   ;;  %5824 = vmatprep.subr.bf16.mxu0 %v7519_v22  ;;  %v7526_v15 = vld [vmem:[#allocation16 + $0x88] ss:$16 sps:$4 sm:$0xff]  }
 0x60c   :  { %v7748_v24 = vpop.eup %7747  ;;  %6783 = vmatprep.subr.bf16.mxu1 %v8073_v7  ;;  %v7583_v17 = vld [vmem:[#allocation16 + $0x1c0] ss:$16 sps:$4 sm:$0xff]  }
 0x60d   :  { %v4612_v32 = vmul.f32 %v7748_v24, %v8647_v18  ;;  %v4494_v18 = vpack.c.bf16 %v4491_v31, %v4491_v31  ;;  %v7517_v31 = vld [vmem:[#allocation16 + $0x60] ss:$16 sps:$4 sm:$0xff]   ;;  %v7525_v24 = vld [vmem:[#allocation16 + $0x84] ss:$16 sps:$4 sm:$0xff]  }
 0x60e   :  { %5825 = vmatpush1.bf16.msra.mxu0 %v7517_v31  ;;  %v7591_v31 = vld [vmem:[#allocation16 + $0x1e4] ss:$16 sps:$4 sm:$0xff]   ;;  %v7589_v22 = vld [vmem:[#allocation16 + $0x1e0] ss:$16 sps:$4 sm:$0xff]  }
 0x60f   :  { %4614 = vst.msk [vmem:[#allocation24 + $0x30] sm:$0xff] %vm3178_vm3, %v4612_v32  ;;  %5826 = vmatprep.subr.bf16.mxu0 %v7525_v24  ;;  %v7594_v24 = vld [vmem:[#allocation16 + $0x1ec] ss:$16 sps:$4 sm:$0xff]  }
 0x610   :  { %v7750_v37 = vpop.eup %7749 }
 0x611   :  { %v4724_v41 = vmul.f32 %v7750_v37, %v8651_v13  ;;  %6774 = vmatmul.mubr.msk.bf16.vlgmr.msra.gmra.mrb[52].mxu1 %vm3178_vm3, %v4374_v35  ;;  %v4615_v13 = vpack.c.bf16 %v4612_v32, %v4612_v32  ;;  %v7523_v32 = vld [vmem:[#allocation16 + $0x80] ss:$16 sps:$4 sm:$0xff]   ;;  %v7528_v35 = vld [vmem:[#allocation16 + $0x8c] ss:$16 sps:$4 sm:$0xff]  }
 0x612   :  { %6784 = vmatpush3.bf16.msra.mxu1 %v4502_v16  ;;  %6785 = vmatprep.mubr.msk.bf16.mxu1 %vm8074_vm2, %v8073_v7  ;;  %v7529_v37 = vld [vmem:[#allocation16 + $0xa0] ss:$16 sps:$4 sm:$0xff]   ;;  %v7531_v16 = vld [vmem:[#allocation16 + $0xa4] ss:$16 sps:$4 sm:$0xff]  }
 0x613   :  { %4726 = vst.msk [vmem:[#allocation24 + $0x70] sm:$0xff] %vm3178_vm3, %v4724_v41  ;;  %6795 = vmatprep.subr.bf16.mxu1 %v8073_v7  ;;  %v4727_v44 = vpack.c.bf16 %v4724_v41, %v4724_v41  ;;  %5827 = vmatpush1.bf16.msra.mxu0 %v7523_v32  ;;  %v7532_v41 = vld [vmem:[#allocation16 + $0xa8] ss:$16 sps:$4 sm:$0xff]  }
 0x614   :  { %5828 = vmatprep.subr.bf16.mxu0 %v7531_v16 }
 0x617   :  { %5829 = vmatpush1.bf16.msra.mxu0 %v7529_v37 }
 0x619   :  { %6786 = vmatmul.mubr.msk.bf16.vlgmr.msra.gmra.mrb[56].mxu1 %vm3178_vm3, %v4494_v18  ;;  %v7534_v18 = vld [vmem:[#allocation16 + $0xac] ss:$16 sps:$4 sm:$0xff]  }
 0x61a   :  { %6796 = vmatpush3.bf16.msra.mxu1 %v4620_v43  ;;  %6797 = vmatprep.mubr.msk.bf16.mxu1 %vm8074_vm2, %v8073_v7  ;;  %v7537_v43 = vld [vmem:[#allocation16 + $0xc4] ss:$16 sps:$4 sm:$0xff]  }
 0x61b   :  { %6807 = vmatprep.subr.bf16.mxu1 %v8073_v7  ;;  %5830 = vmatprep.subr.bf16.mxu0 %v7537_v43  ;;  %v7600_v43 = vld [vmem:[#allocation16 + $0x20c] ss:$16 sps:$4 sm:$0xff]  }
 0x621   :  { %6798 = vmatmul.mubr.msk.bf16.vlgmr.msra.gmra.mrb[60].mxu1 %vm3178_vm3, %v4615_v13  ;;  %v7535_v13 = vld [vmem:[#allocation16 + $0xc0] ss:$16 sps:$4 sm:$0xff]  }
 0x622   :  { %6808 = vmatpush3.bf16.msra.mxu1 %v4734_v62  ;;  %6809 = vmatprep.mubr.msk.bf16.mxu1 %vm8074_vm2, %v8073_v7  ;;  %v7540_v62 = vld [vmem:[#allocation16 + $0xcc] ss:$16 sps:$4 sm:$0xff]  }
 0x623   :  { %6819 = vmatprep.subr.bf16.mxu1 %v8073_v7  ;;  %5831 = vmatpush1.bf16.msra.mxu0 %v7535_v13 }
 0x629   :  { %6810 = vmatmul.mubr.msk.bf16.vlgmr.msra.gmra.mrb[64].mxu1 %vm3178_vm3, %v4727_v44  ;;  %v7538_v44 = vld [vmem:[#allocation16 + $0xc8] ss:$16 sps:$4 sm:$0xff]  }
 0x62a   :  { %6821 = vmatprep.mubr.msk.bf16.mxu1 %vm8074_vm2, %v8073_v7 }
 0x636   :  { %v4842_v45 = vpop.xlane.xlu0 %4841 }
 0x637   :  { %7751 = vrcp.f32 %v4842_v45  ;;  %v7543_v45 = vld [vmem:[#allocation16 + $0xe4] ss:$16 sps:$4 sm:$0xff]  }
 0x638   :  { %5832 = vmatprep.subr.bf16.mxu0 %v7543_v45 }
 0x63a   :  { %v3348_v46 = vpop.f32.mrb[16].mxu1  ;;  %v4850_v47 = vpop.permute.xlu0 %4849 }
 0x63b   :  { %v3354_v49 = vpack.c.bf16 %v3348_v46, %v3348_v46  ;;  %v4855_v40 = vsel %vm3195_vm1, %v4850_v47, 0  ;;  %v4962_v14 = vpop.xlane.xlu1 %4961  ;;  %v6667_v27 = vpop.f32.mrb[17].mxu1  ;;  %v7546_v46 = vld [vmem:[#allocation16 + $0xec] ss:$16 sps:$4 sm:$0xff]   ;;  %v7541_v47 = vld [vmem:[#allocation16 + $0xe0] ss:$16 sps:$4 sm:$0xff]  }
 0x63c   :  { %7753 = vrcp.f32 %v4962_v14  ;;  %v3351_v11 = vpop.f32.mrb[18].mxu1  ;;  %6820 = vmatpush3.bf16.msra.mxu1 %v4855_v40  ;;  %v7549_v40 = vld [vmem:[#allocation16 + $0x104] ss:$16 sps:$4 sm:$0xff]   ;;  %v7552_v14 = vld [vmem:[#allocation16 + $0x10c] ss:$16 sps:$4 sm:$0xff]   ;;  %5833 = vmatpush1.bf16.msra.mxu0 %v7541_v47 }
 0x63d   :  { %v3356_v50 = vrot.slane %v3354_v49, 4  ;;  %v6668_v52 = vpop.f32.mrb[19].mxu1  ;;  %6831 = vmatprep.subr.bf16.mxu1 %v8073_v7  ;;  %v7544_v49 = vld [vmem:[#allocation16 + $0xe8] ss:$16 sps:$4 sm:$0xff]   ;;  %v7547_v27 = vld [vmem:[#allocation16 + $0x100] ss:$16 sps:$4 sm:$0xff]   ;;  %5834 = vmatprep.subr.bf16.mxu0 %v7549_v40 }
 0x63e   :  { %v4970_v57 = vpop.permute.xlu0 %4969  ;;  %v7550_v11 = vld [vmem:[#allocation16 + $0x108] ss:$16 sps:$4 sm:$0xff]   ;;  %v7558_v52 = vld [vmem:[#allocation16 + $0x12c] ss:$16 sps:$4 sm:$0xff]  }
 0x63f   :  { %3359 = vst.msk [vmem:[#allocation4] sm:$0xf0] %vm3358_vm5, %v3356_v50  ;;  %v4975_v60 = vsel %vm3195_vm1, %v4970_v57, 0  ;;  %v7555_v50 = vld [vmem:[#allocation16 + $0x124] ss:$16 sps:$4 sm:$0xff]  }
 0x640   :  { %5835 = vmatpush1.bf16.msra.mxu0 %v7547_v27  ;;  %v7561_v57 = vld [vmem:[#allocation16 + $0x144] ss:$16 sps:$4 sm:$0xff]  }
 0x641   :  { %v7752_v53 = vpop.eup %7751  ;;  %5836 = vmatprep.subr.bf16.mxu0 %v7555_v50 }
 0x642   :  { %v4844_v56 = vmul.f32 %v7752_v53, %v8668_v48  ;;  %v7553_v53 = vld [vmem:[#allocation16 + $0x120] ss:$16 sps:$4 sm:$0xff]  }
 0x644   :  { %4846 = vst.msk [vmem:[#allocation24 + $0x38] sm:$0xff] %vm3178_vm3, %v4844_v56  ;;  %v4847_v59 = vpack.c.bf16 %v4844_v56, %v4844_v56  ;;  %v7556_v56 = vld [vmem:[#allocation16 + $0x128] ss:$16 sps:$4 sm:$0xff]   ;;  %5837 = vmatpush1.bf16.msra.mxu0 %v7553_v53 }
 0x645   :  { %5838 = vmatprep.subr.bf16.mxu0 %v7561_v57 }
 0x646   :  { %v7754_v55 = vpop.eup %7753  ;;  %6822 = vmatmul.mubr.msk.bf16.vlgmr.msra.gmra.mrb[68].mxu1 %vm3178_vm3, %v4847_v59  ;;  %v7564_v59 = vld [vmem:[#allocation16 + $0x14c] ss:$16 sps:$4 sm:$0xff]  }
 0x647   :  { %v4964_v58 = vmul.f32 %v7754_v55, %v8676_v38  ;;  %6832 = vmatpush3.bf16.msra.mxu1 %v4975_v60  ;;  %6833 = vmatprep.mubr.msk.bf16.mxu1 %vm8074_vm2, %v8073_v7  ;;  %v7502_v7 = vld [vmem:[#allocation16 + $0x8] ss:$16 sps:$4 sm:$0xff]   ;;  %v7559_v55 = vld [vmem:[#allocation16 + $0x140] ss:$16 sps:$4 sm:$0xff]  }
 0x648   :  { %5904 = vmatprep.subr.bf16.mxu1 %v7504_v9  ;;  %v7562_v60 = vld [vmem:[#allocation16 + $0x148] ss:$16 sps:$4 sm:$0xff]   ;;  %5839 = vmatpush1.bf16.msra.mxu0 %v7559_v55 }
 0x649   :  { %4966 = vst.msk [vmem:[#allocation24 + $0x78] sm:$0xff] %vm3178_vm3, %v4964_v58  ;;  %v4967_v12 = vpack.c.bf16 %v4964_v58, %v4964_v58  ;;  %v7567_v58 = vld [vmem:[#allocation16 + $0x164] ss:$16 sps:$4 sm:$0xff]   ;;  %v7574_v9 = vld [vmem:[#allocation16 + $0x188] ss:$16 sps:$4 sm:$0xff]  }
 0x64a   :  { %5840 = vmatprep.subr.bf16.mxu0 %v7567_v58 }
 0x64e   :  { %6834 = vmatmul.mubr.msk.bf16.vlgmr.msra.gmra.mrb[72].mxu1 %vm3178_vm3, %v4967_v12  ;;  %v7565_v12 = vld [vmem:[#allocation16 + $0x160] ss:$16 sps:$4 sm:$0xff]  }
 0x64f   :  { %5905 = vmatpush1.bf16.msra.mxu1 %v7502_v7  ;;  %5841 = vmatpush1.bf16.msra.mxu0 %v7565_v12  ;;  %v7571_v7 = vld [vmem:[#allocation16 + $0x180] ss:$16 sps:$4 sm:$0xff]  }
 0x650   :  { %5906 = vmatprep.subr.bf16.mxu1 %v7510_v20  ;;  %v7579_v20 = vld [vmem:[#allocation16 + $0x1a4] ss:$16 sps:$4 sm:$0xff]  }
 0x653   :  { %5907 = vmatpush1.bf16.msra.mxu1 %v7508_v21 }
 0x654   :  { %5908 = vmatprep.subr.bf16.mxu1 %v7516_v33  ;;  %v7580_v33 = vld [vmem:[#allocation16 + $0x1a8] ss:$16 sps:$4 sm:$0xff]  }
 0x657   :  { %5909 = vmatpush1.bf16.msra.mxu1 %v7514_v30  ;;  %v7586_v30 = vld [vmem:[#allocation16 + $0x1c8] ss:$16 sps:$4 sm:$0xff]  }
 0x658   :  { %5910 = vmatprep.subr.bf16.mxu1 %v7522_v23  ;;  %v7592_v23 = vld [vmem:[#allocation16 + $0x1e8] ss:$16 sps:$4 sm:$0xff]  }
 0x65b   :  { %5911 = vmatpush1.bf16.msra.mxu1 %v7520_v3 }
 0x65c   :  { %5912 = vmatprep.subr.bf16.mxu1 %v7528_v35 }
 0x65f   :  { %5913 = vmatpush1.bf16.msra.mxu1 %v7526_v15 }
 0x660   :  { %5914 = vmatprep.subr.bf16.mxu1 %v7534_v18  ;;  %v7597_v18 = vld [vmem:[#allocation16 + $0x204] ss:$16 sps:$4 sm:$0xff]  }
 0x663   :  { %5915 = vmatpush1.bf16.msra.mxu1 %v7532_v41 }
 0x664   :  { %5916 = vmatprep.subr.bf16.mxu1 %v7540_v62 }
 0x667   :  { %5917 = vmatpush1.bf16.msra.mxu1 %v7538_v44 }
 0x668   :  { %5918 = vmatprep.subr.bf16.mxu1 %v7546_v46 }
 0x66b   :  { %5919 = vmatpush1.bf16.msra.mxu1 %v7544_v49 }
 0x66c   :  { %5920 = vmatprep.subr.bf16.mxu1 %v7552_v14 }
 0x66f   :  { %5921 = vmatpush1.bf16.msra.mxu1 %v7550_v11 }
 0x670   :  { %5922 = vmatprep.subr.bf16.mxu1 %v7558_v52 }
 0x673   :  { %5923 = vmatpush1.bf16.msra.mxu1 %v7556_v56 }
 0x674   :  { %5924 = vmatprep.subr.bf16.mxu1 %v7564_v59 }
 0x677   :  { %v3470_v48 = vpop.f32.mrb[20].mxu1  ;;  %5925 = vmatpush1.bf16.msra.mxu1 %v7562_v60 }
 0x678   :  { %v3476_v8 = vpack.c.bf16 %v3470_v48, %v3470_v48  ;;  %v6679_v61 = vpop.f32.mrb[21].mxu1  ;;  %v7570_v48 = vld [vmem:[#allocation16 + $0x16c] ss:$16 sps:$4 sm:$0xff]  }
 0x679   :  { %v3473_v0 = vpop.f32.mrb[22].mxu1  ;;  %v7568_v61 = vld [vmem:[#allocation16 + $0x168] ss:$16 sps:$4 sm:$0xff]   ;;  %5926 = vmatprep.subr.bf16.mxu1 %v7570_v48 }
 0x67a   :  { %v6680_v10 = vpop.f32.mrb[23].mxu1  ;;  %3478 = vrot.lane.b32.xlu0 %v3476_v8, %s8072_s10  ;;  %v7573_v0 = vld [vmem:[#allocation16 + $0x184] ss:$16 sps:$4 sm:$0xff]  }
 0x67b   :  { %5927 = vmatpush1.bf16.msra.mxu1 %v7568_v61  ;;  %5842 = vmatprep.subr.bf16.mxu0 %v7573_v0 }
 0x67c   :  { %5843 = vmatpush1.bf16.msra.mxu0 %v7571_v7 }
 0x67d   :  { %5844 = vmatprep.subr.bf16.mxu0 %v7579_v20 }
 0x67f   :  { %v8783_v34 = vpop.f32.mrb[24].mxu1 }
 0x680   :  { %v6691_v4 = vpop.f32.mrb[25].mxu1  ;;  %5845 = vmatpush1.bf16.msra.mxu0 %v7577_v42  ;;  %v3597_v37 = vpack.c.bf16 %v8783_v34, %v8783_v34 }
 0x681   :  { %v3594_v38 = vpop.f32.mrb[26].mxu1 }
 0x682   :  { %v6692_v6 = vpop.f32.mrb[27].mxu1  ;;  %v7576_v38 = vld [vmem:[#allocation16 + $0x18c] ss:$16 sps:$4 sm:$0xff]   ;;  %v3599_v13 = vrot.slane %v3597_v37, 4  ;;  %v7601_v37 = vld [vmem:[#allocation16 + $0x220] ss:$16 sps:$4 sm:$0xff]  }
 0x683   :  { %5928 = vmatprep.subr.bf16.mxu1 %v7576_v38 }
 0x684   :  { %5929 = vmatpush1.bf16.msra.mxu1 %v7574_v9 }
 0x687   :  { %v3710_v28 = vpop.f32.mrb[28].mxu1 }
 0x688   :  { %v3716_v1 = vpack.c.bf16 %v3710_v28, %v3710_v28  ;;  %v6703_v39 = vpop.f32.mrb[29].mxu1  ;;  %v7582_v28 = vld [vmem:[#allocation16 + $0x1ac] ss:$16 sps:$4 sm:$0xff]  }
 0x689   :  { %v3713_v29 = vpop.f32.mrb[30].mxu1  ;;  %5930 = vmatprep.subr.bf16.mxu1 %v7582_v28 }
 0x68a   :  { %3717 = vst.msk [vmem:[#allocation4 + $0x8] sm:$0xf] %vm3240_vm4, %v3716_v1  ;;  %v6704_v25 = vpop.f32.mrb[31].mxu1  ;;  %5931 = vmatpush1.bf16.msra.mxu1 %v7580_v33  ;;  %v7585_v29 = vld [vmem:[#allocation16 + $0x1c4] ss:$16 sps:$4 sm:$0xff]  }
 0x68b   :  { %v7588_v25 = vld [vmem:[#allocation16 + $0x1cc] ss:$16 sps:$4 sm:$0xff]   ;;  %5846 = vmatprep.subr.bf16.mxu0 %v7585_v29 }
 0x68c   :  { %5932 = vmatprep.subr.bf16.mxu1 %v7588_v25  ;;  %5847 = vmatpush1.bf16.msra.mxu0 %v7583_v17 }
 0x68d   :  { %5848 = vmatprep.subr.bf16.mxu0 %v7591_v31 }
 0x68e   :  { %5933 = vmatpush1.bf16.msra.mxu1 %v7586_v30 }
 0x68f   :  { %5934 = vmatprep.subr.bf16.mxu1 %v7594_v24  ;;  %v7598_v24 = vld [vmem:[#allocation16 + $0x208] ss:$16 sps:$4 sm:$0xff]  }
 0x690   :  { %5849 = vmatpush1.bf16.msra.mxu0 %v7589_v22 }
 0x691   :  { %5861 = vmatprep.subr.bf16.mxu0 %v7597_v18  ;;  %v7612_v18 = vld [vmem:[#allocation16 + $0x24c] ss:$16 sps:$4 sm:$0xff]  }
 0x692   :  { %5935 = vmatpush1.bf16.msra.mxu1 %v7592_v23  ;;  %v7595_v23 = vld [vmem:[#allocation16 + $0x200] ss:$16 sps:$4 sm:$0xff]  }
 0x693   :  { %5947 = vmatprep.subr.bf16.mxu1 %v7600_v43  ;;  %v7607_v43 = vld [vmem:[#allocation16 + $0x240] ss:$16 sps:$4 sm:$0xff]  }
 0x6bc   :  { %v3824_v8 = vpop.f32.mrb[32].mxu1 }
 0x6bd   :  { %v3830_v10 = vpack.c.bf16 %v3824_v8, %v3824_v8  ;;  %v6715_v4 = vpop.f32.mrb[33].mxu1 }
 0x6be   :  { %v3827_v36 = vpop.f32.mrb[34].mxu1 }
 0x6bf   :  { %v3832_v5 = vrot.slane %v3830_v10, 4  ;;  %v6716_v6 = vpop.f32.mrb[35].mxu1 }
 0x6c1   :  { %3834 = vst.msk [vmem:[#allocation4 + $0x8] sm:$0xf0] %vm3358_vm5, %v3832_v5 }
 0x6c4   :  { %v3945_v19 = vpop.f32.mrb[36].mxu1 }
 0x6c5   :  { %v3951_v21 = vpack.c.bf16 %v3945_v19, %v3945_v19  ;;  %v6727_v26 = vpop.f32.mrb[37].mxu1 }
 0x6c6   :  { %v3948_v1 = vpop.f32.mrb[38].mxu1 }
 0x6c7   :  { %3953 = vrot.lane.b32.xlu0 %v3951_v21, %s8072_s10  ;;  %v6728_v39 = vpop.f32.mrb[39].mxu1 }
 0x6cc   :  { %v4065_v3 = vpop.f32.mrb[40].mxu1 }
 0x6cd   :  { %v4071_v32 = vpack.c.bf16 %v4065_v3, %v4065_v3  ;;  %v6739_v15 = vpop.f32.mrb[41].mxu1 }
 0x6ce   :  { %v4068_v35 = vpop.f32.mrb[42].mxu1  ;;  %v7606_v15 = vld [vmem:[#allocation16 + $0x22c] ss:$16 sps:$4 sm:$0xff]  }
 0x6cf   :  { %v4073_v16 = vrot.slane %v4071_v32, 4  ;;  %v6740_v41 = vpop.f32.mrb[43].mxu1  ;;  %v7603_v32 = vld [vmem:[#allocation16 + $0x224] ss:$16 sps:$4 sm:$0xff]  }
 0x6d0   :  { %v7609_v41 = vld [vmem:[#allocation16 + $0x244] ss:$16 sps:$4 sm:$0xff]  }
 0x6d1   :  { %4074 = vrot.lane.b32.xlu0 %v4073_v16, %s8072_s10  ;;  %v7604_v16 = vld [vmem:[#allocation16 + $0x228] ss:$16 sps:$4 sm:$0xff]  }
 0x6d4   :  { %v4183_v62 = vpop.f32.mrb[44].mxu1 }
 0x6d5   :  { %v4189_v44 = vpack.c.bf16 %v4183_v62, %v4183_v62  ;;  %3600 = vrot.lane.b32.xlu0 %v3599_v13, %s8072_s10  ;;  %v6751_v45 = vpop.f32.mrb[45].mxu1  ;;  %v7610_v13 = vld [vmem:[#allocation16 + $0x248] ss:$16 sps:$4 sm:$0xff]   ;;  %v7615_v62 = vld [vmem:[#allocation16 + $0x264] ss:$16 sps:$4 sm:$0xff]  }
 0x6d6   :  { %v4186_v46 = vpop.f32.mrb[46].mxu1  ;;  %v7613_v45 = vld [vmem:[#allocation16 + $0x260] ss:$16 sps:$4 sm:$0xff]  }
 0x6d7   :  { %4190 = vst.msk [vmem:[#allocation4 + $0x10] sm:$0xf] %vm3240_vm4, %v4189_v44  ;;  %v6752_v34 = vpop.f32.mrb[47].mxu1  ;;  %v7618_v44 = vld [vmem:[#allocation16 + $0x26c] ss:$16 sps:$4 sm:$0xff]  }
 0x6d8   :  { %v7616_v46 = vld [vmem:[#allocation16 + $0x268] ss:$16 sps:$4 sm:$0xff]   ;;  %v7621_v34 = vld [vmem:[#allocation16 + $0x284] ss:$16 sps:$4 sm:$0xff]  }
 0x6dc   :  { %v4297_v47 = vpop.f32.mrb[48].mxu1 }
 0x6dd   :  { %v4303_v49 = vpack.c.bf16 %v4297_v47, %v4297_v47  ;;  %v6763_v40 = vpop.f32.mrb[49].mxu1  ;;  %v7624_v47 = vld [vmem:[#allocation16 + $0x28c] ss:$16 sps:$4 sm:$0xff]  }
 0x6de   :  { %v4300_v14 = vpop.f32.mrb[50].mxu1  ;;  %v7622_v40 = vld [vmem:[#allocation16 + $0x288] ss:$16 sps:$4 sm:$0xff]  }
 0x6df   :  { %v4305_v27 = vrot.slane %v4303_v49, 4  ;;  %v6764_v11 = vpop.f32.mrb[51].mxu1  ;;  %v7619_v49 = vld [vmem:[#allocation16 + $0x280] ss:$16 sps:$4 sm:$0xff]   ;;  %v7627_v14 = vld [vmem:[#allocation16 + $0x2a4] ss:$16 sps:$4 sm:$0xff]  }
 0x6e0   :  { %v7625_v11 = vld [vmem:[#allocation16 + $0x2a0] ss:$16 sps:$4 sm:$0xff]  }
 0x6e1   :  { %4307 = vst.msk [vmem:[#allocation4 + $0x10] sm:$0xf0] %vm3358_vm5, %v4305_v27  ;;  %v7630_v27 = vld [vmem:[#allocation16 + $0x2ac] ss:$16 sps:$4 sm:$0xff]  }
 0x6e4   :  { %v4418_v50 = vpop.f32.mrb[52].mxu1 }
 0x6e5   :  { %v6775_v52 = vpop.f32.mrb[53].mxu1  ;;  %v4424_v21 = vpack.c.bf16 %v4418_v50, %v4418_v50  ;;  %v7628_v50 = vld [vmem:[#allocation16 + $0x2a8] ss:$16 sps:$4 sm:$0xff]  }
 0x6e6   :  { %v4421_v53 = vpop.f32.mrb[54].mxu1  ;;  %v7633_v52 = vld [vmem:[#allocation16 + $0x2c4] ss:$16 sps:$4 sm:$0xff]  }
 0x6e7   :  { %v6776_v56 = vpop.f32.mrb[55].mxu1  ;;  %v7636_v53 = vld [vmem:[#allocation16 + $0x2cc] ss:$16 sps:$4 sm:$0xff]  }
 0x6e8   :  { %v7631_v56 = vld [vmem:[#allocation16 + $0x2c0] ss:$16 sps:$4 sm:$0xff]  }
 0x6ec   :  { %v3479_v57 = vpop.permute.xlu0 %3478  ;;  %v4538_v59 = vpop.f32.mrb[56].mxu1 }
 0x6ed   :  { %3482 = vst.msk [vmem:[#allocation4] sm:$0xf] %vm3481_vm6, %v3479_v57  ;;  %v6787_v55 = vpop.f32.mrb[57].mxu1  ;;  %v4544_v26 = vpack.c.bf16 %v4538_v59, %v4538_v59  ;;  %v7634_v57 = vld [vmem:[#allocation16 + $0x2c8] ss:$16 sps:$4 sm:$0xff]  }
 0x6ee   :  { %v4541_v60 = vpop.f32.mrb[58].mxu1  ;;  %v7639_v59 = vld [vmem:[#allocation16 + $0x2e4] ss:$16 sps:$4 sm:$0xff]   ;;  %v7642_v55 = vld [vmem:[#allocation16 + $0x2ec] ss:$16 sps:$4 sm:$0xff]  }
 0x6ef   :  { %v6788_v58 = vpop.f32.mrb[59].mxu1  ;;  %v4546_v28 = vrot.slane %v4544_v26, 4  ;;  %v7637_v60 = vld [vmem:[#allocation16 + $0x2e0] ss:$16 sps:$4 sm:$0xff]   ;;  %v7672_v26 = vld [vmem:[#allocation16 + $0x38c] ss:$16 sps:$4 sm:$0xff]  }
 0x6f0   :  { %v7640_v58 = vld [vmem:[#allocation16 + $0x2e8] ss:$16 sps:$4 sm:$0xff]  }
 0x6f4   :  { %v4656_v12 = vpop.f32.mrb[60].mxu1 }
 0x6f5   :  { %v4662_v48 = vpack.c.bf16 %v4656_v12, %v4656_v12  ;;  %v6799_v8 = vpop.f32.mrb[61].mxu1  ;;  %v7645_v12 = vld [vmem:[#allocation16 + $0x304] ss:$16 sps:$4 sm:$0xff]  }
 0x6f6   :  { %v4659_v61 = vpop.f32.mrb[62].mxu1  ;;  %v7643_v8 = vld [vmem:[#allocation16 + $0x300] ss:$16 sps:$4 sm:$0xff]  }
 0x6f7   :  { %4663 = vst.msk [vmem:[#allocation4 + $0x18] sm:$0xf] %vm3240_vm4, %v4662_v48  ;;  %v6800_v0 = vpop.f32.mrb[63].mxu1  ;;  %v7648_v48 = vld [vmem:[#allocation16 + $0x30c] ss:$16 sps:$4 sm:$0xff]  }
 0x6f8   :  { %v7646_v61 = vld [vmem:[#allocation16 + $0x308] ss:$16 sps:$4 sm:$0xff]   ;;  %v7651_v0 = vld [vmem:[#allocation16 + $0x324] ss:$16 sps:$4 sm:$0xff]  }
 0x6fc   :  { %v4770_v10 = vpop.f32.mrb[64].mxu1 }
 0x6fd   :  { %v4776_v4 = vpack.c.bf16 %v4770_v10, %v4770_v10  ;;  %v6811_v38 = vpop.f32.mrb[65].mxu1  ;;  %v7654_v10 = vld [vmem:[#allocation16 + $0x32c] ss:$16 sps:$4 sm:$0xff]  }
 0x6fe   :  { %v4773_v36 = vpop.f32.mrb[66].mxu1  ;;  %v7652_v38 = vld [vmem:[#allocation16 + $0x328] ss:$16 sps:$4 sm:$0xff]  }
 0x6ff   :  { %v4778_v5 = vrot.slane %v4776_v4, 4  ;;  %v6812_v6 = vpop.f32.mrb[67].mxu1  ;;  %v7649_v4 = vld [vmem:[#allocation16 + $0x320] ss:$16 sps:$4 sm:$0xff]   ;;  %v7657_v36 = vld [vmem:[#allocation16 + $0x344] ss:$16 sps:$4 sm:$0xff]  }
 0x700   :  { %v7655_v6 = vld [vmem:[#allocation16 + $0x340] ss:$16 sps:$4 sm:$0xff]  }
 0x701   :  { %4780 = vst.msk [vmem:[#allocation4 + $0x18] sm:$0xf0] %vm3358_vm5, %v4778_v5  ;;  %v7660_v5 = vld [vmem:[#allocation16 + $0x34c] ss:$16 sps:$4 sm:$0xff]  }
 0x719   :  { %v4891_v7 = vpop.f32.mrb[68].mxu1 }
 0x71a   :  { %v4897_v9 = vpack.c.bf16 %v4891_v7, %v4891_v7  ;;  %v6823_v19 = vpop.f32.mrb[69].mxu1  ;;  %v7658_v7 = vld [vmem:[#allocation16 + $0x348] ss:$16 sps:$4 sm:$0xff]  }
 0x71b   :  { %v4894_v42 = vpop.f32.mrb[70].mxu1  ;;  %v7666_v19 = vld [vmem:[#allocation16 + $0x36c] ss:$16 sps:$4 sm:$0xff]  }
 0x71c   :  { %4899 = vrot.lane.b32.xlu0 %v4897_v9, %s8072_s10  ;;  %v6824_v20 = vpop.f32.mrb[71].mxu1  ;;  %v7663_v9 = vld [vmem:[#allocation16 + $0x364] ss:$16 sps:$4 sm:$0xff]   ;;  %v7661_v42 = vld [vmem:[#allocation16 + $0x360] ss:$16 sps:$4 sm:$0xff]  }
 0x71d   :  { %v7664_v20 = vld [vmem:[#allocation16 + $0x368] ss:$16 sps:$4 sm:$0xff]  }
 0x720   :  { %4426 = vrot.lane.b32.xlu0 %v4424_v21, %s8072_s10  ;;  %v7669_v21 = vld [vmem:[#allocation16 + $0x384] ss:$16 sps:$4 sm:$0xff]  }
 0x721   :  { %v5011_v33 = vpop.f32.mrb[72].mxu1 }
 0x722   :  { %v5017_v1 = vpack.c.bf16 %v5011_v33, %v5011_v33  ;;  %v6835_v39 = vpop.f32.mrb[73].mxu1  ;;  %v7667_v33 = vld [vmem:[#allocation16 + $0x380] ss:$16 sps:$4 sm:$0xff]  }
 0x723   :  { %v5014_v17 = vpop.f32.mrb[74].mxu1  ;;  %v7678_v39 = vld [vmem:[#allocation16 + $0x3ac] ss:$16 sps:$4 sm:$0xff]  }
 0x724   :  { %v5019_v29 = vrot.slane %v5017_v1, 4  ;;  %4547 = vrot.lane.b32.xlu0 %v4546_v28, %s8072_s10  ;;  %v6836_v30 = vpop.f32.mrb[75].mxu1  ;;  %v7670_v28 = vld [vmem:[#allocation16 + $0x388] ss:$16 sps:$4 sm:$0xff]   ;;  %v7675_v1 = vld [vmem:[#allocation16 + $0x3a4] ss:$16 sps:$4 sm:$0xff]  }
 0x725   :  { %v7673_v17 = vld [vmem:[#allocation16 + $0x3a0] ss:$16 sps:$4 sm:$0xff]   ;;  %v7681_v30 = vld [vmem:[#allocation16 + $0x3c4] ss:$16 sps:$4 sm:$0xff]  }
 0x726   :  { %5020 = vrot.lane.b32.xlu1 %v5019_v29, %s8072_s10  ;;  %v7676_v29 = vld [vmem:[#allocation16 + $0x3a8] ss:$16 sps:$4 sm:$0xff]  }
 0x739   :  { %v3954_v25 = vpop.permute.xlu0 %3953 }
 0x73a   :  { %3956 = vst.msk [vmem:[#allocation4 + $0x8] sm:$0xf] %vm3481_vm6, %v3954_v25  ;;  %v7684_v25 = vld [vmem:[#allocation16 + $0x3cc] ss:$16 sps:$4 sm:$0xff]  }
 0x743   :  { %v4075_v31 = vpop.permute.xlu0 %4074 }
 0x744   :  { %4077 = vst.msk [vmem:[#allocation4 + $0x8] sm:$0xf0] %vm3603_vm7, %v4075_v31  ;;  %v7679_v31 = vld [vmem:[#allocation16 + $0x3c0] ss:$16 sps:$4 sm:$0xff]  }
 0x747   :  { %v3601_v22 = vpop.permute.xlu0 %3600 }
 0x748   :  { %3604 = vst.msk [vmem:[#allocation4] sm:$0xf0] %vm3603_vm7, %v3601_v22  ;;  %v7682_v22 = vld [vmem:[#allocation16 + $0x3c8] ss:$16 sps:$4 sm:$0xff]  }
 0x74b   :  { %v5025_v3 = vld [vmem:[#allocation4 + $0x8] sm:$0xff] }
 0x74c   :  { %5850 = vmatprep.mubr.bf16.mxu0 %v5025_v3  ;;  %5936 = vmatprep.mubr.bf16.mxu1 %v5025_v3  ;;  %v7687_v3 = vld [vmem:[#allocation16 + $0x3e4] ss:$16 sps:$4 sm:$0xff]  }
 0x74f   :  { %v5024_v35 = vld [vmem:[#allocation4] sm:$0xff] }
 0x750   :  { %5851 = vmatmul.mubr.bf16.vlgmr.msra.gmra.mrb[76].mxu0 %v5024_v35  ;;  %5937 = vmatmul.mubr.bf16.vlgmr.msra.gmra.mrb[76].mxu1 %v5024_v35 }
 0x751   :  { %5862 = vmatpush1.bf16.msra.mxu0 %v7595_v23  ;;  %5948 = vmatpush1.bf16.msra.mxu1 %v7598_v24  ;;  %v7690_v23 = vld [vmem:[#allocation16 + $0x3ec] ss:$16 sps:$4 sm:$0xff]   ;;  %v7685_v24 = vld [vmem:[#allocation16 + $0x3e0] ss:$16 sps:$4 sm:$0xff]  }
 0x752   :  { %5863 = vmatprep.subr.bf16.mxu0 %v7603_v32  ;;  %5949 = vmatprep.subr.bf16.mxu1 %v7606_v15  ;;  %v7688_v32 = vld [vmem:[#allocation16 + $0x3e8] ss:$16 sps:$4 sm:$0xff]  }
 0x755   :  { %5864 = vmatpush1.bf16.msra.mxu0 %v7601_v37  ;;  %5950 = vmatpush1.bf16.msra.mxu1 %v7604_v16 }
 0x756   :  { %5865 = vmatprep.subr.bf16.mxu0 %v7609_v41  ;;  %5951 = vmatprep.subr.bf16.mxu1 %v7612_v18 }
 0x759   :  { %5866 = vmatpush1.bf16.msra.mxu0 %v7607_v43  ;;  %5952 = vmatpush1.bf16.msra.mxu1 %v7610_v13 }
 0x75a   :  { %5867 = vmatprep.subr.bf16.mxu0 %v7615_v62  ;;  %5953 = vmatprep.subr.bf16.mxu1 %v7618_v44 }
 0x75d   :  { %5868 = vmatpush1.bf16.msra.mxu0 %v7613_v45  ;;  %5954 = vmatpush1.bf16.msra.mxu1 %v7616_v46 }
 0x75e   :  { %5869 = vmatprep.subr.bf16.mxu0 %v7621_v34  ;;  %5955 = vmatprep.subr.bf16.mxu1 %v7624_v47 }
 0x761   :  { %5870 = vmatpush1.bf16.msra.mxu0 %v7619_v49  ;;  %5956 = vmatpush1.bf16.msra.mxu1 %v7622_v40 }
 0x762   :  { %5871 = vmatprep.subr.bf16.mxu0 %v7627_v14  ;;  %5957 = vmatprep.subr.bf16.mxu1 %v7630_v27 }
 0x765   :  { %5872 = vmatpush1.bf16.msra.mxu0 %v7625_v11  ;;  %5958 = vmatpush1.bf16.msra.mxu1 %v7628_v50 }
 0x766   :  { %5873 = vmatprep.subr.bf16.mxu0 %v7633_v52  ;;  %5959 = vmatprep.subr.bf16.mxu1 %v7636_v53 }
 0x769   :  { %5874 = vmatpush1.bf16.msra.mxu0 %v7631_v56  ;;  %5960 = vmatpush1.bf16.msra.mxu1 %v7634_v57 }
 0x76a   :  { %5875 = vmatprep.subr.bf16.mxu0 %v7639_v59  ;;  %5961 = vmatprep.subr.bf16.mxu1 %v7642_v55 }
 0x76d   :  { %5876 = vmatpush1.bf16.msra.mxu0 %v7637_v60  ;;  %5962 = vmatpush1.bf16.msra.mxu1 %v7640_v58 }
 0x76e   :  { %5877 = vmatprep.subr.bf16.mxu0 %v7645_v12  ;;  %5963 = vmatprep.subr.bf16.mxu1 %v7648_v48 }
 0x771   :  { %5878 = vmatpush1.bf16.msra.mxu0 %v7643_v8  ;;  %5964 = vmatpush1.bf16.msra.mxu1 %v7646_v61 }
 0x772   :  { %5879 = vmatprep.subr.bf16.mxu0 %v7651_v0  ;;  %5965 = vmatprep.subr.bf16.mxu1 %v7654_v10 }
 0x775   :  { %5880 = vmatpush1.bf16.msra.mxu0 %v7649_v4  ;;  %5966 = vmatpush1.bf16.msra.mxu1 %v7652_v38 }
 0x776   :  { %5881 = vmatprep.subr.bf16.mxu0 %v7657_v36  ;;  %5967 = vmatprep.subr.bf16.mxu1 %v7660_v5 }
 0x779   :  { %5882 = vmatpush1.bf16.msra.mxu0 %v7655_v6  ;;  %5968 = vmatpush1.bf16.msra.mxu1 %v7658_v7 }
 0x77a   :  { %5883 = vmatprep.subr.bf16.mxu0 %v7663_v9  ;;  %5969 = vmatprep.subr.bf16.mxu1 %v7666_v19 }
 0x77d   :  { %5884 = vmatpush1.bf16.msra.mxu0 %v7661_v42  ;;  %5970 = vmatpush1.bf16.msra.mxu1 %v7664_v20 }
 0x77e   :  { %5885 = vmatprep.subr.bf16.mxu0 %v7669_v21  ;;  %5971 = vmatprep.subr.bf16.mxu1 %v7672_v26 }
 0x781   :  { %5886 = vmatpush1.bf16.msra.mxu0 %v7667_v33  ;;  %5972 = vmatpush1.bf16.msra.mxu1 %v7670_v28 }
 0x782   :  { %5887 = vmatprep.subr.bf16.mxu0 %v7675_v1  ;;  %5973 = vmatprep.subr.bf16.mxu1 %v7678_v39 }
 0x785   :  { %5888 = vmatpush1.bf16.msra.mxu0 %v7673_v17  ;;  %5974 = vmatpush1.bf16.msra.mxu1 %v7676_v29 }
 0x786   :  { %5889 = vmatprep.subr.bf16.mxu0 %v7681_v30  ;;  %5975 = vmatprep.subr.bf16.mxu1 %v7684_v25 }
 0x789   :  { %5890 = vmatpush1.bf16.msra.mxu0 %v7679_v31  ;;  %5976 = vmatpush1.bf16.msra.mxu1 %v7682_v22 }
 0x78a   :  { %5891 = vmatprep.subr.bf16.mxu0 %v7687_v3  ;;  %5977 = vmatprep.subr.bf16.mxu1 %v7690_v23 }
 0x78d   :  { %5892 = vmatpush1.bf16.msra.mxu0 %v7685_v24  ;;  %5978 = vmatpush1.bf16.msra.mxu1 %v7688_v32 }
 0x78e   :  { %v4900_v15 = vpop.permute.xlu0 %4899 }
 0x78f   :  { %4902 = vst.msk [vmem:[#allocation4 + $0x18] sm:$0xf] %vm3481_vm6, %v4900_v15 }
 0x792   :  { %v4427_v35 = vpop.permute.xlu0 %4426 }
 0x793   :  { %4429 = vst.msk [vmem:[#allocation4 + $0x10] sm:$0xf] %vm3481_vm6, %v4427_v35 }
 0x796   :  { %v4548_v37 = vpop.permute.xlu0 %4547 }
 0x797   :  { %4550 = vst.msk [vmem:[#allocation4 + $0x10] sm:$0xf0] %vm3603_vm7, %v4548_v37 }
 0x798   :  { %v5021_v16 = vpop.permute.xlu1 %5020 }
 0x799   :  { %5023 = vst.msk [vmem:[#allocation4 + $0x18] sm:$0xf0] %vm3603_vm7, %v5021_v16 }
 0x79e   :  { %v5026_v18 = vld [vmem:[#allocation4 + $0x10] sm:$0xff] }
 0x7a0   :  { %v5027_v41 = vld [vmem:[#allocation4 + $0x18] sm:$0xff] }
 0x7a1   :  { %5893 = vmatprep.mubr.bf16.mxu0 %v5027_v41  ;;  %5979 = vmatprep.mubr.bf16.mxu1 %v5027_v41 }
 0x7a2   :  { %5894 = vmatmul.mubr.bf16.vlgmr.msra.gmra.mrb[76].mxu0 %v5026_v18  ;;  %5980 = vmatmul.mubr.bf16.vlgmr.msra.gmra.mrb[76].mxu1 %v5026_v18 }
 0x7a3   :  { %8008 = shalt.err (!%p8005_p8)
}
 0x7a4   :  { %s8009_s28 = scalar_lea.hbm %s8851_s12, 2048 }
 0x7a5   :  { %p8010_p9 = scmp.ne.s32.totalorder %s8851_s12, %s8009_s28  ;;  %p8013_p10 = scmp.lt.u32.totalorder %s8009_s28, %s8851_s12 }
 0x7a7   :  { %p8015_p11 = pnand %p8013_p10, %p8010_p9 }
 0x7a9   :  { %8018 = shalt.err (!%p8015_p11)
}
 0x7aa   :  { %s8076_s2 = smov 128   ;;  %s8077_s30 = smov 8   ;;  %v5156_v43 = vld [vmem:[#allocation22] sm:$0xf] }
 0x7ab   :  { %6022 = dma.vmem_to_hbm [thread:$0]  %s6017_s4, 2048, %s8851_s12, [#allocation25], %s8076_s2, %s8076_s2, %s8077_s30   ;;  %v5161_v13 = vrot.slane %v5156_v43, %v8320_v54  ;;  %v5169_v62 = vrot.slane %v5156_v43, %v8324_v63  ;;  %v5165_v44 = vrot.slane %v5156_v43, %v8318_v51  ;;  %v5173_v45 = vrot.slane %v5156_v43, %v8326_v2 }
 0x7ac   :  { %s8078_s22 = smov [#allocation23]  }
 0x7ad   :  { %s6004_s19 = sshll.u32 %s8078_s22, 4  ;;  %s6005_s19 = int_to_ptr.vmem [resolvable:$true] %s6004_s19 }
 0x7ae   :  { %s8019_s12 = scalar_lea.vmem %s6005_s19, 1024  ;;  %p8024_p13 = scmp.lt.s32.totalorder %s6005_s19, %s6005_s19 }
 0x7af   :  { %p8020_p12 = scmp.ne.s32.totalorder %s6005_s19, %s8019_s12  ;;  %p8025_p0 = scmp.lt.s32.totalorder %s8019_s12, %s8019_s12 }
 0x7b1   :  { %p8026_p1 = por %p8025_p0, %p8024_p13 }
 0x7b3   :  { %p8027_p2 = pnand %p8026_p1, %p8020_p12 }
 0x875   :  { %v5895_v46 = vpop.f32.mrb[76].mxu0  ;;  %v5981_v34 = vpop.f32.mrb[76].mxu1 }
 0x876   :  { %v6861_v47 = vadd.f32 %v5895_v46, %v5161_v13  ;;  %v6865_v49 = vadd.f32 %v5981_v34, %v5169_v62  ;;  %v5897_v40 = vpop.f32.mrb[77].mxu0  ;;  %v5983_v14 = vpop.f32.mrb[77].mxu1 }
 0x877   :  { %v6862_v27 = vadd.f32 %v5897_v40, %v5165_v44  ;;  %v6866_v11 = vadd.f32 %v5983_v14, %v5173_v45  ;;  %v5899_v50 = vpop.f32.mrb[78].mxu0  ;;  %v5985_v52 = vpop.f32.mrb[78].mxu1 }
 0x878   :  { %5990 = vst [vmem:[#allocation23] sm:$0xff] %v6861_v47  ;;  %5992 = vst [vmem:[#allocation23 + $0x10] sm:$0xff] %v6865_v49  ;;  %v6863_v54 = vadd.f32 %v5899_v50, %v5161_v13  ;;  %v6867_v63 = vadd.f32 %v5985_v52, %v5169_v62  ;;  %v5901_v53 = vpop.f32.mrb[79].mxu0  ;;  %v5987_v51 = vpop.f32.mrb[79].mxu1 }
 0x879   :  { %5991 = vst [vmem:[#allocation23 + $0x8] sm:$0xff] %v6862_v27  ;;  %5993 = vst [vmem:[#allocation23 + $0x18] sm:$0xff] %v6866_v11  ;;  %v6864_v2 = vadd.f32 %v5901_v53, %v5165_v44  ;;  %v6868_v56 = vadd.f32 %v5987_v51, %v5173_v45 }
 0x87a   :  { %5995 = vst [vmem:[#allocation23 + $0x20] sm:$0xff] %v6863_v54  ;;  %5997 = vst [vmem:[#allocation23 + $0x30] sm:$0xff] %v6867_v63 }
 0x87b   :  { %5996 = vst [vmem:[#allocation23 + $0x28] sm:$0xff] %v6864_v2  ;;  %5998 = vst [vmem:[#allocation23 + $0x38] sm:$0xff] %v6868_v56 }
 0x87c   :  { %8030 = shalt.err (!%p8027_p2)
}
 0x87d   :  { %s8031_s21 = scalar_lea.hbm %s8850_s11, 1024 }
 0x87e   :  { %p8032_p3 = scmp.ne.s32.totalorder %s8850_s11, %s8031_s21  ;;  %p8035_p4 = scmp.lt.u32.totalorder %s8031_s21, %s8850_s11 }
 0x880   :  { %p8037_p5 = pnand %p8035_p4, %p8032_p3 }
 0x882   :  { %8040 = shalt.err (!%p8037_p5)
}
 0x883   :  { %6010 = dma.vmem_to_hbm [thread:$0]  %s6005_s19, 1024, %s8850_s11, [#allocation7], %s8059_s15, %s8059_s15, %s8060_s16  }
 0x884   :  { %8053 = dma.done.wait [#allocation7], 1024  }
 0x885   :  { %8054 = vsyncadd [#allocation7], 4294966272 }
 0x886   :  { %8055 = dma.done.wait [#allocation25], 2048  }
 0x887   :  { %8056 = vsyncadd [#allocation25], 4294965248 }
 0x888   :  { %6029 = vsyncpa [#allocation6], 1 }
 0x889   :  { %6030 = vsyncpa [#allocation9], 1 }
 0x88a   :  { %6031 = vsyncpa [#allocation12], 1 }
 0x88b   :  { %6032 = vsyncpa [#allocation15], 1 }
 0x88c   :  { %6033 = vsyncpa [#allocation18], 1 }
 0x88d   :  { %6034 = vsyncpa [#allocation21], 1 }
 0x88e   :  { %6035 = vsyncpa [#allocation7], 1 }
 0x88f   :  { %6036 = vsyncpa [#allocation25], 1 }

</bundles_post_ra>
